<compile_context>
chip_gen: v7x
topology: tpu7x:2x2x1
jax: 0.10.0
libtpu: 0.0.40
codegen_flags: <defaults>
</compile_context>

<pallas_src>
import math

import jax
import jax.numpy as jnp
import numpy as np
from jax.experimental import pallas as pl
from jax.experimental.pallas import tpu as pltpu

# -------- model dimensions (small, consistent with the module) --------
B = 2            # batch
S = 8            # target sequence length
SM = 8           # source (memory) sequence length
D = 32           # d_model (layer.size)
H = 4            # attention heads
DK = D // H      # per-head dim
DFF = 64         # feed-forward hidden dim
N_LAYERS = 2     # Decoder N
EPS = 1e-6       # LayerNorm eps (matches the PyTorch module)
SCALE = 1.0 / math.sqrt(DK)
NEG_INF = -1e9


def _layernorm(x, gamma, beta):
    # PyTorch LayerNorm in this module: mean over last dim, std with Bessel's
    # correction (torch.std default unbiased=True), and divides by (std + eps).
    mean = jnp.mean(x, axis=-1, keepdims=True)
    var = jnp.sum((x - mean) ** 2, axis=-1, keepdims=True) / (x.shape[-1] - 1)
    return gamma * (x - mean) / (jnp.sqrt(var) + EPS) + beta


def _make_bias(mask, sk):
    """(B, S, sk) {0,1} mask -> (H*B*S, B*sk) additive bias.

    Cross-batch blocks are fully masked (-1e9) so that all B batch elements can be
    folded into a single set of per-head score/PV matmuls; tiled over heads once.
    Computed ONCE per kernel invocation (masks are layer-invariant).
    """
    mb = jnp.where(mask == 0, jnp.float32(NEG_INF), jnp.float32(0.0))     # (B, S, sk)
    neg = jnp.full((S, sk), NEG_INF, jnp.float32)
    rows = [jnp.concatenate([mb[b] if bb == b else neg for bb in range(B)], axis=1)
            for b in range(B)]                                            # (S, B*sk) each
    base = jnp.concatenate(rows, axis=0)                                  # (B*S, B*sk)
    return jnp.concatenate([base] * H, axis=0)                            # (H*B*S, B*sk)


def _mha(q, k, v, bias, wo, bo):
    """Multi-head attention with all batch elements folded together.

    q: (B*S, D) already scaled by 1/sqrt(dk); k, v: (B*Sk, D);
    bias: (H*B*S, B*Sk) additive mask (cross-batch blocks = -1e9);
    wo: (D, D), bo: (1, D).  Returns (B*S, D).
    """
    nq = q.shape[0]
    kT = k.T                                  # ONE XLU transpose per attention call
    # H score matmuls over the full folded batch, sublane-stacked by head.
    s_all = jnp.concatenate(
        [jnp.dot(q[:, h * DK:(h + 1) * DK], kT[h * DK:(h + 1) * DK, :],
                 preferred_element_type=jnp.float32) for h in range(H)],
        axis=0) + bias                        # (H*B*S, B*Sk)
    # ONE batched softmax across all heads and batches (exact division).
    m = jnp.max(s_all, axis=-1, keepdims=True)
    p = jnp.exp(s_all - m)
    p = p / jnp.sum(p, axis=-1, keepdims=True)
    # H PV matmuls; cross-batch probabilities are exactly 0, so the folded contraction
    # equals the per-batch result.  Heads concatenated lane-wise -> (B*S, D).
    ctx = jnp.concatenate(
        [jnp.dot(p[h * nq:(h + 1) * nq, :], v[:, h * DK:(h + 1) * DK],
                 preferred_element_type=jnp.float32) for h in range(H)],
        axis=1)
    # ONE Wo matmul for all heads and batches.
    return jnp.dot(ctx, wo, preferred_element_type=jnp.float32) + bo


def decoder_kernel(x_ref, mem_ref, tmask_ref, smask_ref,
                   lng_ref, lnb_ref,
                   wqkv_ref, bqkv_ref, wqc_ref, bqc_ref, wkvc_ref, bkvc_ref,
                   wo_ref, bo_ref, w1_ref, b1_ref, w2_ref, b2_ref, o_ref):
    x = x_ref[...]         # (B*S, D)   batch-major folded rows
    mem = mem_ref[...]     # (B*SM, D)

    # Additive mask biases: one jnp.where each, built once, pre-tiled over heads and
    # pre-padded with cross-batch -inf blocks.
    tgt_bias = _make_bias(tmask_ref[...], S)       # (H*B*S, B*S)
    src_bias = _make_bias(smask_ref[...], SM)      # (H*B*S, B*SM)

    for i in range(N_LAYERS):        # static unroll over layers (weights stay in VMEM)
        ln = 3 * i

        # ---- sublayer 1: x + SelfAttn(LN(x), tgt_mask) ----
        y = _layernorm(x, lng_ref[ln:ln + 1, :], lnb_ref[ln:ln + 1, :])
        qkv = jnp.dot(y, wqkv_ref[i], preferred_element_type=jnp.float32) \
            + bqkv_ref[i:i + 1, :]                                # ONE packed projection
        q = qkv[:, 0:D] * SCALE                                   # fold 1/sqrt(dk) into q
        x = x + _mha(q, qkv[:, D:2 * D], qkv[:, 2 * D:3 * D], tgt_bias,
                     wo_ref[2 * i], bo_ref[2 * i:2 * i + 1, :])

        # ---- sublayer 2: x + SrcAttn(LN(x), memory, src_mask) ----
        y = _layernorm(x, lng_ref[ln + 1:ln + 2, :], lnb_ref[ln + 1:ln + 2, :])
        q = (jnp.dot(y, wqc_ref[i], preferred_element_type=jnp.float32)
             + bqc_ref[i:i + 1, :]) * SCALE
        kv = jnp.dot(mem, wkvc_ref[i], preferred_element_type=jnp.float32) \
            + bkvc_ref[i:i + 1, :]                                # packed K/V projection
        x = x + _mha(q, kv[:, 0:D], kv[:, D:2 * D], src_bias,
                     wo_ref[2 * i + 1], bo_ref[2 * i + 1:2 * i + 2, :])

        # ---- sublayer 3: x + FFN(LN(x)) ----
        y = _layernorm(x, lng_ref[ln + 2:ln + 3, :], lnb_ref[ln + 2:ln + 3, :])
        h1 = jnp.maximum(jnp.dot(y, w1_ref[i], preferred_element_type=jnp.float32)
                         + b1_ref[i:i + 1, :], 0.0)
        x = x + jnp.dot(h1, w2_ref[i], preferred_element_type=jnp.float32) \
            + b2_ref[i:i + 1, :]

    # ---- final LayerNorm ----
    o_ref[...] = _layernorm(x, lng_ref[3 * N_LAYERS:3 * N_LAYERS + 1, :],
                            lnb_ref[3 * N_LAYERS:3 * N_LAYERS + 1, :])


def _vmem_spec():
    return pl.BlockSpec(memory_space=pltpu.MemorySpace.VMEM)


@jax.jit
def decoder_forward(x, memory, src_mask, tgt_mask, params):
    # Grid-less call: everything (a few hundred KB) lives in VMEM for the whole kernel.
    out = pl.pallas_call(
        decoder_kernel,
        out_shape=jax.ShapeDtypeStruct((B * S, D), jnp.float32),
        in_specs=[_vmem_spec() for _ in range(18)],
        out_specs=_vmem_spec(),
    )(x.reshape(B * S, D), memory.reshape(B * SM, D), tgt_mask, src_mask,
      params["ln_g"], params["ln_b"],
      params["w_qkv"], params["b_qkv"], params["w_q"], params["b_q"],
      params["w_kv"], params["b_kv"], params["w_o"], params["b_o"],
      params["w1"], params["b1"], params["w2"], params["b2"])
    return out.reshape(B, S, D)


def init_params(key):
    def dense(i, shape, scale=0.02):
        return scale * jax.random.normal(jax.random.fold_in(key, i), shape, jnp.float32)

    n_ln = 3 * N_LAYERS + 1
    return dict(
        # self-attention: packed QKV projection, lane-stacked [Wq | Wk | Wv]
        w_qkv=jnp.stack([dense(i, (D, 3 * D)) for i in range(N_LAYERS)]),       # (N, D, 3D)
        b_qkv=jnp.stack([dense(10 + i, (3 * D,)) for i in range(N_LAYERS)]),    # (N, 3D)
        # cross-attention: Wq applied to x, packed [Wk | Wv] applied to memory
        w_q=jnp.stack([dense(20 + i, (D, D)) for i in range(N_LAYERS)]),        # (N, D, D)
        b_q=jnp.stack([dense(30 + i, (D,)) for i in range(N_LAYERS)]),          # (N, D)
        w_kv=jnp.stack([dense(40 + i, (D, 2 * D)) for i in range(N_LAYERS)]),   # (N, D, 2D)
        b_kv=jnp.stack([dense(50 + i, (2 * D,)) for i in range(N_LAYERS)]),     # (N, 2D)
        # output projections: [self, cross] per layer
        w_o=jnp.stack([dense(60 + i, (D, D)) for i in range(2 * N_LAYERS)]),    # (2N, D, D)
        b_o=jnp.stack([dense(80 + i, (D,)) for i in range(2 * N_LAYERS)]),      # (2N, D)
        w1=jnp.stack([dense(200 + i, (D, DFF)) for i in range(N_LAYERS)]),      # (N, D, DFF)
        b1=jnp.stack([dense(300 + i, (DFF,)) for i in range(N_LAYERS)]),        # (N, DFF)
        w2=jnp.stack([dense(400 + i, (DFF, D)) for i in range(N_LAYERS)]),      # (N, DFF, D)
        b2=jnp.stack([dense(500 + i, (D,)) for i in range(N_LAYERS)]),          # (N, D)
        ln_g=1.0 + jnp.stack([dense(600 + i, (D,), 0.1) for i in range(n_ln)]), # (3N+1, D)
        ln_b=jnp.stack([dense(700 + i, (D,), 0.1) for i in range(n_ln)]),       # (3N+1, D)
    )


def decoder_reference(x, memory, src_mask, tgt_mask, p):
    # Pure-JAX reference with PyTorch-module semantics (verification only).
    def ln(x, g, b):
        mean = x.mean(-1, keepdims=True)
        var = ((x - mean) ** 2).sum(-1, keepdims=True) / (x.shape[-1] - 1)
        return g * (x - mean) / (jnp.sqrt(var) + EPS) + b

    def mha(q, k, v, mask, wo, bo):
        sq, sk = q.shape[1], k.shape[1]
        qh = q.reshape(B, sq, H, DK).transpose(0, 2, 1, 3)
        kh = k.reshape(B, sk, H, DK).transpose(0, 2, 1, 3)
        vh = v.reshape(B, sk, H, DK).transpose(0, 2, 1, 3)
        sc = jnp.einsum("bhqd,bhkd->bhqk", qh, kh) / np.sqrt(DK)
        sc = jnp.where(mask[:, None, :, :] == 0, -1e9, sc)
        pa = jax.nn.softmax(sc, axis=-1)
        a = jnp.einsum("bhqk,bhkd->bhqd", pa, vh).transpose(0, 2, 1, 3).reshape(B, sq, D)
        return a @ wo + bo

    for i in range(N_LAYERS):
        l = 3 * i
        y = ln(x, p["ln_g"][l], p["ln_b"][l])
        qkv = y @ p["w_qkv"][i] + p["b_qkv"][i]
        x = x + mha(qkv[..., :D], qkv[..., D:2 * D], qkv[..., 2 * D:], tgt_mask,
                    p["w_o"][2 * i], p["b_o"][2 * i])
        y = ln(x, p["ln_g"][l + 1], p["ln_b"][l + 1])
        q = y @ p["w_q"][i] + p["b_q"][i]
        kv = memory @ p["w_kv"][i] + p["b_kv"][i]
        x = x + mha(q, kv[..., :D], kv[..., D:], src_mask,
                    p["w_o"][2 * i + 1], p["b_o"][2 * i + 1])
        y = ln(x, p["ln_g"][l + 2], p["ln_b"][l + 2])
        x = x + (jnp.maximum(y @ p["w1"][i] + p["b1"][i], 0.0)
                 @ p["w2"][i] + p["b2"][i])
    return ln(x, p["ln_g"][3 * N_LAYERS], p["ln_b"][3 * N_LAYERS])


if __name__ == "__main__":
    key = jax.random.PRNGKey(0)
    kx, km, kp = jax.random.split(key, 3)

    x = jax.random.normal(kx, (B, S, D), jnp.float32)
    memory = jax.random.normal(km, (B, SM, D), jnp.float32)

    # 1 = attend, 0 = masked.  tgt_mask: causal; src_mask: last 2 memory positions padded.
    causal = jnp.tril(jnp.ones((S, S), jnp.float32))
    tgt_mask = jnp.broadcast_to(causal, (B, S, S))
    src_mask = jnp.ones((B, S, SM), jnp.float32).at[:, :, -2:].set(0.0)

    params = init_params(kp)

    out = decoder_forward(x, memory, src_mask, tgt_mask, params)
    out = jax.block_until_ready(out)

    ref = decoder_reference(x, memory, src_mask, tgt_mask, params)
    np.testing.assert_allclose(np.asarray(out), np.asarray(ref), rtol=2e-4, atol=2e-4)

    print("KERNEL_OK")
</pallas_src>

<mosaic_0001>
module attributes {stable_mosaic.version = 11 : i64} {
  func.func @decoder_kernel(%arg0: memref<16x32xf32, #tpu.memory_space<vmem>>, %arg1: memref<16x32xf32, #tpu.memory_space<vmem>>, %arg2: memref<2x8x8xf32, #tpu.memory_space<vmem>>, %arg3: memref<2x8x8xf32, #tpu.memory_space<vmem>>, %arg4: memref<7x32xf32, #tpu.memory_space<vmem>>, %arg5: memref<7x32xf32, #tpu.memory_space<vmem>>, %arg6: memref<2x32x96xf32, #tpu.memory_space<vmem>>, %arg7: memref<2x96xf32, #tpu.memory_space<vmem>>, %arg8: memref<2x32x32xf32, #tpu.memory_space<vmem>>, %arg9: memref<2x32xf32, #tpu.memory_space<vmem>>, %arg10: memref<2x32x64xf32, #tpu.memory_space<vmem>>, %arg11: memref<2x64xf32, #tpu.memory_space<vmem>>, %arg12: memref<4x32x32xf32, #tpu.memory_space<vmem>>, %arg13: memref<4x32xf32, #tpu.memory_space<vmem>>, %arg14: memref<2x32x64xf32, #tpu.memory_space<vmem>>, %arg15: memref<2x64xf32, #tpu.memory_space<vmem>>, %arg16: memref<2x64x32xf32, #tpu.memory_space<vmem>>, %arg17: memref<2x32xf32, #tpu.memory_space<vmem>>, %arg18: memref<16x32xf32, #tpu.memory_space<vmem>>) attributes {dimension_semantics = [], scalar_prefetch = 0 : i64, scratch_operands = 0 : i64, tpu.core_type = #tpu.core_type<tc>} {
    %c0 = arith.constant 0 : index
    %c0_0 = arith.constant 0 : index
    %0 = vector.load %arg0[%c0, %c0_0] : memref<16x32xf32, #tpu.memory_space<vmem>>, vector<16x32xf32>
    %c0_1 = arith.constant 0 : index
    %c0_2 = arith.constant 0 : index
    %1 = vector.load %arg1[%c0_1, %c0_2] : memref<16x32xf32, #tpu.memory_space<vmem>>, vector<16x32xf32>
    %c0_3 = arith.constant 0 : index
    %c0_4 = arith.constant 0 : index
    %c0_5 = arith.constant 0 : index
    %2 = vector.load %arg2[%c0_3, %c0_4, %c0_5] : memref<2x8x8xf32, #tpu.memory_space<vmem>>, vector<2x8x8xf32>
    %cst = arith.constant 0.000000e+00 : f32
    %3 = vector.broadcast %cst : f32 to vector<2x8x8xf32>
    %4 = arith.cmpf oeq, %2, %3 : vector<2x8x8xf32>
    %cst_6 = arith.constant -1.000000e+09 : f32
    %cst_7 = arith.constant 0.000000e+00 : f32
    %5 = vector.broadcast %cst_6 : f32 to vector<2x8x8xf32>
    %6 = vector.broadcast %cst_7 : f32 to vector<2x8x8xf32>
    %7 = arith.select %4, %5, %6 : vector<2x8x8xi1>, vector<2x8x8xf32>
    %cst_8 = arith.constant -1.000000e+09 : f32
    %8 = vector.broadcast %cst_8 : f32 to vector<8x8xf32>
    %9 = vector.extract_strided_slice %7 {offsets = [0, 0, 0], sizes = [1, 8, 8], strides = [1, 1, 1]} : vector<2x8x8xf32> to vector<1x8x8xf32>
    %10 = vector.shape_cast %9 : vector<1x8x8xf32> to vector<8x8xf32>
    %11 = tpu.concatenate %10, %8 in 1 : vector<8x8xf32>, vector<8x8xf32> -> vector<8x16xf32>
    %12 = vector.extract_strided_slice %7 {offsets = [1, 0, 0], sizes = [1, 8, 8], strides = [1, 1, 1]} : vector<2x8x8xf32> to vector<1x8x8xf32>
    %13 = vector.shape_cast %12 : vector<1x8x8xf32> to vector<8x8xf32>
    %14 = tpu.concatenate %8, %13 in 1 : vector<8x8xf32>, vector<8x8xf32> -> vector<8x16xf32>
    %15 = tpu.concatenate %11, %14 in 0 : vector<8x16xf32>, vector<8x16xf32> -> vector<16x16xf32>
    %16 = tpu.concatenate %15, %15, %15, %15 in 0 : vector<16x16xf32>, vector<16x16xf32>, vector<16x16xf32>, vector<16x16xf32> -> vector<64x16xf32>
    %c0_9 = arith.constant 0 : index
    %c0_10 = arith.constant 0 : index
    %c0_11 = arith.constant 0 : index
    %17 = vector.load %arg3[%c0_9, %c0_10, %c0_11] : memref<2x8x8xf32, #tpu.memory_space<vmem>>, vector<2x8x8xf32>
    %cst_12 = arith.constant 0.000000e+00 : f32
    %18 = vector.broadcast %cst_12 : f32 to vector<2x8x8xf32>
    %19 = arith.cmpf oeq, %17, %18 : vector<2x8x8xf32>
    %cst_13 = arith.constant -1.000000e+09 : f32
    %cst_14 = arith.constant 0.000000e+00 : f32
    %20 = vector.broadcast %cst_13 : f32 to vector<2x8x8xf32>
    %21 = vector.broadcast %cst_14 : f32 to vector<2x8x8xf32>
    %22 = arith.select %19, %20, %21 : vector<2x8x8xi1>, vector<2x8x8xf32>
    %cst_15 = arith.constant -1.000000e+09 : f32
    %23 = vector.broadcast %cst_15 : f32 to vector<8x8xf32>
    %24 = vector.extract_strided_slice %22 {offsets = [0, 0, 0], sizes = [1, 8, 8], strides = [1, 1, 1]} : vector<2x8x8xf32> to vector<1x8x8xf32>
    %25 = vector.shape_cast %24 : vector<1x8x8xf32> to vector<8x8xf32>
    %26 = tpu.concatenate %25, %23 in 1 : vector<8x8xf32>, vector<8x8xf32> -> vector<8x16xf32>
    %27 = vector.extract_strided_slice %22 {offsets = [1, 0, 0], sizes = [1, 8, 8], strides = [1, 1, 1]} : vector<2x8x8xf32> to vector<1x8x8xf32>
    %28 = vector.shape_cast %27 : vector<1x8x8xf32> to vector<8x8xf32>
    %29 = tpu.concatenate %23, %28 in 1 : vector<8x8xf32>, vector<8x8xf32> -> vector<8x16xf32>
    %30 = tpu.concatenate %26, %29 in 0 : vector<8x16xf32>, vector<8x16xf32> -> vector<16x16xf32>
    %31 = tpu.concatenate %30, %30, %30, %30 in 0 : vector<16x16xf32>, vector<16x16xf32>, vector<16x16xf32>, vector<16x16xf32> -> vector<64x16xf32>
    %c0_16 = arith.constant 0 : index
    %c0_17 = arith.constant 0 : index
    %32 = vector.load %arg4[%c0_16, %c0_17] : memref<7x32xf32, #tpu.memory_space<vmem>>, vector<1x32xf32>
    %c0_18 = arith.constant 0 : index
    %c0_19 = arith.constant 0 : index
    %33 = vector.load %arg5[%c0_18, %c0_19] : memref<7x32xf32, #tpu.memory_space<vmem>>, vector<1x32xf32>
    %cst_20 = arith.constant dense<0.000000e+00> : vector<16xf32>
    %34 = vector.multi_reduction <add>, %0, %cst_20 [1] : vector<16x32xf32> to vector<16xf32>
    %35 = vector.shape_cast %34 : vector<16xf32> to vector<16x1xf32>
    %cst_21 = arith.constant 3.200000e+01 : f32
    %36 = vector.broadcast %cst_21 : f32 to vector<16x1xf32>
    %37 = arith.divf %35, %36 : vector<16x1xf32>
    %38 = vector.broadcast %37 : vector<16x1xf32> to vector<16x32xf32>
    %39 = arith.subf %0, %38 : vector<16x32xf32>
    %40 = arith.mulf %39, %39 : vector<16x32xf32>
    %cst_22 = arith.constant dense<0.000000e+00> : vector<16xf32>
    %41 = vector.multi_reduction <add>, %40, %cst_22 [1] : vector<16x32xf32> to vector<16xf32>
    %42 = vector.shape_cast %41 : vector<16xf32> to vector<16x1xf32>
    %cst_23 = arith.constant 3.100000e+01 : f32
    %43 = vector.broadcast %cst_23 : f32 to vector<16x1xf32>
    %44 = arith.divf %42, %43 : vector<16x1xf32>
    %45 = vector.broadcast %37 : vector<16x1xf32> to vector<16x32xf32>
    %46 = arith.subf %0, %45 : vector<16x32xf32>
    %47 = vector.broadcast %32 : vector<1x32xf32> to vector<16x32xf32>
    %48 = arith.mulf %47, %46 : vector<16x32xf32>
    %49 = math.sqrt %44 : vector<16x1xf32>
    %cst_24 = arith.constant 9.99999997E-7 : f32
    %50 = vector.broadcast %cst_24 : f32 to vector<16x1xf32>
    %51 = arith.addf %49, %50 : vector<16x1xf32>
    %52 = vector.broadcast %51 : vector<16x1xf32> to vector<16x32xf32>
    %53 = arith.divf %48, %52 : vector<16x32xf32>
    %54 = vector.broadcast %33 : vector<1x32xf32> to vector<16x32xf32>
    %55 = arith.addf %53, %54 : vector<16x32xf32>
    %c0_25 = arith.constant 0 : index
    %c0_26 = arith.constant 0 : index
    %c0_27 = arith.constant 0 : index
    %56 = vector.load %arg6[%c0_25, %c0_26, %c0_27] : memref<2x32x96xf32, #tpu.memory_space<vmem>>, vector<1x32x96xf32>
    %57 = vector.shape_cast %56 : vector<1x32x96xf32> to vector<32x96xf32>
    %cst_28 = arith.constant dense<0.000000e+00> : vector<16x96xf32>
    %58 = tpu.matmul %55, %57, %cst_28 {dimension_numbers = #tpu.dot_dimension_numbers<[1], [0], [0], [1], [0, 0, 1, 1], [], []>} : vector<16x32xf32>, vector<32x96xf32>, vector<16x96xf32> -> vector<16x96xf32>
    %c0_29 = arith.constant 0 : index
    %c0_30 = arith.constant 0 : index
    %59 = vector.load %arg7[%c0_29, %c0_30] : memref<2x96xf32, #tpu.memory_space<vmem>>, vector<1x96xf32>
    %60 = vector.broadcast %59 : vector<1x96xf32> to vector<16x96xf32>
    %61 = arith.addf %58, %60 : vector<16x96xf32>
    %62 = vector.extract_strided_slice %61 {offsets = [0, 0], sizes = [16, 32], strides = [1, 1]} : vector<16x96xf32> to vector<16x32xf32>
    %cst_31 = arith.constant 0.353553385 : f32
    %63 = vector.broadcast %cst_31 : f32 to vector<16x32xf32>
    %64 = arith.mulf %62, %63 : vector<16x32xf32>
    %65 = vector.extract_strided_slice %61 {offsets = [0, 32], sizes = [16, 32], strides = [1, 1]} : vector<16x96xf32> to vector<16x32xf32>
    %66 = vector.extract_strided_slice %61 {offsets = [0, 64], sizes = [16, 32], strides = [1, 1]} : vector<16x96xf32> to vector<16x32xf32>
    %c0_32 = arith.constant 0 : index
    %c0_33 = arith.constant 0 : index
    %c0_34 = arith.constant 0 : index
    %67 = vector.load %arg12[%c0_32, %c0_33, %c0_34] : memref<4x32x32xf32, #tpu.memory_space<vmem>>, vector<1x32x32xf32>
    %68 = vector.shape_cast %67 : vector<1x32x32xf32> to vector<32x32xf32>
    %c0_35 = arith.constant 0 : index
    %c0_36 = arith.constant 0 : index
    %69 = vector.load %arg13[%c0_35, %c0_36] : memref<4x32xf32, #tpu.memory_space<vmem>>, vector<1x32xf32>
    %70 = tpu.transpose %65, [1, 0] : vector<16x32xf32> -> vector<32x16xf32>
    %71 = vector.extract_strided_slice %64 {offsets = [0, 0], sizes = [16, 8], strides = [1, 1]} : vector<16x32xf32> to vector<16x8xf32>
    %72 = vector.extract_strided_slice %70 {offsets = [0, 0], sizes = [8, 16], strides = [1, 1]} : vector<32x16xf32> to vector<8x16xf32>
    %cst_37 = arith.constant dense<0.000000e+00> : vector<16x16xf32>
    %73 = tpu.matmul %71, %72, %cst_37 {dimension_numbers = #tpu.dot_dimension_numbers<[1], [0], [0], [1], [0, 0, 1, 1], [], []>} : vector<16x8xf32>, vector<8x16xf32>, vector<16x16xf32> -> vector<16x16xf32>
    %74 = vector.extract_strided_slice %64 {offsets = [0, 8], sizes = [16, 8], strides = [1, 1]} : vector<16x32xf32> to vector<16x8xf32>
    %75 = vector.extract_strided_slice %70 {offsets = [8, 0], sizes = [8, 16], strides = [1, 1]} : vector<32x16xf32> to vector<8x16xf32>
    %cst_38 = arith.constant dense<0.000000e+00> : vector<16x16xf32>
    %76 = tpu.matmul %74, %75, %cst_38 {dimension_numbers = #tpu.dot_dimension_numbers<[1], [0], [0], [1], [0, 0, 1, 1], [], []>} : vector<16x8xf32>, vector<8x16xf32>, vector<16x16xf32> -> vector<16x16xf32>
    %77 = vector.extract_strided_slice %64 {offsets = [0, 16], sizes = [16, 8], strides = [1, 1]} : vector<16x32xf32> to vector<16x8xf32>
    %78 = vector.extract_strided_slice %70 {offsets = [16, 0], sizes = [8, 16], strides = [1, 1]} : vector<32x16xf32> to vector<8x16xf32>
    %cst_39 = arith.constant dense<0.000000e+00> : vector<16x16xf32>
    %79 = tpu.matmul %77, %78, %cst_39 {dimension_numbers = #tpu.dot_dimension_numbers<[1], [0], [0], [1], [0, 0, 1, 1], [], []>} : vector<16x8xf32>, vector<8x16xf32>, vector<16x16xf32> -> vector<16x16xf32>
    %80 = vector.extract_strided_slice %64 {offsets = [0, 24], sizes = [16, 8], strides = [1, 1]} : vector<16x32xf32> to vector<16x8xf32>
    %81 = vector.extract_strided_slice %70 {offsets = [24, 0], sizes = [8, 16], strides = [1, 1]} : vector<32x16xf32> to vector<8x16xf32>
    %cst_40 = arith.constant dense<0.000000e+00> : vector<16x16xf32>
    %82 = tpu.matmul %80, %81, %cst_40 {dimension_numbers = #tpu.dot_dimension_numbers<[1], [0], [0], [1], [0, 0, 1, 1], [], []>} : vector<16x8xf32>, vector<8x16xf32>, vector<16x16xf32> -> vector<16x16xf32>
    %83 = tpu.concatenate %73, %76, %79, %82 in 0 : vector<16x16xf32>, vector<16x16xf32>, vector<16x16xf32>, vector<16x16xf32> -> vector<64x16xf32>
    %84 = arith.addf %83, %16 : vector<64x16xf32>
    %cst_41 = arith.constant dense<0xFF800000> : vector<64xf32>
    %85 = vector.multi_reduction <maximumf>, %84, %cst_41 [1] : vector<64x16xf32> to vector<64xf32>
    %86 = vector.shape_cast %85 : vector<64xf32> to vector<64x1xf32>
    %87 = vector.broadcast %86 : vector<64x1xf32> to vector<64x16xf32>
    %88 = arith.subf %84, %87 : vector<64x16xf32>
    %89 = math.exp %88 : vector<64x16xf32>
    %cst_42 = arith.constant dense<0.000000e+00> : vector<64xf32>
    %90 = vector.multi_reduction <add>, %89, %cst_42 [1] : vector<64x16xf32> to vector<64xf32>
    %91 = vector.shape_cast %90 : vector<64xf32> to vector<64x1xf32>
    %92 = vector.broadcast %91 : vector<64x1xf32> to vector<64x16xf32>
    %93 = arith.divf %89, %92 : vector<64x16xf32>
    %94 = vector.extract_strided_slice %93 {offsets = [0, 0], sizes = [16, 16], strides = [1, 1]} : vector<64x16xf32> to vector<16x16xf32>
    %95 = vector.extract_strided_slice %66 {offsets = [0, 0], sizes = [16, 8], strides = [1, 1]} : vector<16x32xf32> to vector<16x8xf32>
    %cst_43 = arith.constant dense<0.000000e+00> : vector<16x8xf32>
    %96 = tpu.matmul %94, %95, %cst_43 {dimension_numbers = #tpu.dot_dimension_numbers<[1], [0], [0], [1], [0, 0, 1, 1], [], []>} : vector<16x16xf32>, vector<16x8xf32>, vector<16x8xf32> -> vector<16x8xf32>
    %97 = vector.extract_strided_slice %93 {offsets = [16, 0], sizes = [16, 16], strides = [1, 1]} : vector<64x16xf32> to vector<16x16xf32>
    %98 = vector.extract_strided_slice %66 {offsets = [0, 8], sizes = [16, 8], strides = [1, 1]} : vector<16x32xf32> to vector<16x8xf32>
    %cst_44 = arith.constant dense<0.000000e+00> : vector<16x8xf32>
    %99 = tpu.matmul %97, %98, %cst_44 {dimension_numbers = #tpu.dot_dimension_numbers<[1], [0], [0], [1], [0, 0, 1, 1], [], []>} : vector<16x16xf32>, vector<16x8xf32>, vector<16x8xf32> -> vector<16x8xf32>
    %100 = vector.extract_strided_slice %93 {offsets = [32, 0], sizes = [16, 16], strides = [1, 1]} : vector<64x16xf32> to vector<16x16xf32>
    %101 = vector.extract_strided_slice %66 {offsets = [0, 16], sizes = [16, 8], strides = [1, 1]} : vector<16x32xf32> to vector<16x8xf32>
    %cst_45 = arith.constant dense<0.000000e+00> : vector<16x8xf32>
    %102 = tpu.matmul %100, %101, %cst_45 {dimension_numbers = #tpu.dot_dimension_numbers<[1], [0], [0], [1], [0, 0, 1, 1], [], []>} : vector<16x16xf32>, vector<16x8xf32>, vector<16x8xf32> -> vector<16x8xf32>
    %103 = vector.extract_strided_slice %93 {offsets = [48, 0], sizes = [16, 16], strides = [1, 1]} : vector<64x16xf32> to vector<16x16xf32>
    %104 = vector.extract_strided_slice %66 {offsets = [0, 24], sizes = [16, 8], strides = [1, 1]} : vector<16x32xf32> to vector<16x8xf32>
    %cst_46 = arith.constant dense<0.000000e+00> : vector<16x8xf32>
    %105 = tpu.matmul %103, %104, %cst_46 {dimension_numbers = #tpu.dot_dimension_numbers<[1], [0], [0], [1], [0, 0, 1, 1], [], []>} : vector<16x16xf32>, vector<16x8xf32>, vector<16x8xf32> -> vector<16x8xf32>
    %106 = tpu.concatenate %96, %99, %102, %105 in 1 : vector<16x8xf32>, vector<16x8xf32>, vector<16x8xf32>, vector<16x8xf32> -> vector<16x32xf32>
    %cst_47 = arith.constant dense<0.000000e+00> : vector<16x32xf32>
    %107 = tpu.matmul %106, %68, %cst_47 {dimension_numbers = #tpu.dot_dimension_numbers<[1], [0], [0], [1], [0, 0, 1, 1], [], []>} : vector<16x32xf32>, vector<32x32xf32>, vector<16x32xf32> -> vector<16x32xf32>
    %108 = vector.broadcast %69 : vector<1x32xf32> to vector<16x32xf32>
    %109 = arith.addf %107, %108 : vector<16x32xf32>
    %110 = arith.addf %0, %109 : vector<16x32xf32>
    %c1 = arith.constant 1 : index
    %c0_48 = arith.constant 0 : index
    %111 = vector.load %arg4[%c1, %c0_48] : memref<7x32xf32, #tpu.memory_space<vmem>>, vector<1x32xf32>
    %c1_49 = arith.constant 1 : index
    %c0_50 = arith.constant 0 : index
    %112 = vector.load %arg5[%c1_49, %c0_50] : memref<7x32xf32, #tpu.memory_space<vmem>>, vector<1x32xf32>
    %cst_51 = arith.constant dense<0.000000e+00> : vector<16xf32>
    %113 = vector.multi_reduction <add>, %110, %cst_51 [1] : vector<16x32xf32> to vector<16xf32>
    %114 = vector.shape_cast %113 : vector<16xf32> to vector<16x1xf32>
    %cst_52 = arith.constant 3.200000e+01 : f32
    %115 = vector.broadcast %cst_52 : f32 to vector<16x1xf32>
    %116 = arith.divf %114, %115 : vector<16x1xf32>
    %117 = vector.broadcast %116 : vector<16x1xf32> to vector<16x32xf32>
    %118 = arith.subf %110, %117 : vector<16x32xf32>
    %119 = arith.mulf %118, %118 : vector<16x32xf32>
    %cst_53 = arith.constant dense<0.000000e+00> : vector<16xf32>
    %120 = vector.multi_reduction <add>, %119, %cst_53 [1] : vector<16x32xf32> to vector<16xf32>
    %121 = vector.shape_cast %120 : vector<16xf32> to vector<16x1xf32>
    %cst_54 = arith.constant 3.100000e+01 : f32
    %122 = vector.broadcast %cst_54 : f32 to vector<16x1xf32>
    %123 = arith.divf %121, %122 : vector<16x1xf32>
    %124 = vector.broadcast %116 : vector<16x1xf32> to vector<16x32xf32>
    %125 = arith.subf %110, %124 : vector<16x32xf32>
    %126 = vector.broadcast %111 : vector<1x32xf32> to vector<16x32xf32>
    %127 = arith.mulf %126, %125 : vector<16x32xf32>
    %128 = math.sqrt %123 : vector<16x1xf32>
    %cst_55 = arith.constant 9.99999997E-7 : f32
    %129 = vector.broadcast %cst_55 : f32 to vector<16x1xf32>
    %130 = arith.addf %128, %129 : vector<16x1xf32>
    %131 = vector.broadcast %130 : vector<16x1xf32> to vector<16x32xf32>
    %132 = arith.divf %127, %131 : vector<16x32xf32>
    %133 = vector.broadcast %112 : vector<1x32xf32> to vector<16x32xf32>
    %134 = arith.addf %132, %133 : vector<16x32xf32>
    %c0_56 = arith.constant 0 : index
    %c0_57 = arith.constant 0 : index
    %c0_58 = arith.constant 0 : index
    %135 = vector.load %arg8[%c0_56, %c0_57, %c0_58] : memref<2x32x32xf32, #tpu.memory_space<vmem>>, vector<1x32x32xf32>
    %136 = vector.shape_cast %135 : vector<1x32x32xf32> to vector<32x32xf32>
    %cst_59 = arith.constant dense<0.000000e+00> : vector<16x32xf32>
    %137 = tpu.matmul %134, %136, %cst_59 {dimension_numbers = #tpu.dot_dimension_numbers<[1], [0], [0], [1], [0, 0, 1, 1], [], []>} : vector<16x32xf32>, vector<32x32xf32>, vector<16x32xf32> -> vector<16x32xf32>
    %c0_60 = arith.constant 0 : index
    %c0_61 = arith.constant 0 : index
    %138 = vector.load %arg9[%c0_60, %c0_61] : memref<2x32xf32, #tpu.memory_space<vmem>>, vector<1x32xf32>
    %139 = vector.broadcast %138 : vector<1x32xf32> to vector<16x32xf32>
    %140 = arith.addf %137, %139 : vector<16x32xf32>
    %cst_62 = arith.constant 0.353553385 : f32
    %141 = vector.broadcast %cst_62 : f32 to vector<16x32xf32>
    %142 = arith.mulf %140, %141 : vector<16x32xf32>
    %c0_63 = arith.constant 0 : index
    %c0_64 = arith.constant 0 : index
    %c0_65 = arith.constant 0 : index
    %143 = vector.load %arg10[%c0_63, %c0_64, %c0_65] : memref<2x32x64xf32, #tpu.memory_space<vmem>>, vector<1x32x64xf32>
    %144 = vector.shape_cast %143 : vector<1x32x64xf32> to vector<32x64xf32>
    %cst_66 = arith.constant dense<0.000000e+00> : vector<16x64xf32>
    %145 = tpu.matmul %1, %144, %cst_66 {dimension_numbers = #tpu.dot_dimension_numbers<[1], [0], [0], [1], [0, 0, 1, 1], [], []>} : vector<16x32xf32>, vector<32x64xf32>, vector<16x64xf32> -> vector<16x64xf32>
    %c0_67 = arith.constant 0 : index
    %c0_68 = arith.constant 0 : index
    %146 = vector.load %arg11[%c0_67, %c0_68] : memref<2x64xf32, #tpu.memory_space<vmem>>, vector<1x64xf32>
    %147 = vector.broadcast %146 : vector<1x64xf32> to vector<16x64xf32>
    %148 = arith.addf %145, %147 : vector<16x64xf32>
    %149 = vector.extract_strided_slice %148 {offsets = [0, 0], sizes = [16, 32], strides = [1, 1]} : vector<16x64xf32> to vector<16x32xf32>
    %150 = vector.extract_strided_slice %148 {offsets = [0, 32], sizes = [16, 32], strides = [1, 1]} : vector<16x64xf32> to vector<16x32xf32>
    %c1_69 = arith.constant 1 : index
    %c0_70 = arith.constant 0 : index
    %c0_71 = arith.constant 0 : index
    %151 = vector.load %arg12[%c1_69, %c0_70, %c0_71] : memref<4x32x32xf32, #tpu.memory_space<vmem>>, vector<1x32x32xf32>
    %152 = vector.shape_cast %151 : vector<1x32x32xf32> to vector<32x32xf32>
    %c1_72 = arith.constant 1 : index
    %c0_73 = arith.constant 0 : index
    %153 = vector.load %arg13[%c1_72, %c0_73] : memref<4x32xf32, #tpu.memory_space<vmem>>, vector<1x32xf32>
    %154 = tpu.transpose %149, [1, 0] : vector<16x32xf32> -> vector<32x16xf32>
    %155 = vector.extract_strided_slice %142 {offsets = [0, 0], sizes = [16, 8], strides = [1, 1]} : vector<16x32xf32> to vector<16x8xf32>
    %156 = vector.extract_strided_slice %154 {offsets = [0, 0], sizes = [8, 16], strides = [1, 1]} : vector<32x16xf32> to vector<8x16xf32>
    %cst_74 = arith.constant dense<0.000000e+00> : vector<16x16xf32>
    %157 = tpu.matmul %155, %156, %cst_74 {dimension_numbers = #tpu.dot_dimension_numbers<[1], [0], [0], [1], [0, 0, 1, 1], [], []>} : vector<16x8xf32>, vector<8x16xf32>, vector<16x16xf32> -> vector<16x16xf32>
    %158 = vector.extract_strided_slice %142 {offsets = [0, 8], sizes = [16, 8], strides = [1, 1]} : vector<16x32xf32> to vector<16x8xf32>
    %159 = vector.extract_strided_slice %154 {offsets = [8, 0], sizes = [8, 16], strides = [1, 1]} : vector<32x16xf32> to vector<8x16xf32>
    %cst_75 = arith.constant dense<0.000000e+00> : vector<16x16xf32>
    %160 = tpu.matmul %158, %159, %cst_75 {dimension_numbers = #tpu.dot_dimension_numbers<[1], [0], [0], [1], [0, 0, 1, 1], [], []>} : vector<16x8xf32>, vector<8x16xf32>, vector<16x16xf32> -> vector<16x16xf32>
    %161 = vector.extract_strided_slice %142 {offsets = [0, 16], sizes = [16, 8], strides = [1, 1]} : vector<16x32xf32> to vector<16x8xf32>
    %162 = vector.extract_strided_slice %154 {offsets = [16, 0], sizes = [8, 16], strides = [1, 1]} : vector<32x16xf32> to vector<8x16xf32>
    %cst_76 = arith.constant dense<0.000000e+00> : vector<16x16xf32>
    %163 = tpu.matmul %161, %162, %cst_76 {dimension_numbers = #tpu.dot_dimension_numbers<[1], [0], [0], [1], [0, 0, 1, 1], [], []>} : vector<16x8xf32>, vector<8x16xf32>, vector<16x16xf32> -> vector<16x16xf32>
    %164 = vector.extract_strided_slice %142 {offsets = [0, 24], sizes = [16, 8], strides = [1, 1]} : vector<16x32xf32> to vector<16x8xf32>
    %165 = vector.extract_strided_slice %154 {offsets = [24, 0], sizes = [8, 16], strides = [1, 1]} : vector<32x16xf32> to vector<8x16xf32>
    %cst_77 = arith.constant dense<0.000000e+00> : vector<16x16xf32>
    %166 = tpu.matmul %164, %165, %cst_77 {dimension_numbers = #tpu.dot_dimension_numbers<[1], [0], [0], [1], [0, 0, 1, 1], [], []>} : vector<16x8xf32>, vector<8x16xf32>, vector<16x16xf32> -> vector<16x16xf32>
    %167 = tpu.concatenate %157, %160, %163, %166 in 0 : vector<16x16xf32>, vector<16x16xf32>, vector<16x16xf32>, vector<16x16xf32> -> vector<64x16xf32>
    %168 = arith.addf %167, %31 : vector<64x16xf32>
    %cst_78 = arith.constant dense<0xFF800000> : vector<64xf32>
    %169 = vector.multi_reduction <maximumf>, %168, %cst_78 [1] : vector<64x16xf32> to vector<64xf32>
    %170 = vector.shape_cast %169 : vector<64xf32> to vector<64x1xf32>
    %171 = vector.broadcast %170 : vector<64x1xf32> to vector<64x16xf32>
    %172 = arith.subf %168, %171 : vector<64x16xf32>
    %173 = math.exp %172 : vector<64x16xf32>
    %cst_79 = arith.constant dense<0.000000e+00> : vector<64xf32>
    %174 = vector.multi_reduction <add>, %173, %cst_79 [1] : vector<64x16xf32> to vector<64xf32>
    %175 = vector.shape_cast %174 : vector<64xf32> to vector<64x1xf32>
    %176 = vector.broadcast %175 : vector<64x1xf32> to vector<64x16xf32>
    %177 = arith.divf %173, %176 : vector<64x16xf32>
    %178 = vector.extract_strided_slice %177 {offsets = [0, 0], sizes = [16, 16], strides = [1, 1]} : vector<64x16xf32> to vector<16x16xf32>
    %179 = vector.extract_strided_slice %150 {offsets = [0, 0], sizes = [16, 8], strides = [1, 1]} : vector<16x32xf32> to vector<16x8xf32>
    %cst_80 = arith.constant dense<0.000000e+00> : vector<16x8xf32>
    %180 = tpu.matmul %178, %179, %cst_80 {dimension_numbers = #tpu.dot_dimension_numbers<[1], [0], [0], [1], [0, 0, 1, 1], [], []>} : vector<16x16xf32>, vector<16x8xf32>, vector<16x8xf32> -> vector<16x8xf32>
    %181 = vector.extract_strided_slice %177 {offsets = [16, 0], sizes = [16, 16], strides = [1, 1]} : vector<64x16xf32> to vector<16x16xf32>
    %182 = vector.extract_strided_slice %150 {offsets = [0, 8], sizes = [16, 8], strides = [1, 1]} : vector<16x32xf32> to vector<16x8xf32>
    %cst_81 = arith.constant dense<0.000000e+00> : vector<16x8xf32>
    %183 = tpu.matmul %181, %182, %cst_81 {dimension_numbers = #tpu.dot_dimension_numbers<[1], [0], [0], [1], [0, 0, 1, 1], [], []>} : vector<16x16xf32>, vector<16x8xf32>, vector<16x8xf32> -> vector<16x8xf32>
    %184 = vector.extract_strided_slice %177 {offsets = [32, 0], sizes = [16, 16], strides = [1, 1]} : vector<64x16xf32> to vector<16x16xf32>
    %185 = vector.extract_strided_slice %150 {offsets = [0, 16], sizes = [16, 8], strides = [1, 1]} : vector<16x32xf32> to vector<16x8xf32>
    %cst_82 = arith.constant dense<0.000000e+00> : vector<16x8xf32>
    %186 = tpu.matmul %184, %185, %cst_82 {dimension_numbers = #tpu.dot_dimension_numbers<[1], [0], [0], [1], [0, 0, 1, 1], [], []>} : vector<16x16xf32>, vector<16x8xf32>, vector<16x8xf32> -> vector<16x8xf32>
    %187 = vector.extract_strided_slice %177 {offsets = [48, 0], sizes = [16, 16], strides = [1, 1]} : vector<64x16xf32> to vector<16x16xf32>
    %188 = vector.extract_strided_slice %150 {offsets = [0, 24], sizes = [16, 8], strides = [1, 1]} : vector<16x32xf32> to vector<16x8xf32>
    %cst_83 = arith.constant dense<0.000000e+00> : vector<16x8xf32>
    %189 = tpu.matmul %187, %188, %cst_83 {dimension_numbers = #tpu.dot_dimension_numbers<[1], [0], [0], [1], [0, 0, 1, 1], [], []>} : vector<16x16xf32>, vector<16x8xf32>, vector<16x8xf32> -> vector<16x8xf32>
    %190 = tpu.concatenate %180, %183, %186, %189 in 1 : vector<16x8xf32>, vector<16x8xf32>, vector<16x8xf32>, vector<16x8xf32> -> vector<16x32xf32>
    %cst_84 = arith.constant dense<0.000000e+00> : vector<16x32xf32>
    %191 = tpu.matmul %190, %152, %cst_84 {dimension_numbers = #tpu.dot_dimension_numbers<[1], [0], [0], [1], [0, 0, 1, 1], [], []>} : vector<16x32xf32>, vector<32x32xf32>, vector<16x32xf32> -> vector<16x32xf32>
    %192 = vector.broadcast %153 : vector<1x32xf32> to vector<16x32xf32>
    %193 = arith.addf %191, %192 : vector<16x32xf32>
    %194 = arith.addf %110, %193 : vector<16x32xf32>
    %c2 = arith.constant 2 : index
    %c0_85 = arith.constant 0 : index
    %195 = vector.load %arg4[%c2, %c0_85] : memref<7x32xf32, #tpu.memory_space<vmem>>, vector<1x32xf32>
    %c2_86 = arith.constant 2 : index
    %c0_87 = arith.constant 0 : index
    %196 = vector.load %arg5[%c2_86, %c0_87] : memref<7x32xf32, #tpu.memory_space<vmem>>, vector<1x32xf32>
    %cst_88 = arith.constant dense<0.000000e+00> : vector<16xf32>
    %197 = vector.multi_reduction <add>, %194, %cst_88 [1] : vector<16x32xf32> to vector<16xf32>
    %198 = vector.shape_cast %197 : vector<16xf32> to vector<16x1xf32>
    %cst_89 = arith.constant 3.200000e+01 : f32
    %199 = vector.broadcast %cst_89 : f32 to vector<16x1xf32>
    %200 = arith.divf %198, %199 : vector<16x1xf32>
    %201 = vector.broadcast %200 : vector<16x1xf32> to vector<16x32xf32>
    %202 = arith.subf %194, %201 : vector<16x32xf32>
    %203 = arith.mulf %202, %202 : vector<16x32xf32>
    %cst_90 = arith.constant dense<0.000000e+00> : vector<16xf32>
    %204 = vector.multi_reduction <add>, %203, %cst_90 [1] : vector<16x32xf32> to vector<16xf32>
    %205 = vector.shape_cast %204 : vector<16xf32> to vector<16x1xf32>
    %cst_91 = arith.constant 3.100000e+01 : f32
    %206 = vector.broadcast %cst_91 : f32 to vector<16x1xf32>
    %207 = arith.divf %205, %206 : vector<16x1xf32>
    %208 = vector.broadcast %200 : vector<16x1xf32> to vector<16x32xf32>
    %209 = arith.subf %194, %208 : vector<16x32xf32>
    %210 = vector.broadcast %195 : vector<1x32xf32> to vector<16x32xf32>
    %211 = arith.mulf %210, %209 : vector<16x32xf32>
    %212 = math.sqrt %207 : vector<16x1xf32>
    %cst_92 = arith.constant 9.99999997E-7 : f32
    %213 = vector.broadcast %cst_92 : f32 to vector<16x1xf32>
    %214 = arith.addf %212, %213 : vector<16x1xf32>
    %215 = vector.broadcast %214 : vector<16x1xf32> to vector<16x32xf32>
    %216 = arith.divf %211, %215 : vector<16x32xf32>
    %217 = vector.broadcast %196 : vector<1x32xf32> to vector<16x32xf32>
    %218 = arith.addf %216, %217 : vector<16x32xf32>
    %c0_93 = arith.constant 0 : index
    %c0_94 = arith.constant 0 : index
    %c0_95 = arith.constant 0 : index
    %219 = vector.load %arg14[%c0_93, %c0_94, %c0_95] : memref<2x32x64xf32, #tpu.memory_space<vmem>>, vector<1x32x64xf32>
    %220 = vector.shape_cast %219 : vector<1x32x64xf32> to vector<32x64xf32>
    %cst_96 = arith.constant dense<0.000000e+00> : vector<16x64xf32>
    %221 = tpu.matmul %218, %220, %cst_96 {dimension_numbers = #tpu.dot_dimension_numbers<[1], [0], [0], [1], [0, 0, 1, 1], [], []>} : vector<16x32xf32>, vector<32x64xf32>, vector<16x64xf32> -> vector<16x64xf32>
    %c0_97 = arith.constant 0 : index
    %c0_98 = arith.constant 0 : index
    %222 = vector.load %arg15[%c0_97, %c0_98] : memref<2x64xf32, #tpu.memory_space<vmem>>, vector<1x64xf32>
    %223 = vector.broadcast %222 : vector<1x64xf32> to vector<16x64xf32>
    %224 = arith.addf %221, %223 : vector<16x64xf32>
    %cst_99 = arith.constant 0.000000e+00 : f32
    %225 = vector.broadcast %cst_99 : f32 to vector<16x64xf32>
    %226 = arith.maximumf %224, %225 : vector<16x64xf32>
    %c0_100 = arith.constant 0 : index
    %c0_101 = arith.constant 0 : index
    %c0_102 = arith.constant 0 : index
    %227 = vector.load %arg16[%c0_100, %c0_101, %c0_102] : memref<2x64x32xf32, #tpu.memory_space<vmem>>, vector<1x64x32xf32>
    %228 = vector.shape_cast %227 : vector<1x64x32xf32> to vector<64x32xf32>
    %cst_103 = arith.constant dense<0.000000e+00> : vector<16x32xf32>
    %229 = tpu.matmul %226, %228, %cst_103 {dimension_numbers = #tpu.dot_dimension_numbers<[1], [0], [0], [1], [0, 0, 1, 1], [], []>} : vector<16x64xf32>, vector<64x32xf32>, vector<16x32xf32> -> vector<16x32xf32>
    %230 = arith.addf %194, %229 : vector<16x32xf32>
    %c0_104 = arith.constant 0 : index
    %c0_105 = arith.constant 0 : index
    %231 = vector.load %arg17[%c0_104, %c0_105] : memref<2x32xf32, #tpu.memory_space<vmem>>, vector<1x32xf32>
    %232 = vector.broadcast %231 : vector<1x32xf32> to vector<16x32xf32>
    %233 = arith.addf %230, %232 : vector<16x32xf32>
    %c3 = arith.constant 3 : index
    %c0_106 = arith.constant 0 : index
    %234 = vector.load %arg4[%c3, %c0_106] : memref<7x32xf32, #tpu.memory_space<vmem>>, vector<1x32xf32>
    %c3_107 = arith.constant 3 : index
    %c0_108 = arith.constant 0 : index
    %235 = vector.load %arg5[%c3_107, %c0_108] : memref<7x32xf32, #tpu.memory_space<vmem>>, vector<1x32xf32>
    %cst_109 = arith.constant dense<0.000000e+00> : vector<16xf32>
    %236 = vector.multi_reduction <add>, %233, %cst_109 [1] : vector<16x32xf32> to vector<16xf32>
    %237 = vector.shape_cast %236 : vector<16xf32> to vector<16x1xf32>
    %cst_110 = arith.constant 3.200000e+01 : f32
    %238 = vector.broadcast %cst_110 : f32 to vector<16x1xf32>
    %239 = arith.divf %237, %238 : vector<16x1xf32>
    %240 = vector.broadcast %239 : vector<16x1xf32> to vector<16x32xf32>
    %241 = arith.subf %233, %240 : vector<16x32xf32>
    %242 = arith.mulf %241, %241 : vector<16x32xf32>
    %cst_111 = arith.constant dense<0.000000e+00> : vector<16xf32>
    %243 = vector.multi_reduction <add>, %242, %cst_111 [1] : vector<16x32xf32> to vector<16xf32>
    %244 = vector.shape_cast %243 : vector<16xf32> to vector<16x1xf32>
    %cst_112 = arith.constant 3.100000e+01 : f32
    %245 = vector.broadcast %cst_112 : f32 to vector<16x1xf32>
    %246 = arith.divf %244, %245 : vector<16x1xf32>
    %247 = vector.broadcast %239 : vector<16x1xf32> to vector<16x32xf32>
    %248 = arith.subf %233, %247 : vector<16x32xf32>
    %249 = vector.broadcast %234 : vector<1x32xf32> to vector<16x32xf32>
    %250 = arith.mulf %249, %248 : vector<16x32xf32>
    %251 = math.sqrt %246 : vector<16x1xf32>
    %cst_113 = arith.constant 9.99999997E-7 : f32
    %252 = vector.broadcast %cst_113 : f32 to vector<16x1xf32>
    %253 = arith.addf %251, %252 : vector<16x1xf32>
    %254 = vector.broadcast %253 : vector<16x1xf32> to vector<16x32xf32>
    %255 = arith.divf %250, %254 : vector<16x32xf32>
    %256 = vector.broadcast %235 : vector<1x32xf32> to vector<16x32xf32>
    %257 = arith.addf %255, %256 : vector<16x32xf32>
    %c1_114 = arith.constant 1 : index
    %c0_115 = arith.constant 0 : index
    %c0_116 = arith.constant 0 : index
    %258 = vector.load %arg6[%c1_114, %c0_115, %c0_116] : memref<2x32x96xf32, #tpu.memory_space<vmem>>, vector<1x32x96xf32>
    %259 = vector.shape_cast %258 : vector<1x32x96xf32> to vector<32x96xf32>
    %cst_117 = arith.constant dense<0.000000e+00> : vector<16x96xf32>
    %260 = tpu.matmul %257, %259, %cst_117 {dimension_numbers = #tpu.dot_dimension_numbers<[1], [0], [0], [1], [0, 0, 1, 1], [], []>} : vector<16x32xf32>, vector<32x96xf32>, vector<16x96xf32> -> vector<16x96xf32>
    %c1_118 = arith.constant 1 : index
    %c0_119 = arith.constant 0 : index
    %261 = vector.load %arg7[%c1_118, %c0_119] : memref<2x96xf32, #tpu.memory_space<vmem>>, vector<1x96xf32>
    %262 = vector.broadcast %261 : vector<1x96xf32> to vector<16x96xf32>
    %263 = arith.addf %260, %262 : vector<16x96xf32>
    %264 = vector.extract_strided_slice %263 {offsets = [0, 0], sizes = [16, 32], strides = [1, 1]} : vector<16x96xf32> to vector<16x32xf32>
    %cst_120 = arith.constant 0.353553385 : f32
    %265 = vector.broadcast %cst_120 : f32 to vector<16x32xf32>
    %266 = arith.mulf %264, %265 : vector<16x32xf32>
    %267 = vector.extract_strided_slice %263 {offsets = [0, 32], sizes = [16, 32], strides = [1, 1]} : vector<16x96xf32> to vector<16x32xf32>
    %268 = vector.extract_strided_slice %263 {offsets = [0, 64], sizes = [16, 32], strides = [1, 1]} : vector<16x96xf32> to vector<16x32xf32>
    %c2_121 = arith.constant 2 : index
    %c0_122 = arith.constant 0 : index
    %c0_123 = arith.constant 0 : index
    %269 = vector.load %arg12[%c2_121, %c0_122, %c0_123] : memref<4x32x32xf32, #tpu.memory_space<vmem>>, vector<1x32x32xf32>
    %270 = vector.shape_cast %269 : vector<1x32x32xf32> to vector<32x32xf32>
    %c2_124 = arith.constant 2 : index
    %c0_125 = arith.constant 0 : index
    %271 = vector.load %arg13[%c2_124, %c0_125] : memref<4x32xf32, #tpu.memory_space<vmem>>, vector<1x32xf32>
    %272 = tpu.transpose %267, [1, 0] : vector<16x32xf32> -> vector<32x16xf32>
    %273 = vector.extract_strided_slice %266 {offsets = [0, 0], sizes = [16, 8], strides = [1, 1]} : vector<16x32xf32> to vector<16x8xf32>
    %274 = vector.extract_strided_slice %272 {offsets = [0, 0], sizes = [8, 16], strides = [1, 1]} : vector<32x16xf32> to vector<8x16xf32>
    %cst_126 = arith.constant dense<0.000000e+00> : vector<16x16xf32>
    %275 = tpu.matmul %273, %274, %cst_126 {dimension_numbers = #tpu.dot_dimension_numbers<[1], [0], [0], [1], [0, 0, 1, 1], [], []>} : vector<16x8xf32>, vector<8x16xf32>, vector<16x16xf32> -> vector<16x16xf32>
    %276 = vector.extract_strided_slice %266 {offsets = [0, 8], sizes = [16, 8], strides = [1, 1]} : vector<16x32xf32> to vector<16x8xf32>
    %277 = vector.extract_strided_slice %272 {offsets = [8, 0], sizes = [8, 16], strides = [1, 1]} : vector<32x16xf32> to vector<8x16xf32>
    %cst_127 = arith.constant dense<0.000000e+00> : vector<16x16xf32>
    %278 = tpu.matmul %276, %277, %cst_127 {dimension_numbers = #tpu.dot_dimension_numbers<[1], [0], [0], [1], [0, 0, 1, 1], [], []>} : vector<16x8xf32>, vector<8x16xf32>, vector<16x16xf32> -> vector<16x16xf32>
    %279 = vector.extract_strided_slice %266 {offsets = [0, 16], sizes = [16, 8], strides = [1, 1]} : vector<16x32xf32> to vector<16x8xf32>
    %280 = vector.extract_strided_slice %272 {offsets = [16, 0], sizes = [8, 16], strides = [1, 1]} : vector<32x16xf32> to vector<8x16xf32>
    %cst_128 = arith.constant dense<0.000000e+00> : vector<16x16xf32>
    %281 = tpu.matmul %279, %280, %cst_128 {dimension_numbers = #tpu.dot_dimension_numbers<[1], [0], [0], [1], [0, 0, 1, 1], [], []>} : vector<16x8xf32>, vector<8x16xf32>, vector<16x16xf32> -> vector<16x16xf32>
    %282 = vector.extract_strided_slice %266 {offsets = [0, 24], sizes = [16, 8], strides = [1, 1]} : vector<16x32xf32> to vector<16x8xf32>
    %283 = vector.extract_strided_slice %272 {offsets = [24, 0], sizes = [8, 16], strides = [1, 1]} : vector<32x16xf32> to vector<8x16xf32>
    %cst_129 = arith.constant dense<0.000000e+00> : vector<16x16xf32>
    %284 = tpu.matmul %282, %283, %cst_129 {dimension_numbers = #tpu.dot_dimension_numbers<[1], [0], [0], [1], [0, 0, 1, 1], [], []>} : vector<16x8xf32>, vector<8x16xf32>, vector<16x16xf32> -> vector<16x16xf32>
    %285 = tpu.concatenate %275, %278, %281, %284 in 0 : vector<16x16xf32>, vector<16x16xf32>, vector<16x16xf32>, vector<16x16xf32> -> vector<64x16xf32>
    %286 = arith.addf %285, %16 : vector<64x16xf32>
    %cst_130 = arith.constant dense<0xFF800000> : vector<64xf32>
    %287 = vector.multi_reduction <maximumf>, %286, %cst_130 [1] : vector<64x16xf32> to vector<64xf32>
    %288 = vector.shape_cast %287 : vector<64xf32> to vector<64x1xf32>
    %289 = vector.broadcast %288 : vector<64x1xf32> to vector<64x16xf32>
    %290 = arith.subf %286, %289 : vector<64x16xf32>
    %291 = math.exp %290 : vector<64x16xf32>
    %cst_131 = arith.constant dense<0.000000e+00> : vector<64xf32>
    %292 = vector.multi_reduction <add>, %291, %cst_131 [1] : vector<64x16xf32> to vector<64xf32>
    %293 = vector.shape_cast %292 : vector<64xf32> to vector<64x1xf32>
    %294 = vector.broadcast %293 : vector<64x1xf32> to vector<64x16xf32>
    %295 = arith.divf %291, %294 : vector<64x16xf32>
    %296 = vector.extract_strided_slice %295 {offsets = [0, 0], sizes = [16, 16], strides = [1, 1]} : vector<64x16xf32> to vector<16x16xf32>
    %297 = vector.extract_strided_slice %268 {offsets = [0, 0], sizes = [16, 8], strides = [1, 1]} : vector<16x32xf32> to vector<16x8xf32>
    %cst_132 = arith.constant dense<0.000000e+00> : vector<16x8xf32>
    %298 = tpu.matmul %296, %297, %cst_132 {dimension_numbers = #tpu.dot_dimension_numbers<[1], [0], [0], [1], [0, 0, 1, 1], [], []>} : vector<16x16xf32>, vector<16x8xf32>, vector<16x8xf32> -> vector<16x8xf32>
    %299 = vector.extract_strided_slice %295 {offsets = [16, 0], sizes = [16, 16], strides = [1, 1]} : vector<64x16xf32> to vector<16x16xf32>
    %300 = vector.extract_strided_slice %268 {offsets = [0, 8], sizes = [16, 8], strides = [1, 1]} : vector<16x32xf32> to vector<16x8xf32>
    %cst_133 = arith.constant dense<0.000000e+00> : vector<16x8xf32>
    %301 = tpu.matmul %299, %300, %cst_133 {dimension_numbers = #tpu.dot_dimension_numbers<[1], [0], [0], [1], [0, 0, 1, 1], [], []>} : vector<16x16xf32>, vector<16x8xf32>, vector<16x8xf32> -> vector<16x8xf32>
    %302 = vector.extract_strided_slice %295 {offsets = [32, 0], sizes = [16, 16], strides = [1, 1]} : vector<64x16xf32> to vector<16x16xf32>
    %303 = vector.extract_strided_slice %268 {offsets = [0, 16], sizes = [16, 8], strides = [1, 1]} : vector<16x32xf32> to vector<16x8xf32>
    %cst_134 = arith.constant dense<0.000000e+00> : vector<16x8xf32>
    %304 = tpu.matmul %302, %303, %cst_134 {dimension_numbers = #tpu.dot_dimension_numbers<[1], [0], [0], [1], [0, 0, 1, 1], [], []>} : vector<16x16xf32>, vector<16x8xf32>, vector<16x8xf32> -> vector<16x8xf32>
    %305 = vector.extract_strided_slice %295 {offsets = [48, 0], sizes = [16, 16], strides = [1, 1]} : vector<64x16xf32> to vector<16x16xf32>
    %306 = vector.extract_strided_slice %268 {offsets = [0, 24], sizes = [16, 8], strides = [1, 1]} : vector<16x32xf32> to vector<16x8xf32>
    %cst_135 = arith.constant dense<0.000000e+00> : vector<16x8xf32>
    %307 = tpu.matmul %305, %306, %cst_135 {dimension_numbers = #tpu.dot_dimension_numbers<[1], [0], [0], [1], [0, 0, 1, 1], [], []>} : vector<16x16xf32>, vector<16x8xf32>, vector<16x8xf32> -> vector<16x8xf32>
    %308 = tpu.concatenate %298, %301, %304, %307 in 1 : vector<16x8xf32>, vector<16x8xf32>, vector<16x8xf32>, vector<16x8xf32> -> vector<16x32xf32>
    %cst_136 = arith.constant dense<0.000000e+00> : vector<16x32xf32>
    %309 = tpu.matmul %308, %270, %cst_136 {dimension_numbers = #tpu.dot_dimension_numbers<[1], [0], [0], [1], [0, 0, 1, 1], [], []>} : vector<16x32xf32>, vector<32x32xf32>, vector<16x32xf32> -> vector<16x32xf32>
    %310 = vector.broadcast %271 : vector<1x32xf32> to vector<16x32xf32>
    %311 = arith.addf %309, %310 : vector<16x32xf32>
    %312 = arith.addf %233, %311 : vector<16x32xf32>
    %c4 = arith.constant 4 : index
    %c0_137 = arith.constant 0 : index
    %313 = vector.load %arg4[%c4, %c0_137] : memref<7x32xf32, #tpu.memory_space<vmem>>, vector<1x32xf32>
    %c4_138 = arith.constant 4 : index
    %c0_139 = arith.constant 0 : index
    %314 = vector.load %arg5[%c4_138, %c0_139] : memref<7x32xf32, #tpu.memory_space<vmem>>, vector<1x32xf32>
    %cst_140 = arith.constant dense<0.000000e+00> : vector<16xf32>
    %315 = vector.multi_reduction <add>, %312, %cst_140 [1] : vector<16x32xf32> to vector<16xf32>
    %316 = vector.shape_cast %315 : vector<16xf32> to vector<16x1xf32>
    %cst_141 = arith.constant 3.200000e+01 : f32
    %317 = vector.broadcast %cst_141 : f32 to vector<16x1xf32>
    %318 = arith.divf %316, %317 : vector<16x1xf32>
    %319 = vector.broadcast %318 : vector<16x1xf32> to vector<16x32xf32>
    %320 = arith.subf %312, %319 : vector<16x32xf32>
    %321 = arith.mulf %320, %320 : vector<16x32xf32>
    %cst_142 = arith.constant dense<0.000000e+00> : vector<16xf32>
    %322 = vector.multi_reduction <add>, %321, %cst_142 [1] : vector<16x32xf32> to vector<16xf32>
    %323 = vector.shape_cast %322 : vector<16xf32> to vector<16x1xf32>
    %cst_143 = arith.constant 3.100000e+01 : f32
    %324 = vector.broadcast %cst_143 : f32 to vector<16x1xf32>
    %325 = arith.divf %323, %324 : vector<16x1xf32>
    %326 = vector.broadcast %318 : vector<16x1xf32> to vector<16x32xf32>
    %327 = arith.subf %312, %326 : vector<16x32xf32>
    %328 = vector.broadcast %313 : vector<1x32xf32> to vector<16x32xf32>
    %329 = arith.mulf %328, %327 : vector<16x32xf32>
    %330 = math.sqrt %325 : vector<16x1xf32>
    %cst_144 = arith.constant 9.99999997E-7 : f32
    %331 = vector.broadcast %cst_144 : f32 to vector<16x1xf32>
    %332 = arith.addf %330, %331 : vector<16x1xf32>
    %333 = vector.broadcast %332 : vector<16x1xf32> to vector<16x32xf32>
    %334 = arith.divf %329, %333 : vector<16x32xf32>
    %335 = vector.broadcast %314 : vector<1x32xf32> to vector<16x32xf32>
    %336 = arith.addf %334, %335 : vector<16x32xf32>
    %c1_145 = arith.constant 1 : index
    %c0_146 = arith.constant 0 : index
    %c0_147 = arith.constant 0 : index
    %337 = vector.load %arg8[%c1_145, %c0_146, %c0_147] : memref<2x32x32xf32, #tpu.memory_space<vmem>>, vector<1x32x32xf32>
    %338 = vector.shape_cast %337 : vector<1x32x32xf32> to vector<32x32xf32>
    %cst_148 = arith.constant dense<0.000000e+00> : vector<16x32xf32>
    %339 = tpu.matmul %336, %338, %cst_148 {dimension_numbers = #tpu.dot_dimension_numbers<[1], [0], [0], [1], [0, 0, 1, 1], [], []>} : vector<16x32xf32>, vector<32x32xf32>, vector<16x32xf32> -> vector<16x32xf32>
    %c1_149 = arith.constant 1 : index
    %c0_150 = arith.constant 0 : index
    %340 = vector.load %arg9[%c1_149, %c0_150] : memref<2x32xf32, #tpu.memory_space<vmem>>, vector<1x32xf32>
    %341 = vector.broadcast %340 : vector<1x32xf32> to vector<16x32xf32>
    %342 = arith.addf %339, %341 : vector<16x32xf32>
    %cst_151 = arith.constant 0.353553385 : f32
    %343 = vector.broadcast %cst_151 : f32 to vector<16x32xf32>
    %344 = arith.mulf %342, %343 : vector<16x32xf32>
    %c1_152 = arith.constant 1 : index
    %c0_153 = arith.constant 0 : index
    %c0_154 = arith.constant 0 : index
    %345 = vector.load %arg10[%c1_152, %c0_153, %c0_154] : memref<2x32x64xf32, #tpu.memory_space<vmem>>, vector<1x32x64xf32>
    %346 = vector.shape_cast %345 : vector<1x32x64xf32> to vector<32x64xf32>
    %cst_155 = arith.constant dense<0.000000e+00> : vector<16x64xf32>
    %347 = tpu.matmul %1, %346, %cst_155 {dimension_numbers = #tpu.dot_dimension_numbers<[1], [0], [0], [1], [0, 0, 1, 1], [], []>} : vector<16x32xf32>, vector<32x64xf32>, vector<16x64xf32> -> vector<16x64xf32>
    %c1_156 = arith.constant 1 : index
    %c0_157 = arith.constant 0 : index
    %348 = vector.load %arg11[%c1_156, %c0_157] : memref<2x64xf32, #tpu.memory_space<vmem>>, vector<1x64xf32>
    %349 = vector.broadcast %348 : vector<1x64xf32> to vector<16x64xf32>
    %350 = arith.addf %347, %349 : vector<16x64xf32>
    %351 = vector.extract_strided_slice %350 {offsets = [0, 0], sizes = [16, 32], strides = [1, 1]} : vector<16x64xf32> to vector<16x32xf32>
    %352 = vector.extract_strided_slice %350 {offsets = [0, 32], sizes = [16, 32], strides = [1, 1]} : vector<16x64xf32> to vector<16x32xf32>
    %c3_158 = arith.constant 3 : index
    %c0_159 = arith.constant 0 : index
    %c0_160 = arith.constant 0 : index
    %353 = vector.load %arg12[%c3_158, %c0_159, %c0_160] : memref<4x32x32xf32, #tpu.memory_space<vmem>>, vector<1x32x32xf32>
    %354 = vector.shape_cast %353 : vector<1x32x32xf32> to vector<32x32xf32>
    %c3_161 = arith.constant 3 : index
    %c0_162 = arith.constant 0 : index
    %355 = vector.load %arg13[%c3_161, %c0_162] : memref<4x32xf32, #tpu.memory_space<vmem>>, vector<1x32xf32>
    %356 = tpu.transpose %351, [1, 0] : vector<16x32xf32> -> vector<32x16xf32>
    %357 = vector.extract_strided_slice %344 {offsets = [0, 0], sizes = [16, 8], strides = [1, 1]} : vector<16x32xf32> to vector<16x8xf32>
    %358 = vector.extract_strided_slice %356 {offsets = [0, 0], sizes = [8, 16], strides = [1, 1]} : vector<32x16xf32> to vector<8x16xf32>
    %cst_163 = arith.constant dense<0.000000e+00> : vector<16x16xf32>
    %359 = tpu.matmul %357, %358, %cst_163 {dimension_numbers = #tpu.dot_dimension_numbers<[1], [0], [0], [1], [0, 0, 1, 1], [], []>} : vector<16x8xf32>, vector<8x16xf32>, vector<16x16xf32> -> vector<16x16xf32>
    %360 = vector.extract_strided_slice %344 {offsets = [0, 8], sizes = [16, 8], strides = [1, 1]} : vector<16x32xf32> to vector<16x8xf32>
    %361 = vector.extract_strided_slice %356 {offsets = [8, 0], sizes = [8, 16], strides = [1, 1]} : vector<32x16xf32> to vector<8x16xf32>
    %cst_164 = arith.constant dense<0.000000e+00> : vector<16x16xf32>
    %362 = tpu.matmul %360, %361, %cst_164 {dimension_numbers = #tpu.dot_dimension_numbers<[1], [0], [0], [1], [0, 0, 1, 1], [], []>} : vector<16x8xf32>, vector<8x16xf32>, vector<16x16xf32> -> vector<16x16xf32>
    %363 = vector.extract_strided_slice %344 {offsets = [0, 16], sizes = [16, 8], strides = [1, 1]} : vector<16x32xf32> to vector<16x8xf32>
    %364 = vector.extract_strided_slice %356 {offsets = [16, 0], sizes = [8, 16], strides = [1, 1]} : vector<32x16xf32> to vector<8x16xf32>
    %cst_165 = arith.constant dense<0.000000e+00> : vector<16x16xf32>
    %365 = tpu.matmul %363, %364, %cst_165 {dimension_numbers = #tpu.dot_dimension_numbers<[1], [0], [0], [1], [0, 0, 1, 1], [], []>} : vector<16x8xf32>, vector<8x16xf32>, vector<16x16xf32> -> vector<16x16xf32>
    %366 = vector.extract_strided_slice %344 {offsets = [0, 24], sizes = [16, 8], strides = [1, 1]} : vector<16x32xf32> to vector<16x8xf32>
    %367 = vector.extract_strided_slice %356 {offsets = [24, 0], sizes = [8, 16], strides = [1, 1]} : vector<32x16xf32> to vector<8x16xf32>
    %cst_166 = arith.constant dense<0.000000e+00> : vector<16x16xf32>
    %368 = tpu.matmul %366, %367, %cst_166 {dimension_numbers = #tpu.dot_dimension_numbers<[1], [0], [0], [1], [0, 0, 1, 1], [], []>} : vector<16x8xf32>, vector<8x16xf32>, vector<16x16xf32> -> vector<16x16xf32>
    %369 = tpu.concatenate %359, %362, %365, %368 in 0 : vector<16x16xf32>, vector<16x16xf32>, vector<16x16xf32>, vector<16x16xf32> -> vector<64x16xf32>
    %370 = arith.addf %369, %31 : vector<64x16xf32>
    %cst_167 = arith.constant dense<0xFF800000> : vector<64xf32>
    %371 = vector.multi_reduction <maximumf>, %370, %cst_167 [1] : vector<64x16xf32> to vector<64xf32>
    %372 = vector.shape_cast %371 : vector<64xf32> to vector<64x1xf32>
    %373 = vector.broadcast %372 : vector<64x1xf32> to vector<64x16xf32>
    %374 = arith.subf %370, %373 : vector<64x16xf32>
    %375 = math.exp %374 : vector<64x16xf32>
    %cst_168 = arith.constant dense<0.000000e+00> : vector<64xf32>
    %376 = vector.multi_reduction <add>, %375, %cst_168 [1] : vector<64x16xf32> to vector<64xf32>
    %377 = vector.shape_cast %376 : vector<64xf32> to vector<64x1xf32>
    %378 = vector.broadcast %377 : vector<64x1xf32> to vector<64x16xf32>
    %379 = arith.divf %375, %378 : vector<64x16xf32>
    %380 = vector.extract_strided_slice %379 {offsets = [0, 0], sizes = [16, 16], strides = [1, 1]} : vector<64x16xf32> to vector<16x16xf32>
    %381 = vector.extract_strided_slice %352 {offsets = [0, 0], sizes = [16, 8], strides = [1, 1]} : vector<16x32xf32> to vector<16x8xf32>
    %cst_169 = arith.constant dense<0.000000e+00> : vector<16x8xf32>
    %382 = tpu.matmul %380, %381, %cst_169 {dimension_numbers = #tpu.dot_dimension_numbers<[1], [0], [0], [1], [0, 0, 1, 1], [], []>} : vector<16x16xf32>, vector<16x8xf32>, vector<16x8xf32> -> vector<16x8xf32>
    %383 = vector.extract_strided_slice %379 {offsets = [16, 0], sizes = [16, 16], strides = [1, 1]} : vector<64x16xf32> to vector<16x16xf32>
    %384 = vector.extract_strided_slice %352 {offsets = [0, 8], sizes = [16, 8], strides = [1, 1]} : vector<16x32xf32> to vector<16x8xf32>
    %cst_170 = arith.constant dense<0.000000e+00> : vector<16x8xf32>
    %385 = tpu.matmul %383, %384, %cst_170 {dimension_numbers = #tpu.dot_dimension_numbers<[1], [0], [0], [1], [0, 0, 1, 1], [], []>} : vector<16x16xf32>, vector<16x8xf32>, vector<16x8xf32> -> vector<16x8xf32>
    %386 = vector.extract_strided_slice %379 {offsets = [32, 0], sizes = [16, 16], strides = [1, 1]} : vector<64x16xf32> to vector<16x16xf32>
    %387 = vector.extract_strided_slice %352 {offsets = [0, 16], sizes = [16, 8], strides = [1, 1]} : vector<16x32xf32> to vector<16x8xf32>
    %cst_171 = arith.constant dense<0.000000e+00> : vector<16x8xf32>
    %388 = tpu.matmul %386, %387, %cst_171 {dimension_numbers = #tpu.dot_dimension_numbers<[1], [0], [0], [1], [0, 0, 1, 1], [], []>} : vector<16x16xf32>, vector<16x8xf32>, vector<16x8xf32> -> vector<16x8xf32>
    %389 = vector.extract_strided_slice %379 {offsets = [48, 0], sizes = [16, 16], strides = [1, 1]} : vector<64x16xf32> to vector<16x16xf32>
    %390 = vector.extract_strided_slice %352 {offsets = [0, 24], sizes = [16, 8], strides = [1, 1]} : vector<16x32xf32> to vector<16x8xf32>
    %cst_172 = arith.constant dense<0.000000e+00> : vector<16x8xf32>
    %391 = tpu.matmul %389, %390, %cst_172 {dimension_numbers = #tpu.dot_dimension_numbers<[1], [0], [0], [1], [0, 0, 1, 1], [], []>} : vector<16x16xf32>, vector<16x8xf32>, vector<16x8xf32> -> vector<16x8xf32>
    %392 = tpu.concatenate %382, %385, %388, %391 in 1 : vector<16x8xf32>, vector<16x8xf32>, vector<16x8xf32>, vector<16x8xf32> -> vector<16x32xf32>
    %cst_173 = arith.constant dense<0.000000e+00> : vector<16x32xf32>
    %393 = tpu.matmul %392, %354, %cst_173 {dimension_numbers = #tpu.dot_dimension_numbers<[1], [0], [0], [1], [0, 0, 1, 1], [], []>} : vector<16x32xf32>, vector<32x32xf32>, vector<16x32xf32> -> vector<16x32xf32>
    %394 = vector.broadcast %355 : vector<1x32xf32> to vector<16x32xf32>
    %395 = arith.addf %393, %394 : vector<16x32xf32>
    %396 = arith.addf %312, %395 : vector<16x32xf32>
    %c5 = arith.constant 5 : index
    %c0_174 = arith.constant 0 : index
    %397 = vector.load %arg4[%c5, %c0_174] : memref<7x32xf32, #tpu.memory_space<vmem>>, vector<1x32xf32>
    %c5_175 = arith.constant 5 : index
    %c0_176 = arith.constant 0 : index
    %398 = vector.load %arg5[%c5_175, %c0_176] : memref<7x32xf32, #tpu.memory_space<vmem>>, vector<1x32xf32>
    %cst_177 = arith.constant dense<0.000000e+00> : vector<16xf32>
    %399 = vector.multi_reduction <add>, %396, %cst_177 [1] : vector<16x32xf32> to vector<16xf32>
    %400 = vector.shape_cast %399 : vector<16xf32> to vector<16x1xf32>
    %cst_178 = arith.constant 3.200000e+01 : f32
    %401 = vector.broadcast %cst_178 : f32 to vector<16x1xf32>
    %402 = arith.divf %400, %401 : vector<16x1xf32>
    %403 = vector.broadcast %402 : vector<16x1xf32> to vector<16x32xf32>
    %404 = arith.subf %396, %403 : vector<16x32xf32>
    %405 = arith.mulf %404, %404 : vector<16x32xf32>
    %cst_179 = arith.constant dense<0.000000e+00> : vector<16xf32>
    %406 = vector.multi_reduction <add>, %405, %cst_179 [1] : vector<16x32xf32> to vector<16xf32>
    %407 = vector.shape_cast %406 : vector<16xf32> to vector<16x1xf32>
    %cst_180 = arith.constant 3.100000e+01 : f32
    %408 = vector.broadcast %cst_180 : f32 to vector<16x1xf32>
    %409 = arith.divf %407, %408 : vector<16x1xf32>
    %410 = vector.broadcast %402 : vector<16x1xf32> to vector<16x32xf32>
    %411 = arith.subf %396, %410 : vector<16x32xf32>
    %412 = vector.broadcast %397 : vector<1x32xf32> to vector<16x32xf32>
    %413 = arith.mulf %412, %411 : vector<16x32xf32>
    %414 = math.sqrt %409 : vector<16x1xf32>
    %cst_181 = arith.constant 9.99999997E-7 : f32
    %415 = vector.broadcast %cst_181 : f32 to vector<16x1xf32>
    %416 = arith.addf %414, %415 : vector<16x1xf32>
    %417 = vector.broadcast %416 : vector<16x1xf32> to vector<16x32xf32>
    %418 = arith.divf %413, %417 : vector<16x32xf32>
    %419 = vector.broadcast %398 : vector<1x32xf32> to vector<16x32xf32>
    %420 = arith.addf %418, %419 : vector<16x32xf32>
    %c1_182 = arith.constant 1 : index
    %c0_183 = arith.constant 0 : index
    %c0_184 = arith.constant 0 : index
    %421 = vector.load %arg14[%c1_182, %c0_183, %c0_184] : memref<2x32x64xf32, #tpu.memory_space<vmem>>, vector<1x32x64xf32>
    %422 = vector.shape_cast %421 : vector<1x32x64xf32> to vector<32x64xf32>
    %cst_185 = arith.constant dense<0.000000e+00> : vector<16x64xf32>
    %423 = tpu.matmul %420, %422, %cst_185 {dimension_numbers = #tpu.dot_dimension_numbers<[1], [0], [0], [1], [0, 0, 1, 1], [], []>} : vector<16x32xf32>, vector<32x64xf32>, vector<16x64xf32> -> vector<16x64xf32>
    %c1_186 = arith.constant 1 : index
    %c0_187 = arith.constant 0 : index
    %424 = vector.load %arg15[%c1_186, %c0_187] : memref<2x64xf32, #tpu.memory_space<vmem>>, vector<1x64xf32>
    %425 = vector.broadcast %424 : vector<1x64xf32> to vector<16x64xf32>
    %426 = arith.addf %423, %425 : vector<16x64xf32>
    %cst_188 = arith.constant 0.000000e+00 : f32
    %427 = vector.broadcast %cst_188 : f32 to vector<16x64xf32>
    %428 = arith.maximumf %426, %427 : vector<16x64xf32>
    %c1_189 = arith.constant 1 : index
    %c0_190 = arith.constant 0 : index
    %c0_191 = arith.constant 0 : index
    %429 = vector.load %arg16[%c1_189, %c0_190, %c0_191] : memref<2x64x32xf32, #tpu.memory_space<vmem>>, vector<1x64x32xf32>
    %430 = vector.shape_cast %429 : vector<1x64x32xf32> to vector<64x32xf32>
    %cst_192 = arith.constant dense<0.000000e+00> : vector<16x32xf32>
    %431 = tpu.matmul %428, %430, %cst_192 {dimension_numbers = #tpu.dot_dimension_numbers<[1], [0], [0], [1], [0, 0, 1, 1], [], []>} : vector<16x64xf32>, vector<64x32xf32>, vector<16x32xf32> -> vector<16x32xf32>
    %432 = arith.addf %396, %431 : vector<16x32xf32>
    %c1_193 = arith.constant 1 : index
    %c0_194 = arith.constant 0 : index
    %433 = vector.load %arg17[%c1_193, %c0_194] : memref<2x32xf32, #tpu.memory_space<vmem>>, vector<1x32xf32>
    %434 = vector.broadcast %433 : vector<1x32xf32> to vector<16x32xf32>
    %435 = arith.addf %432, %434 : vector<16x32xf32>
    %c6 = arith.constant 6 : index
    %c0_195 = arith.constant 0 : index
    %436 = vector.load %arg4[%c6, %c0_195] : memref<7x32xf32, #tpu.memory_space<vmem>>, vector<1x32xf32>
    %c6_196 = arith.constant 6 : index
    %c0_197 = arith.constant 0 : index
    %437 = vector.load %arg5[%c6_196, %c0_197] : memref<7x32xf32, #tpu.memory_space<vmem>>, vector<1x32xf32>
    %cst_198 = arith.constant dense<0.000000e+00> : vector<16xf32>
    %438 = vector.multi_reduction <add>, %435, %cst_198 [1] : vector<16x32xf32> to vector<16xf32>
    %439 = vector.shape_cast %438 : vector<16xf32> to vector<16x1xf32>
    %cst_199 = arith.constant 3.200000e+01 : f32
    %440 = vector.broadcast %cst_199 : f32 to vector<16x1xf32>
    %441 = arith.divf %439, %440 : vector<16x1xf32>
    %442 = vector.broadcast %441 : vector<16x1xf32> to vector<16x32xf32>
    %443 = arith.subf %435, %442 : vector<16x32xf32>
    %444 = arith.mulf %443, %443 : vector<16x32xf32>
    %cst_200 = arith.constant dense<0.000000e+00> : vector<16xf32>
    %445 = vector.multi_reduction <add>, %444, %cst_200 [1] : vector<16x32xf32> to vector<16xf32>
    %446 = vector.shape_cast %445 : vector<16xf32> to vector<16x1xf32>
    %cst_201 = arith.constant 3.100000e+01 : f32
    %447 = vector.broadcast %cst_201 : f32 to vector<16x1xf32>
    %448 = arith.divf %446, %447 : vector<16x1xf32>
    %449 = vector.broadcast %441 : vector<16x1xf32> to vector<16x32xf32>
    %450 = arith.subf %435, %449 : vector<16x32xf32>
    %451 = vector.broadcast %436 : vector<1x32xf32> to vector<16x32xf32>
    %452 = arith.mulf %451, %450 : vector<16x32xf32>
    %453 = math.sqrt %448 : vector<16x1xf32>
    %cst_202 = arith.constant 9.99999997E-7 : f32
    %454 = vector.broadcast %cst_202 : f32 to vector<16x1xf32>
    %455 = arith.addf %453, %454 : vector<16x1xf32>
    %456 = vector.broadcast %455 : vector<16x1xf32> to vector<16x32xf32>
    %457 = arith.divf %452, %456 : vector<16x32xf32>
    %458 = vector.broadcast %437 : vector<1x32xf32> to vector<16x32xf32>
    %459 = arith.addf %457, %458 : vector<16x32xf32>
    %c0_203 = arith.constant 0 : index
    %c0_204 = arith.constant 0 : index
    %460 = vector.load %arg18[%c0_203, %c0_204] : memref<16x32xf32, #tpu.memory_space<vmem>>, vector<16x32xf32>
    tpu.vector_store %arg18[%c0_203, %c0_204], %459 {strides = array<i32>} : memref<16x32xf32, #tpu.memory_space<vmem>>, vector<16x32xf32>,
    return
  }
}

</mosaic_0001>

<bundles_post_ra>
// kernel: decoder_forward.1
= control target key start
LH: loop header
LB: loop body
LE: loop exit
PB: predicated region body
PF: predicated region fallthrough
CT: control target
= control target key end

     0   :  { %s8190_s0 = inlined_call_operand.hbm [shape: f32[16,32], index: 0, kind: input, shape index: {}]   ;;  %s8191_s1 = inlined_call_operand.hbm [shape: f32[16,32], index: 1, kind: input, shape index: {}]   ;;  %s8192_s2 = inlined_call_operand.hbm [shape: f32[2,8,8], index: 2, kind: input, shape index: {}]   ;;  %s8193_s3 = inlined_call_operand.hbm [shape: f32[2,8,8], index: 3, kind: input, shape index: {}]   ;;  %s8194_s4 = inlined_call_operand.hbm [shape: f32[7,32], index: 4, kind: input, shape index: {}]   ;;  %s8195_s5 = inlined_call_operand.hbm [shape: f32[7,32], index: 5, kind: input, shape index: {}]   ;;  %s8196_s6 = inlined_call_operand.vmem [shape: f32[2,32,96], index: 6, kind: input, shape index: {}]   ;;  %s8197_s7 = inlined_call_operand.hbm [shape: f32[2,96], index: 7, kind: input, shape index: {}]   ;;  %s8198_s8 = inlined_call_operand.vmem [shape: f32[2,32,32], index: 8, kind: input, shape index: {}]   ;;  %s8199_s9 = inlined_call_operand.hbm [shape: f32[2,32], index: 9, kind: input, shape index: {}]   ;;  %s8200_s10 = inlined_call_operand.hbm [shape: f32[2,32,64], index: 10, kind: input, shape index: {}]   ;;  %s8201_s11 = inlined_call_operand.hbm [shape: f32[2,64], index: 11, kind: input, shape index: {}]   ;;  %s8202_s12 = inlined_call_operand.vmem [shape: f32[4,32,32], index: 12, kind: input, shape index: {}]   ;;  %s8203_s13 = inlined_call_operand.hbm [shape: f32[4,32], index: 13, kind: input, shape index: {}]   ;;  %s8204_s14 = inlined_call_operand.hbm [shape: f32[2,32,64], index: 14, kind: input, shape index: {}]   ;;  %s8205_s15 = inlined_call_operand.hbm [shape: f32[2,64], index: 15, kind: input, shape index: {}]   ;;  %s8206_s16 = inlined_call_operand.vmem [shape: f32[2,64,32], index: 16, kind: input, shape index: {}]   ;;  %s8207_s17 = inlined_call_operand.hbm [shape: f32[2,32], index: 17, kind: input, shape index: {}]   ;;  %s8208_s18 = inlined_call_operand.hbm [shape: f32[16,32], index: 18, kind: output, shape index: {}]  }
   0x1   :  { %8213 = sst [smem:[#allocation35_spill]] %s8190_s0 }
   0x2   :  { %8214 = sst [smem:[#allocation36_spill]] %s8191_s1 }
   0x3   :  { %8215 = sst [smem:[#allocation37_spill]] %s8192_s2 }
   0x4   :  { %8216 = sst [smem:[#allocation38_spill]] %s8208_s18 }
   0x5   :  { %23 = vsyncpa [#allocation3], 0 }
   0x6   :  { %24 = vsyncpa [#allocation6], 0 }
   0x7   :  { %25 = vsyncpa [#allocation9], 0 }
   0x8   :  { %26 = vsyncpa [#allocation12], 0 }
   0x9   :  { %27 = vsyncpa [#allocation15], 0 }
   0xa   :  { %28 = vsyncpa [#allocation18], 0 }
   0xb   :  { %29 = vsyncpa [#allocation21], 0 }
   0xc   :  { %30 = vsyncpa [#allocation24], 0 }
   0xd   :  { %31 = vsyncpa [#allocation4], 0  ;;  %s7112_s27 = smov [#allocation5]   ;;  %s7113_s29 = smov [#allocation8]  }
   0xe   :  { %s49_s28 = sshll.u32 %s7112_s27, 4  ;;  %s73_s30 = sshll.u32 %s7113_s29, 4  ;;  %s50_s28 = int_to_ptr.vmem [resolvable:$true] %s49_s28  ;;  %s7238_s30 = int_to_ptr.vmem [resolvable:$true] %s73_s30 }
   0xf   :  { %s8217_s1 = sld [smem:[#allocation36_spill]] }
  0x15   :  { %s6764_s20 = scalar_lea.hbm %s8217_s1, 256 }
  0x16   :  { %p6765_p0 = scmp.ne.s32.totalorder %s8217_s1, %s6764_s20  ;;  %p6768_p1 = scmp.lt.u32.totalorder %s6764_s20, %s8217_s1 }
  0x18   :  { %p6770_p2 = pnand %p6768_p1, %p6765_p0 }
  0x1a   :  { %6773 = shalt.err (!%p6770_p2)
}
  0x1b   :  { %s6774_s24 = scalar_lea.vmem %s50_s28, 256  ;;  %p6779_p4 = scmp.lt.s32.totalorder %s50_s28, %s50_s28 }
  0x1c   :  { %p6775_p3 = scmp.ne.s32.totalorder %s50_s28, %s6774_s24  ;;  %p6780_p5 = scmp.lt.s32.totalorder %s6774_s24, %s6774_s24 }
  0x1e   :  { %p6781_p6 = por %p6780_p5, %p6779_p4 }
  0x20   :  { %p6782_p7 = pnand %p6781_p6, %p6775_p3 }
  0x22   :  { %6785 = shalt.err (!%p6782_p7)
}
  0x23   :  { %s7114_s25 = smov 128   ;;  %s7115_s26 = smov 8  }
  0x24   :  { %55 = dma.hbm_to_vmem [thread:$0]  %s8217_s1, 256, %s50_s28, [#allocation6], %s7114_s25, %s7114_s25, %s7115_s26  }
  0x25   :  { %s6786_s20 = scalar_lea.hbm %s8193_s3, 256 }
  0x26   :  { %p6787_p8 = scmp.ne.s32.totalorder %s8193_s3, %s6786_s20  ;;  %p6790_p9 = scmp.lt.u32.totalorder %s6786_s20, %s8193_s3 }
  0x28   :  { %p6792_p10 = pnand %p6790_p9, %p6787_p8 }
  0x2a   :  { %6795 = shalt.err (!%p6792_p10)
}
  0x2b   :  { %s6796_s24 = scalar_lea.vmem %s7238_s30, 256  ;;  %p6801_p12 = scmp.lt.s32.totalorder %s7238_s30, %s7238_s30 }
  0x2c   :  { %p6797_p11 = scmp.ne.s32.totalorder %s7238_s30, %s6796_s24  ;;  %p6802_p13 = scmp.lt.s32.totalorder %s6796_s24, %s6796_s24 }
  0x2e   :  { %p6803_p0 = por %p6802_p13, %p6801_p12 }
  0x30   :  { %p6804_p1 = pnand %p6803_p0, %p6797_p11 }
  0x32   :  { %6807 = shalt.err (!%p6804_p1)
}
  0x33   :  { %79 = dma.hbm_to_vmem [thread:$0]  %s8193_s3, 256, %s7238_s30, [#allocation9], %s7114_s25, %s7114_s25, %s7115_s26  }
  0x34   :  { %s7116_s27 = smov [#allocation11]   ;;  %s7117_s0 = smov [#allocation14]  }
  0x35   :  { %s96_s29 = sshll.u32 %s7116_s27, 4  ;;  %s120_s19 = sshll.u32 %s7117_s0, 4  ;;  %s97_s29 = int_to_ptr.vmem [resolvable:$true] %s96_s29  ;;  %s121_s19 = int_to_ptr.vmem [resolvable:$true] %s120_s19 }
  0x36   :  { %s6808_s22 = scalar_lea.hbm %s8195_s5, 128 }
  0x37   :  { %p6809_p2 = scmp.ne.s32.totalorder %s8195_s5, %s6808_s22  ;;  %p6812_p3 = scmp.lt.u32.totalorder %s6808_s22, %s8195_s5 }
  0x39   :  { %p6814_p4 = pnand %p6812_p3, %p6809_p2 }
  0x3b   :  { %6817 = shalt.err (!%p6814_p4)
}
  0x3c   :  { %s6818_s3 = scalar_lea.vmem %s97_s29, 128  ;;  %p6823_p6 = scmp.lt.s32.totalorder %s97_s29, %s97_s29 }
  0x3d   :  { %p6819_p5 = scmp.ne.s32.totalorder %s97_s29, %s6818_s3  ;;  %p6824_p7 = scmp.lt.s32.totalorder %s6818_s3, %s6818_s3 }
  0x3f   :  { %p6825_p8 = por %p6824_p7, %p6823_p6 }
  0x41   :  { %p6826_p9 = pnand %p6825_p8, %p6819_p5 }
  0x43   :  { %6829 = shalt.err (!%p6826_p9)
}
  0x44   :  { %99 = dma.hbm_to_vmem [thread:$0]  %s8195_s5, 128, %s97_s29, [#allocation12]  }
  0x45   :  { %s6830_s0 = scalar_lea.hbm %s8199_s9, 32 }
  0x46   :  { %p6831_p10 = scmp.ne.s32.totalorder %s8199_s9, %s6830_s0  ;;  %p6834_p11 = scmp.lt.u32.totalorder %s6830_s0, %s8199_s9 }
  0x48   :  { %p6836_p12 = pnand %p6834_p11, %p6831_p10 }
  0x4a   :  { %6839 = shalt.err (!%p6836_p12)
}
  0x4b   :  { %s6840_s2 = scalar_lea.vmem %s121_s19, 32  ;;  %p6845_p0 = scmp.lt.s32.totalorder %s121_s19, %s121_s19 }
  0x4c   :  { %p6841_p13 = scmp.ne.s32.totalorder %s121_s19, %s6840_s2  ;;  %p6846_p1 = scmp.lt.s32.totalorder %s6840_s2, %s6840_s2 }
  0x4e   :  { %p6847_p2 = por %p6846_p1, %p6845_p0 }
  0x50   :  { %p6848_p3 = pnand %p6847_p2, %p6841_p13 }
  0x52   :  { %6851 = shalt.err (!%p6848_p3)
}
  0x53   :  { %123 = dma.hbm_to_vmem [thread:$0]  %s8199_s9, 32, %s121_s19, [#allocation15]  }
  0x54   :  { %s7118_s23 = smov [#allocation17]   ;;  %s7119_s3 = smov [#allocation20]  }
  0x55   :  { %s142_s24 = sshll.u32 %s7118_s23, 4  ;;  %s163_s30 = sshll.u32 %s7119_s3, 4  ;;  %s143_s24 = int_to_ptr.vmem [resolvable:$true] %s142_s24  ;;  %s7299_s30 = int_to_ptr.vmem [resolvable:$true] %s163_s30 }
  0x56   :  { %s6852_s27 = scalar_lea.hbm %s8201_s11, 32 }
  0x57   :  { %p6853_p4 = scmp.ne.s32.totalorder %s8201_s11, %s6852_s27  ;;  %p6856_p5 = scmp.lt.u32.totalorder %s6852_s27, %s8201_s11 }
  0x59   :  { %p6858_p6 = pnand %p6856_p5, %p6853_p4 }
  0x5b   :  { %6861 = shalt.err (!%p6858_p6)
}
  0x5c   :  { %s6862_s9 = scalar_lea.vmem %s143_s24, 32  ;;  %p6867_p8 = scmp.lt.s32.totalorder %s143_s24, %s143_s24 }
  0x5d   :  { %p6863_p7 = scmp.ne.s32.totalorder %s143_s24, %s6862_s9  ;;  %p6868_p9 = scmp.lt.s32.totalorder %s6862_s9, %s6862_s9 }
  0x5f   :  { %p6869_p10 = por %p6868_p9, %p6867_p8 }
  0x61   :  { %p6870_p11 = pnand %p6869_p10, %p6863_p7 }
  0x63   :  { %6873 = shalt.err (!%p6870_p11)
}
  0x64   :  { %145 = dma.hbm_to_vmem [thread:$0]  %s8201_s11, 32, %s143_s24, [#allocation18]  }
  0x65   :  { %s6874_s29 = scalar_lea.hbm %s8204_s14, 1024 }
  0x66   :  { %p6875_p12 = scmp.ne.s32.totalorder %s8204_s14, %s6874_s29  ;;  %p6878_p13 = scmp.lt.u32.totalorder %s6874_s29, %s8204_s14 }
  0x68   :  { %p6880_p0 = pnand %p6878_p13, %p6875_p12 }
  0x6a   :  { %6883 = shalt.err (!%p6880_p0)
}
  0x6b   :  { %s6884_s27 = scalar_lea.vmem %s7299_s30, 1024  ;;  %p6889_p2 = scmp.lt.s32.totalorder %s7299_s30, %s7299_s30 }
  0x6c   :  { %p6885_p1 = scmp.ne.s32.totalorder %s7299_s30, %s6884_s27  ;;  %p6890_p3 = scmp.lt.s32.totalorder %s6884_s27, %s6884_s27 }
  0x6e   :  { %p6891_p4 = por %p6890_p3, %p6889_p2 }
  0x70   :  { %p6892_p5 = pnand %p6891_p4, %p6885_p1 }
  0x72   :  { %6895 = shalt.err (!%p6892_p5)
}
  0x73   :  { %169 = dma.hbm_to_vmem [thread:$0]  %s8204_s14, 1024, %s7299_s30, [#allocation21], %s7114_s25, %s7114_s25, %s7115_s26  }
  0x74   :  { %s7120_s0 = smov [#allocation2]   ;;  %s7121_s18 = smov [#allocation7]  }
  0x75   :  { %s37_s20 = sshll.u32 %s7120_s0, 4  ;;  %s61_s21 = sshll.u32 %s7121_s18, 4  ;;  %s38_s20 = int_to_ptr.vmem [resolvable:$true] %s37_s20  ;;  %s7333_s21 = int_to_ptr.vmem [resolvable:$true] %s61_s21 }
  0x76   :  { %s8218_s22 = sld [smem:[#allocation35_spill]] }
  0x7c   :  { %s6896_s2 = scalar_lea.hbm %s8218_s22, 256 }
  0x7d   :  { %p6897_p6 = scmp.ne.s32.totalorder %s8218_s22, %s6896_s2  ;;  %p6900_p7 = scmp.lt.u32.totalorder %s6896_s2, %s8218_s22 }
  0x7f   :  { %p6902_p8 = pnand %p6900_p7, %p6897_p6 }
  0x81   :  { %6905 = shalt.err (!%p6902_p8)
}
  0x82   :  { %s6906_s14 = scalar_lea.vmem %s38_s20, 256  ;;  %p6911_p10 = scmp.lt.s32.totalorder %s38_s20, %s38_s20 }
  0x83   :  { %p6907_p9 = scmp.ne.s32.totalorder %s38_s20, %s6906_s14  ;;  %p6912_p11 = scmp.lt.s32.totalorder %s6906_s14, %s6906_s14 }
  0x85   :  { %p6913_p12 = por %p6912_p11, %p6911_p10 }
  0x87   :  { %p6914_p13 = pnand %p6913_p12, %p6907_p9 }
  0x89   :  { %6917 = shalt.err (!%p6914_p13)
}
  0x8a   :  { %43 = dma.hbm_to_vmem [thread:$0]  %s8218_s22, 256, %s38_s20, [#allocation3], %s7114_s25, %s7114_s25, %s7115_s26  }
  0x8b   :  { %s8219_s11 = sld [smem:[#allocation37_spill]] }
  0x91   :  { %s6918_s24 = scalar_lea.hbm %s8219_s11, 256 }
  0x92   :  { %p6919_p0 = scmp.ne.s32.totalorder %s8219_s11, %s6918_s24  ;;  %p6922_p1 = scmp.lt.u32.totalorder %s6918_s24, %s8219_s11 }
  0x94   :  { %p6924_p2 = pnand %p6922_p1, %p6919_p0 }
  0x96   :  { %6927 = shalt.err (!%p6924_p2)
}
  0x97   :  { %s6928_s2 = scalar_lea.vmem %s7333_s21, 256  ;;  %p6933_p4 = scmp.lt.s32.totalorder %s7333_s21, %s7333_s21 }
  0x98   :  { %p6929_p3 = scmp.ne.s32.totalorder %s7333_s21, %s6928_s2  ;;  %p6934_p5 = scmp.lt.s32.totalorder %s6928_s2, %s6928_s2 }
  0x9a   :  { %p6935_p6 = por %p6934_p5, %p6933_p4 }
  0x9c   :  { %p6936_p7 = pnand %p6935_p6, %p6929_p3 }
  0x9e   :  { %6939 = shalt.err (!%p6936_p7)
}
  0x9f   :  { %67 = dma.hbm_to_vmem [thread:$0]  %s8219_s11, 256, %s7333_s21, [#allocation6], %s7114_s25, %s7114_s25, %s7115_s26  }
  0xa0   :  { %s7122_s5 = smov [#allocation10]   ;;  %s7123_s23 = smov [#allocation13]  }
  0xa1   :  { %s86_s29 = sshll.u32 %s7122_s5, 4  ;;  %s108_s3 = sshll.u32 %s7123_s23, 4  ;;  %s87_s29 = int_to_ptr.vmem [resolvable:$true] %s86_s29  ;;  %s109_s3 = int_to_ptr.vmem [resolvable:$true] %s108_s3 }
  0xa2   :  { %s6940_s28 = scalar_lea.hbm %s8194_s4, 128 }
  0xa3   :  { %p6941_p8 = scmp.ne.s32.totalorder %s8194_s4, %s6940_s28  ;;  %p6944_p9 = scmp.lt.u32.totalorder %s6940_s28, %s8194_s4 }
  0xa5   :  { %p6946_p10 = pnand %p6944_p9, %p6941_p8 }
  0xa7   :  { %6949 = shalt.err (!%p6946_p10)
}
  0xa8   :  { %s6950_s21 = scalar_lea.vmem %s87_s29, 128  ;;  %p6955_p12 = scmp.lt.s32.totalorder %s87_s29, %s87_s29 }
  0xa9   :  { %p6951_p11 = scmp.ne.s32.totalorder %s87_s29, %s6950_s21  ;;  %p6956_p13 = scmp.lt.s32.totalorder %s6950_s21, %s6950_s21 }
  0xab   :  { %p6957_p0 = por %p6956_p13, %p6955_p12 }
  0xad   :  { %p6958_p1 = pnand %p6957_p0, %p6951_p11 }
  0xaf   :  { %6961 = shalt.err (!%p6958_p1)
}
  0xb0   :  { %89 = dma.hbm_to_vmem [thread:$0]  %s8194_s4, 128, %s87_s29, [#allocation9]  }
  0xb1   :  { %s6962_s2 = scalar_lea.hbm %s8197_s7, 32 }
  0xb2   :  { %p6963_p2 = scmp.ne.s32.totalorder %s8197_s7, %s6962_s2  ;;  %p6966_p3 = scmp.lt.u32.totalorder %s6962_s2, %s8197_s7 }
  0xb4   :  { %p6968_p4 = pnand %p6966_p3, %p6963_p2 }
  0xb6   :  { %6971 = shalt.err (!%p6968_p4)
}
  0xb7   :  { %s6972_s14 = scalar_lea.vmem %s109_s3, 32  ;;  %p6977_p6 = scmp.lt.s32.totalorder %s109_s3, %s109_s3 }
  0xb8   :  { %p6973_p5 = scmp.ne.s32.totalorder %s109_s3, %s6972_s14  ;;  %p6978_p7 = scmp.lt.s32.totalorder %s6972_s14, %s6972_s14 }
  0xba   :  { %p6979_p8 = por %p6978_p7, %p6977_p6 }
  0xbc   :  { %p6980_p9 = pnand %p6979_p8, %p6973_p5 }
  0xbe   :  { %6983 = shalt.err (!%p6980_p9)
}
  0xbf   :  { %111 = dma.hbm_to_vmem [thread:$0]  %s8197_s7, 32, %s109_s3, [#allocation12]  }
  0xc0   :  { %s7124_s30 = smov [#allocation16]   ;;  %s7125_s1 = smov [#allocation19]  }
  0xc1   :  { %s129_s28 = sshll.u32 %s7124_s30, 4  ;;  %s154_s27 = sshll.u32 %s7125_s1, 4  ;;  %s130_s28 = int_to_ptr.vmem [resolvable:$true] %s129_s28  ;;  %s155_s27 = int_to_ptr.vmem [resolvable:$true] %s154_s27 }
  0xc2   :  { %s6984_s21 = scalar_lea.hbm %s8200_s10, 1024 }
  0xc3   :  { %p6985_p10 = scmp.ne.s32.totalorder %s8200_s10, %s6984_s21  ;;  %p6988_p11 = scmp.lt.u32.totalorder %s6984_s21, %s8200_s10 }
  0xc5   :  { %p6990_p12 = pnand %p6988_p11, %p6985_p10 }
  0xc7   :  { %6993 = shalt.err (!%p6990_p12)
}
  0xc8   :  { %s6994_s7 = scalar_lea.vmem %s130_s28, 1024  ;;  %p6999_p0 = scmp.lt.s32.totalorder %s130_s28, %s130_s28 }
  0xc9   :  { %p6995_p13 = scmp.ne.s32.totalorder %s130_s28, %s6994_s7  ;;  %p7000_p1 = scmp.lt.s32.totalorder %s6994_s7, %s6994_s7 }
  0xcb   :  { %p7001_p2 = por %p7000_p1, %p6999_p0 }
  0xcd   :  { %p7002_p3 = pnand %p7001_p2, %p6995_p13 }
  0xcf   :  { %7005 = shalt.err (!%p7002_p3)
}
  0xd0   :  { %135 = dma.hbm_to_vmem [thread:$0]  %s8200_s10, 1024, %s130_s28, [#allocation15], %s7114_s25, %s7114_s25, %s7115_s26  }
  0xd1   :  { %s7006_s5 = scalar_lea.hbm %s8203_s13, 64 }
  0xd2   :  { %p7007_p4 = scmp.ne.s32.totalorder %s8203_s13, %s7006_s5  ;;  %p7010_p5 = scmp.lt.u32.totalorder %s7006_s5, %s8203_s13 }
  0xd4   :  { %p7012_p6 = pnand %p7010_p5, %p7007_p4 }
  0xd6   :  { %7015 = shalt.err (!%p7012_p6)
}
  0xd7   :  { %s7016_s30 = scalar_lea.vmem %s155_s27, 64  ;;  %p7021_p8 = scmp.lt.s32.totalorder %s155_s27, %s155_s27 }
  0xd8   :  { %p7017_p7 = scmp.ne.s32.totalorder %s155_s27, %s7016_s30  ;;  %p7022_p9 = scmp.lt.s32.totalorder %s7016_s30, %s7016_s30 }
  0xda   :  { %p7023_p10 = por %p7022_p9, %p7021_p8 }
  0xdc   :  { %p7024_p11 = pnand %p7023_p10, %p7017_p7 }
  0xde   :  { %7027 = shalt.err (!%p7024_p11)
}
  0xdf   :  { %157 = dma.hbm_to_vmem [thread:$0]  %s8203_s13, 64, %s155_s27, [#allocation18]  }
  0xe0   :  { %s7126_s1 = smov [#allocation22]   ;;  %s7127_s0 = smov [#allocation23]  }
  0xe1   :  { %s176_s24 = sshll.u32 %s7126_s1, 4  ;;  %s188_s21 = sshll.u32 %s7127_s0, 4  ;;  %s177_s24 = int_to_ptr.vmem [resolvable:$true] %s176_s24  ;;  %s189_s21 = int_to_ptr.vmem [resolvable:$true] %s188_s21 }
  0xe2   :  { %s7028_s9 = scalar_lea.hbm %s8205_s15, 32 }
  0xe3   :  { %p7029_p12 = scmp.ne.s32.totalorder %s8205_s15, %s7028_s9  ;;  %p7032_p13 = scmp.lt.u32.totalorder %s7028_s9, %s8205_s15 }
  0xe5   :  { %p7034_p0 = pnand %p7032_p13, %p7029_p12 }
  0xe7   :  { %7037 = shalt.err (!%p7034_p0)
}
  0xe8   :  { %s7038_s13 = scalar_lea.vmem %s177_s24, 32  ;;  %p7043_p2 = scmp.lt.s32.totalorder %s177_s24, %s177_s24 }
  0xe9   :  { %p7039_p1 = scmp.ne.s32.totalorder %s177_s24, %s7038_s13  ;;  %p7044_p3 = scmp.lt.s32.totalorder %s7038_s13, %s7038_s13 }
  0xeb   :  { %p7045_p4 = por %p7044_p3, %p7043_p2 }
  0xed   :  { %p7046_p5 = pnand %p7045_p4, %p7039_p1 }
  0xef   :  { %7049 = shalt.err (!%p7046_p5)
}
  0xf0   :  { %179 = dma.hbm_to_vmem [thread:$0]  %s8205_s15, 32, %s177_s24, [#allocation21]  }
  0xf1   :  { %s7050_s23 = scalar_lea.hbm %s8207_s17, 32 }
  0xf2   :  { %p7051_p6 = scmp.ne.s32.totalorder %s8207_s17, %s7050_s23  ;;  %p7054_p7 = scmp.lt.u32.totalorder %s7050_s23, %s8207_s17 }
  0xf4   :  { %p7056_p8 = pnand %p7054_p7, %p7051_p6 }
  0xf6   :  { %7059 = shalt.err (!%p7056_p8)
}
  0xf7   :  { %s7060_s10 = scalar_lea.vmem %s189_s21, 32  ;;  %p7065_p10 = scmp.lt.s32.totalorder %s189_s21, %s189_s21 }
  0xf8   :  { %p7061_p9 = scmp.ne.s32.totalorder %s189_s21, %s7060_s10  ;;  %p7066_p11 = scmp.lt.s32.totalorder %s7060_s10, %s7060_s10 }
  0xfa   :  { %p7067_p12 = por %p7066_p11, %p7065_p10 }
  0xfc   :  { %p7068_p13 = pnand %p7067_p12, %p7061_p9 }
  0xfe   :  { %7071 = shalt.err (!%p7068_p13)
}
  0xff   :  { %191 = dma.hbm_to_vmem [thread:$0]  %s8207_s17, 32, %s189_s21, [#allocation24]  }
 0x100   :  { %7094 = dma.done.wait [#allocation3], 256  }
 0x101   :  { %7095 = vsyncadd [#allocation3], 4294967040 }
 0x102   :  { %7096 = dma.done.wait [#allocation6], 512  }
 0x103   :  { %7097 = vsyncadd [#allocation6], 4294966784 }
 0x104   :  { %7098 = dma.done.wait [#allocation9], 384  }
 0x105   :  { %7099 = vsyncadd [#allocation9], 4294966912 }
 0x106   :  { %7100 = dma.done.wait [#allocation12], 160  }
 0x107   :  { %7101 = vsyncadd [#allocation12], 4294967136 }
 0x108   :  { %7102 = dma.done.wait [#allocation15], 1056  }
 0x109   :  { %7103 = vsyncadd [#allocation15], 4294966240 }
 0x10a   :  { %7104 = dma.done.wait [#allocation18], 96  }
 0x10b   :  { %7105 = vsyncadd [#allocation18], 4294967200 }
 0x10c   :  { %7106 = dma.done.wait [#allocation21], 1056  }
 0x10d   :  { %7107 = vsyncadd [#allocation21], 4294966240 }
 0x10e   :  { %7108 = dma.done.wait [#allocation24], 32  }
 0x10f   :  { %7109 = vsyncadd [#allocation24], 4294967264  ;;  %vm265_vm0 = vcmask 261120   ;;  %v7445_v0 = vld [vmem:[#allocation2] sm:$0xff]  ;;  %v7447_v1 = vld [vmem:[#allocation2 + $0x8] sm:$0xff]  ;;  %vm244_vm5 = vcmask 64512  }
 0x110   :  { %v266_v2 = vsel %vm265_vm0, %v7445_v0, 0.0  ;;  %v269_v3 = vsel %vm265_vm0, %v7447_v1, 0.0  ;;  %v320_v14 = vld [vmem:[%s8196_s6] sm:$0xff]  ;;  %v321_v15 = vld [vmem:[%s8196_s6 + $0x8] sm:$0xff]  ;;  %v322_v16 = vld [vmem:[%s8196_s6 + $0x10] sm:$0xff]  ;;  %s7128_s19 = smov 88  }
 0x111   :  { %267 = vadd.xlane.f32.xlu0 %v266_v2  ;;  %v6109_v17 = vpack.c.bf16 %v321_v15, %v320_v14  ;;  %v323_v18 = vld [vmem:[%s8196_s6 + $0x18] sm:$0xff]  ;;  %v5315_v36 = vld [vmem:[#allocation10] ss:$0 sm:$0xff]  ;;  %v5316_v39 = vld [vmem:[#allocation11] ss:$0 sm:$0xff]  ;;  %s7129_s7 = smov 96  }
 0x112   :  { %v6113_v19 = vpack.c.bf16 %v323_v18, %v322_v16  ;;  %v5317_v46 = vld [vmem:[#allocation13] ss:$0 sm:$0xff]  ;;  %s7130_s3 = smov 80   ;;  %s7131_s2 = smov 120   ;;  %v239_v53 = vld [vmem:[#allocation7 + $0x8] sm:$0xff]  ;;  %v7135_v55 = vmov 0.0   ;;  %vm7492_vm7 = vmpackc.low %vm244_vm5, %vm244_vm5 }
 0x113   :  { %6110 = vmatprep.subr.bf16.mxu1 %v6109_v17  ;;  %s7132_s13 = smov 72   ;;  %s7133_s27 = smov 112   ;;  %vm241_vm6 = vcmp.eq.f32.partialorder %v239_v53, 0.0  ;;  %v238_v18 = vld [vmem:[#allocation7] sm:$0xff]  ;;  %vm789_vm9 = vcmask 130048   ;;  %vm1254_vm10 = vcmask 195584  }
 0x114   :  { %6112 = vmatpush3.bf16.msra.mxu1 %v6109_v17  ;;  %s7134_s20 = smov 104   ;;  %v243_v56 = vsel %vm241_vm6, -1e+09, %v7135_v55  ;;  %vm240_vm8 = vcmp.eq.f32.partialorder %v238_v18, 0.0  ;;  %s7136_s22 = smov 64  }
 0x115   :  { %270 = vadd.xlane.f32.xlu0 %v269_v3  ;;  %6114 = vmatprep.subr.bf16.mxu1 %v6113_v19  ;;  %s7137_s5 = smov 48   ;;  %s7138_s23 = smov 56  }
 0x116   :  { %s7139_s14 = smov 40   ;;  %s7140_s24 = smov 16  }
 0x117   :  { %s7141_s0 = smov 24  }
 0x118   :  { %6116 = vmatpush3.bf16.msra.mxu1 %v6113_v19 }
 0x19e   :  { %v268_v4 = vpop.xlane.xlu0 %267 }
 0x19f   :  { %v273_v5 = vmul.f32 0.03125, %v268_v4 }
 0x1a1   :  { %v275_v6 = vsub.f32 %v7445_v0, %v273_v5 }
 0x1a2   :  { %v271_v7 = vpop.xlane.xlu0 %270 }
 0x1a3   :  { %v274_v8 = vmul.f32 0.03125, %v271_v7  ;;  %v277_v9 = vmul.f32 %v275_v6, %v275_v6  ;;  %v292_v37 = vmul.f32 %v5315_v36, %v275_v6 }
 0x1a5   :  { %v276_v10 = vsub.f32 %v7447_v1, %v274_v8  ;;  %v279_v11 = vsel %vm265_vm0, %v277_v9, 0.0 }
 0x1a6   :  { %280 = vadd.xlane.f32.xlu1 %v279_v11 }
 0x1a7   :  { %v278_v12 = vmul.f32 %v276_v10, %v276_v10  ;;  %v293_v41 = vmul.f32 %v5315_v36, %v276_v10 }
 0x1a9   :  { %v282_v13 = vsel %vm265_vm0, %v278_v12, 0.0 }
 0x1aa   :  { %283 = vadd.xlane.f32.xlu1 %v282_v13 }
 0x233   :  { %v281_v20 = vpop.xlane.xlu1 %280 }
 0x234   :  { %v286_v21 = vmul.f32 0.032258064, %v281_v20  ;;  %v242_v20 = vsel %vm240_vm8, -1e+09, %v7135_v55  ;;  %vm2661_vm8 = vcmask 523264  }
 0x236   :  { %6578 = vrsqrt.f32 %v286_v21  ;;  %vm296_vm1 = vcmp.eq.f32.partialorder %v286_v21, inf  ;;  %v299_v26 = vand.u32 2147483648, %v286_v21  ;;  %vm298_vm2 = vcmp.eq.f32.partialorder %v286_v21, 0.0 }
 0x237   :  { %v284_v22 = vpop.xlane.xlu1 %283 }
 0x238   :  { %v287_v23 = vmul.f32 0.032258064, %v284_v22  ;;  %v7524_v22 = vsel %vm244_vm5, %v242_v20, -1e+09 }
 0x23a   :  { %6580 = vrsqrt.f32 %v287_v23  ;;  %vm303_vm3 = vcmp.eq.f32.partialorder %v287_v23, inf  ;;  %v306_v32 = vand.u32 2147483648, %v287_v23  ;;  %vm305_vm4 = vcmp.eq.f32.partialorder %v287_v23, 0.0 }
 0x240   :  { %v6579_v24 = vpop.eup %6578 }
 0x241   :  { %v295_v25 = vmul.f32 %v6579_v24, %v286_v21 }
 0x243   :  { %v297_v27 = vsel %vm296_vm1, %v286_v21, %v295_v25 }
 0x244   :  { %v6581_v28 = vpop.eup %6580  ;;  %v300_v29 = vsel %vm298_vm2, %v299_v26, %v297_v27 }
 0x245   :  { %v302_v30 = vmul.f32 %v6581_v28, %v287_v23  ;;  %v308_v31 = vadd.f32 1e-06, %v300_v29 }
 0x247   :  { %v304_v33 = vsel %vm303_vm3, %v287_v23, %v302_v30  ;;  %6582 = vrcp.f32 %v308_v31 }
 0x248   :  { %v307_v34 = vsel %vm305_vm4, %v306_v32, %v304_v33 }
 0x249   :  { %v309_v35 = vadd.f32 1e-06, %v307_v34 }
 0x24b   :  { %6584 = vrcp.f32 %v309_v35 }
 0x251   :  { %v6583_v38 = vpop.eup %6582 }
 0x252   :  { %v311_v40 = vmul.f32 %v6583_v38, %v292_v37 }
 0x254   :  { %v318_v42 = vadd.f32 %v5316_v39, %v311_v40 }
 0x255   :  { %v6585_v43 = vpop.eup %6584 }
 0x256   :  { %v313_v44 = vmul.f32 %v6585_v43, %v293_v41  ;;  %5723 = vmatprep.mubr.msk.f32.mxu1 %vm265_vm0, %v318_v42 }
 0x258   :  { %v319_v45 = vadd.f32 %v5316_v39, %v313_v44 }
 0x25a   :  { %5724 = vmatmul.mubr.msk.f32.vlgmr.msra.gmra.mrb[0].mxu1 %vm265_vm0, %v319_v45 }
 0x32d   :  { %v5725_v47 = vpop.f32.mrb[0].mxu1 }
 0x32e   :  { %v407_v48 = vadd.f32 %v5725_v47, %v5317_v46  ;;  %v401_v49 = vpop.f32.mrb[1].mxu1 }
 0x32f   :  { %v402_v50 = vadd.f32 %v5317_v46, %v401_v49 }
 0x330   :  { %v411_v54 = vmul.f32 0.35355338, %v407_v48 }
 0x331   :  { %v7471_v51 = vpack.i.bf16 %v407_v48, %v402_v50  ;;  %v410_v52 = vmul.f32 0.35355338, %v402_v50 }
 0x333   :  { %6434 = vrot.lane.b32.xlu1 %v7471_v51, %s7128_s19  ;;  %6429 = vrot.lane.b32.xlu0 %v7471_v51, %s7129_s7 }
 0x334   :  { %5730 = vmatprep.mubr.msk.f32.mxu1 %vm244_vm5, %v410_v52 }
 0x337   :  { %6439 = vrot.lane.b32.xlu1 %v7471_v51, %s7130_s3  ;;  %508 = vrot.lane.b32.xlu0 %v410_v52, %s7131_s2 }
 0x33b   :  { %6444 = vrot.lane.b32.xlu1 %v7471_v51, %s7132_s13  ;;  %599 = vrot.lane.b32.xlu0 %v410_v52, %s7133_s27 }
 0x33f   :  { %510 = vrot.lane.b32.xlu1 %v411_v54, %s7131_s2  ;;  %690 = vrot.lane.b32.xlu0 %v410_v52, %s7134_s20 }
 0x343   :  { %601 = vrot.lane.b32.xlu1 %v411_v54, %s7133_s27  ;;  %247 = vrot.lane.b32.xlu0 %v243_v56, %s7115_s26 }
 0x347   :  { %692 = vrot.lane.b32.xlu1 %v411_v54, %s7134_s20 }
 0x3a5   :  { %v6435_v57 = vpop.permute.xlu1 %6434  ;;  %v6430_v58 = vpop.permute.xlu0 %6429 }
 0x3a6   :  { %v6432_v59 = vunpack.i.h.bf16 %v6430_v58  ;;  %v6431_v60 = vunpack.i.l.bf16 %v6430_v58  ;;  %v6437_v61 = vunpack.i.h.bf16 %v6435_v57  ;;  %v6436_v62 = vunpack.i.l.bf16 %v6435_v57 }
 0x3a8   :  { %v6117_v2 = vpack.c.bf16 %v6432_v59, %v6431_v60  ;;  %v6123_v3 = vpack.c.bf16 %v6437_v61, %v6436_v62 }
 0x3a9   :  { %v6440_v4 = vpop.permute.xlu1 %6439  ;;  %v509_v5 = vpop.permute.xlu0 %508 }
 0x3aa   :  { %v6442_v6 = vunpack.i.h.bf16 %v6440_v4  ;;  %v6441_v7 = vunpack.i.l.bf16 %v6440_v4  ;;  %6119 = vmatprep.subr.msk.bf16.mxu1 %vm7492_vm7, %v6117_v2  ;;  %6125 = vmatprep.subr.msk.bf16.mxu0 %vm7492_vm7, %v6123_v3 }
 0x3ab   :  { %5737 = vmatprep.mubr.msk.f32.mxu0 %vm244_vm5, %v509_v5  ;;  %6122 = vmatpush3.bf16.xpose.msk.msra.mxu1 %vm7492_vm7, %v6117_v2 }
 0x3ac   :  { %v6129_v8 = vpack.c.bf16 %v6442_v6, %v6441_v7  ;;  %6128 = vmatpush3.bf16.xpose.msk.msra.mxu0 %vm7492_vm7, %v6123_v3 }
 0x3ad   :  { %v6445_v9 = vpop.permute.xlu1 %6444  ;;  %v600_v10 = vpop.permute.xlu0 %599 }
 0x3ae   :  { %v6447_v11 = vunpack.i.h.bf16 %v6445_v9  ;;  %v6446_v12 = vunpack.i.l.bf16 %v6445_v9  ;;  %6131 = vmatprep.subr.msk.bf16.mxu1 %vm7492_vm7, %v6129_v8 }
 0x3b0   :  { %v6135_v13 = vpack.c.bf16 %v6447_v11, %v6446_v12 }
 0x3b1   :  { %v511_v14 = vpop.permute.xlu1 %510  ;;  %v691_v15 = vpop.permute.xlu0 %690 }
 0x3b2   :  { %5731 = vmatmul.mubr.msk.f32.vlgmr.msra.gmra.mrb[2].mxu1 %vm244_vm5, %v411_v54  ;;  %6137 = vmatprep.subr.msk.bf16.mxu0 %vm7492_vm7, %v6135_v13 }
 0x3b3   :  { %5738 = vmatmul.mubr.msk.f32.vlgmr.msra.gmra.mrb[0].mxu0 %vm244_vm5, %v511_v14  ;;  %6134 = vmatpush3.bf16.xpose.msk.msra.mxu1 %vm7492_vm7, %v6129_v8 }
 0x3b4   :  { %5744 = vmatprep.mubr.msk.f32.mxu1 %vm244_vm5, %v600_v10  ;;  %6140 = vmatpush3.bf16.xpose.msk.msra.mxu0 %vm7492_vm7, %v6135_v13 }
 0x3b5   :  { %5751 = vmatprep.mubr.msk.f32.mxu0 %vm244_vm5, %v691_v15  ;;  %v602_v16 = vpop.permute.xlu1 %601  ;;  %v248_v19 = vpop.permute.xlu0 %247 }
 0x3b6   :  { %v7521_v21 = vsel %vm244_vm5, -1e+09, %v248_v19 }
 0x3b9   :  { %v693_v17 = vpop.permute.xlu1 %692 }
 0x3ba   :  { %5745 = vmatmul.mubr.msk.f32.vlgmr.msra.gmra.mrb[4].mxu1 %vm244_vm5, %v602_v16 }
 0x3bb   :  { %5752 = vmatmul.mubr.msk.f32.vlgmr.msra.gmra.mrb[2].mxu0 %vm244_vm5, %v693_v17 }
 0x485   :  { %v5732_v23 = vpop.f32.mrb[2].mxu1 }
 0x486   :  { %v782_v24 = vadd.f32 %v5732_v23, %v7521_v21  ;;  %v5739_v25 = vpop.f32.mrb[0].mxu0  ;;  %v499_v26 = vpop.f32.mrb[3].mxu1 }
 0x487   :  { %v781_v27 = vadd.f32 %v499_v26, %v7524_v22  ;;  %v590_v28 = vpop.f32.mrb[1].mxu0  ;;  %v784_v29 = vadd.f32 %v5739_v25, %v7521_v21 }
 0x488   :  { %v793_v30 = vsel %vm789_vm9, %v782_v24, -inf  ;;  %v783_v32 = vadd.f32 %v590_v28, %v7524_v22 }
 0x489   :  { %794 = vmax.xlane.f32.xlu0 %v793_v30  ;;  %v790_v31 = vsel %vm789_vm9, %v781_v27, -inf  ;;  %v799_v33 = vsel %vm789_vm9, %v784_v29, -inf }
 0x48a   :  { %791 = vmax.xlane.f32.xlu1 %v790_v31  ;;  %v796_v40 = vsel %vm789_vm9, %v783_v32, -inf }
 0x48d   :  { %800 = vmax.xlane.f32.xlu0 %v799_v33  ;;  %v5746_v34 = vpop.f32.mrb[4].mxu1 }
 0x48e   :  { %v5753_v35 = vpop.f32.mrb[2].mxu0  ;;  %v681_v36 = vpop.f32.mrb[5].mxu1  ;;  %v786_v39 = vadd.f32 %v5746_v34, %v7521_v21 }
 0x48f   :  { %v7534_v37 = vadd.f32 %v681_v36, %v7524_v22  ;;  %v772_v38 = vpop.f32.mrb[3].mxu0  ;;  %v788_v43 = vadd.f32 %v5753_v35, %v7521_v21 }
 0x490   :  { %v7539_v41 = vadd.f32 %v772_v38, %v7524_v22  ;;  %v805_v44 = vsel %vm789_vm9, %v786_v39, -inf }
 0x491   :  { %797 = vmax.xlane.f32.xlu0 %v796_v40  ;;  %v802_v42 = vsel %vm789_vm9, %v7534_v37, -inf  ;;  %v811_v46 = vsel %vm789_vm9, %v788_v43, -inf }
 0x492   :  { %803 = vmax.xlane.f32.xlu1 %v802_v42  ;;  %v808_v45 = vsel %vm789_vm9, %v7539_v41, -inf }
 0x495   :  { %806 = vmax.xlane.f32.xlu0 %v805_v44 }
 0x496   :  { %809 = vmax.xlane.f32.xlu1 %v808_v45 }
 0x499   :  { %812 = vmax.xlane.f32.xlu0 %v811_v46 }
 0x4a7   :  { %6449 = vrot.lane.b32.xlu1 %v7471_v51, %s7136_s22 }
 0x516   :  { %v795_v47 = vpop.xlane.xlu0 %794 }
 0x517   :  { %v815_v48 = vsub.f32 %v782_v24, %v795_v47  ;;  %v792_v49 = vpop.xlane.xlu1 %791 }
 0x518   :  { %v814_v50 = vsub.f32 %v781_v27, %v792_v49 }
 0x519   :  { %v824_v52 = vmul.f32 1.442695, %v815_v48 }
 0x51a   :  { %v822_v53 = vmul.f32 1.442695, %v814_v50  ;;  %v801_v54 = vpop.xlane.xlu0 %800 }
 0x51b   :  { %6586 = vpow2.f32 %v824_v52  ;;  %v817_v56 = vsub.f32 %v784_v29, %v801_v54 }
 0x51c   :  { %6588 = vpow2.f32 %v822_v53 }
 0x51d   :  { %v828_v57 = vmul.f32 1.442695, %v817_v56 }
 0x51e   :  { %v798_v58 = vpop.xlane.xlu0 %797 }
 0x51f   :  { %6590 = vpow2.f32 %v828_v57  ;;  %v816_v59 = vsub.f32 %v783_v32, %v798_v58  ;;  %v804_v60 = vpop.xlane.xlu1 %803 }
 0x520   :  { %v818_v26 = vsub.f32 %v7534_v37, %v804_v60 }
 0x521   :  { %v826_v61 = vmul.f32 1.442695, %v816_v59 }
 0x522   :  { %v807_v62 = vpop.xlane.xlu0 %806  ;;  %v830_v27 = vmul.f32 1.442695, %v818_v26 }
 0x523   :  { %6592 = vpow2.f32 %v826_v61  ;;  %v819_v2 = vsub.f32 %v786_v39, %v807_v62  ;;  %v810_v3 = vpop.xlane.xlu1 %809 }
 0x524   :  { %v820_v28 = vsub.f32 %v7539_v41, %v810_v3 }
 0x525   :  { %v7550_v4 = vpop.eup %6586  ;;  %v832_v5 = vmul.f32 1.442695, %v819_v2 }
 0x526   :  { %v6589_v6 = vpop.eup %6588  ;;  %v813_v7 = vpop.xlane.xlu0 %812  ;;  %v841_v8 = vsel %vm789_vm9, %v7550_v4, 0.0  ;;  %v834_v29 = vmul.f32 1.442695, %v820_v28 }
 0x527   :  { %6594 = vpow2.f32 %v832_v5  ;;  %v821_v9 = vsub.f32 %v788_v43, %v813_v7  ;;  %842 = vadd.xlane.f32.xlu0 %v841_v8  ;;  %v6450_v10 = vpop.permute.xlu1 %6449  ;;  %v838_v11 = vsel %vm789_vm9, %v6589_v6, 0.0 }
 0x528   :  { %v6452_v12 = vunpack.i.h.bf16 %v6450_v10  ;;  %v6451_v13 = vunpack.i.l.bf16 %v6450_v10  ;;  %839 = vadd.xlane.f32.xlu1 %v838_v11 }
 0x529   :  { %v7555_v14 = vpop.eup %6590  ;;  %v836_v15 = vmul.f32 1.442695, %v821_v9 }
 0x52a   :  { %v847_v16 = vsel %vm789_vm9, %v7555_v14, 0.0  ;;  %v6141_v17 = vpack.c.bf16 %v6452_v12, %v6451_v13  ;;  %v412_v12 = vld [vmem:[%s8202_s12] sm:$0xff]  ;;  %v413_v13 = vld [vmem:[%s8202_s12 + $0x8] sm:$0xff] }
 0x52b   :  { %6596 = vpow2.f32 %v836_v15  ;;  %848 = vadd.xlane.f32.xlu0 %v847_v16 }
 0x52c   :  { %6142 = vmatprep.subr.bf16.mxu1 %v6141_v17  ;;  %6598 = vpow2.f32 %v830_v27 }
 0x52d   :  { %v6593_v18 = vpop.eup %6592  ;;  %6144 = vmatpush3.bf16.msra.mxu1 %v6141_v17  ;;  %6600 = vpow2.f32 %v834_v29  ;;  %v414_v17 = vld [vmem:[%s8202_s12 + $0x10] sm:$0xff] }
 0x52e   :  { %v844_v19 = vsel %vm789_vm9, %v6593_v18, 0.0 }
 0x52f   :  { %845 = vadd.xlane.f32.xlu1 %v844_v19 }
 0x531   :  { %v7560_v20 = vpop.eup %6594 }
 0x532   :  { %v853_v23 = vsel %vm789_vm9, %v7560_v20, 0.0 }
 0x533   :  { %854 = vadd.xlane.f32.xlu0 %v853_v23 }
 0x535   :  { %v7564_v24 = vpop.eup %6596 }
 0x536   :  { %v859_v25 = vsel %vm789_vm9, %v7564_v24, 0.0  ;;  %v6599_v30 = vpop.eup %6598 }
 0x537   :  { %860 = vadd.xlane.f32.xlu0 %v859_v25  ;;  %v850_v31 = vsel %vm789_vm9, %v6599_v30, 0.0  ;;  %v6601_v32 = vpop.eup %6600 }
 0x538   :  { %v856_v33 = vsel %vm789_vm9, %v6601_v32, 0.0 }
 0x540   :  { %6459 = vrot.lane.b32.xlu1 %v7471_v51, %s7137_s5 }
 0x54d   :  { %6454 = vrot.lane.b32.xlu0 %v7471_v51, %s7138_s23 }
 0x564   :  { %851 = vadd.xlane.f32.xlu1 %v850_v31 }
 0x568   :  { %857 = vadd.xlane.f32.xlu1 %v856_v33 }
 0x579   :  { %6464 = vrot.lane.b32.xlu1 %v7471_v51, %s7139_s14 }
 0x5b4   :  { %v843_v34 = vpop.xlane.xlu0 %842 }
 0x5b5   :  { %6602 = vrcp.f32 %v843_v34  ;;  %v840_v35 = vpop.xlane.xlu1 %839 }
 0x5b6   :  { %6604 = vrcp.f32 %v840_v35 }
 0x5b8   :  { %v849_v36 = vpop.xlane.xlu0 %848 }
 0x5bc   :  { %v846_v37 = vpop.xlane.xlu1 %845 }
 0x5bd   :  { %6606 = vrcp.f32 %v846_v37 }
 0x5be   :  { %6608 = vrcp.f32 %v849_v36 }
 0x5bf   :  { %v6603_v38 = vpop.eup %6602 }
 0x5c0   :  { %v6605_v39 = vpop.eup %6604  ;;  %v855_v40 = vpop.xlane.xlu0 %854  ;;  %v865_v45 = vmul.f32 %v6603_v38, %v7550_v4  ;;  %v5344_v38 = vld [vmem:[#allocation19] ss:$0 sm:$0xff] }
 0x5c1   :  { %v6460_v41 = vpop.permute.xlu1 %6459  ;;  %v863_v44 = vmul.f32 %v6605_v39, %v6589_v6  ;;  %6610 = vrcp.f32 %v855_v40 }
 0x5c2   :  { %v6462_v42 = vunpack.i.h.bf16 %v6460_v41  ;;  %v6461_v43 = vunpack.i.l.bf16 %v6460_v41 }
 0x5c3   :  { %5758 = vmatprep.mubr.msk.f32.mxu1 %vm789_vm9, %v863_v44 }
 0x5c4   :  { %v6149_v51 = vpack.c.bf16 %v6462_v42, %v6461_v43  ;;  %v861_v46 = vpop.xlane.xlu0 %860  ;;  %5759 = vmatmul.mubr.msk.f32.vlgmr.msra.gmra.mrb[6].mxu1 %vm789_vm9, %v865_v45 }
 0x5c6   :  { %6150 = vmatprep.subr.bf16.mxu0 %v6149_v51 }
 0x5c7   :  { %6152 = vmatpush3.bf16.msra.mxu0 %v6149_v51  ;;  %v6607_v47 = vpop.eup %6606 }
 0x5c8   :  { %v6455_v48 = vpop.permute.xlu0 %6454  ;;  %v867_v49 = vmul.f32 %v6607_v47, %v6593_v18  ;;  %v6609_v54 = vpop.eup %6608  ;;  %v415_v18 = vld [vmem:[%s8202_s12 + $0x18] sm:$0xff] }
 0x5c9   :  { %v6457_v50 = vunpack.i.h.bf16 %v6455_v48  ;;  %v6456_v52 = vunpack.i.l.bf16 %v6455_v48  ;;  %v869_v56 = vmul.f32 %v6609_v54, %v7555_v14  ;;  %v6157_v14 = vpack.c.bf16 %v413_v13, %v412_v12 }
 0x5ca   :  { %5765 = vmatprep.mubr.msk.f32.mxu1 %vm789_vm9, %v867_v49  ;;  %v6161_v19 = vpack.c.bf16 %v415_v18, %v414_v17 }
 0x5cb   :  { %v6145_v53 = vpack.c.bf16 %v6457_v50, %v6456_v52  ;;  %v6611_v62 = vpop.eup %6610  ;;  %6158 = vmatprep.subr.bf16.mxu0 %v6157_v14 }
 0x5cc   :  { %v873_v5 = vmul.f32 %v6611_v62, %v7560_v20  ;;  %v236_v62 = vld [vmem:[#allocation5] sm:$0xff] }
 0x5cd   :  { %6146 = vmatprep.subr.bf16.mxu1 %v6145_v53 }
 0x5ce   :  { %6148 = vmatpush3.bf16.msra.mxu1 %v6145_v53 }
 0x5d1   :  { %5766 = vmatmul.mubr.msk.f32.vlgmr.msra.gmra.mrb[8].mxu1 %vm789_vm9, %v869_v56  ;;  %v1490_v56 = vld [vmem:[#allocation16] sm:$0xff] }
 0x5f1   :  { %v852_v57 = vpop.xlane.xlu1 %851 }
 0x5f2   :  { %6612 = vrcp.f32 %v852_v57  ;;  %v1491_v57 = vld [vmem:[#allocation16 + $0x8] sm:$0xff] }
 0x5f3   :  { %6614 = vrcp.f32 %v861_v46 }
 0x5f5   :  { %v858_v58 = vpop.xlane.xlu1 %857 }
 0x5f6   :  { %6616 = vrcp.f32 %v858_v58  ;;  %v6173_v58 = vpack.c.bf16 %v1491_v57, %v1490_v56  ;;  %v5349_v57 = vld [vmem:[#allocation14] ss:$0 sm:$0xff] }
 0x5f9   :  { %v6465_v59 = vpop.permute.xlu1 %6464 }
 0x5fa   :  { %v6467_v60 = vunpack.i.h.bf16 %v6465_v59  ;;  %v6466_v61 = vunpack.i.l.bf16 %v6465_v59  ;;  %v1492_v59 = vld [vmem:[#allocation16 + $0x10] sm:$0xff] }
 0x5fc   :  { %v6613_v2 = vpop.eup %6612  ;;  %v6153_v3 = vpack.c.bf16 %v6467_v60, %v6466_v61  ;;  %v1493_v60 = vld [vmem:[#allocation16 + $0x18] sm:$0xff] }
 0x5fd   :  { %v871_v4 = vmul.f32 %v6613_v2, %v6599_v30  ;;  %v6615_v6 = vpop.eup %6614  ;;  %v6177_v61 = vpack.c.bf16 %v1493_v60, %v1492_v59  ;;  %v1398_v2 = vld [vmem:[%s8198_s8] sm:$0xff] }
 0x5fe   :  { %6154 = vmatprep.subr.bf16.mxu1 %v6153_v3  ;;  %v877_v9 = vmul.f32 %v6615_v6, %v7564_v24  ;;  %v237_v6 = vld [vmem:[#allocation5 + $0x8] sm:$0xff] }
 0x5ff   :  { %5772 = vmatprep.mubr.msk.f32.mxu0 %vm789_vm9, %v871_v4  ;;  %6156 = vmatpush3.bf16.msra.mxu1 %v6153_v3  ;;  %v1399_v3 = vld [vmem:[%s8198_s8 + $0x8] sm:$0xff]  ;;  %v1400_v4 = vld [vmem:[%s8198_s8 + $0x10] sm:$0xff] }
 0x600   :  { %v6617_v7 = vpop.eup %6616  ;;  %5773 = vmatmul.mubr.msk.f32.vlgmr.msra.gmra.mrb[4].mxu0 %vm789_vm9, %v873_v5  ;;  %v1401_v5 = vld [vmem:[%s8198_s8 + $0x18] sm:$0xff] }
 0x601   :  { %v875_v8 = vmul.f32 %v6617_v7, %v6601_v32  ;;  %6160 = vmatpush3.bf16.msra.mxu0 %v6157_v14  ;;  %v6165_v7 = vpack.c.bf16 %v1399_v3, %v1398_v2  ;;  %v252_v3 = vld [vmem:[#allocation8 + $0x8] sm:$0xff] }
 0x602   :  { %6162 = vmatprep.subr.bf16.mxu0 %v6161_v19  ;;  %vm254_vm15 = vcmp.eq.f32.partialorder %v252_v3, 0.0 }
 0x603   :  { %5779 = vmatprep.mubr.msk.f32.mxu1 %vm789_vm9, %v875_v8  ;;  %v6169_v8 = vpack.c.bf16 %v1401_v5, %v1400_v4  ;;  %6166 = vmatprep.subr.bf16.mxu1 %v6165_v7  ;;  %v256_v4 = vsel %vm254_vm15, -1e+09, %v7135_v55 }
 0x604   :  { %5780 = vmatmul.mubr.msk.f32.vlgmr.msra.gmra.mrb[10].mxu1 %vm789_vm9, %v877_v9 }
 0x605   :  { %6164 = vmatpush3.bf16.msra.mxu0 %v6161_v19  ;;  %6168 = vmatpush3.bf16.msra.mxu1 %v6165_v7 }
 0x606   :  { %6174 = vmatprep.subr.bf16.mxu0 %v6173_v58  ;;  %6170 = vmatprep.subr.bf16.mxu1 %v6169_v8 }
 0x609   :  { %6172 = vmatpush3.bf16.msra.mxu1 %v6169_v8 }
 0x697   :  { %v5760_v10 = vpop.f32.mrb[6].mxu1 }
 0x698   :  { %v956_v11 = vpop.f32.mrb[7].mxu1 }
 0x6a4   :  { %v5767_v15 = vpop.f32.mrb[8].mxu1 }
 0x6a5   :  { %1230 = vrot.lane.b32.xlu0 %v5767_v15, %s7115_s26  ;;  %v1043_v16 = vpop.f32.mrb[9].mxu1 }
 0x6a6   :  { %1228 = vrot.lane.b32.xlu1 %v1043_v16, %s7115_s26 }
 0x6d3   :  { %v5774_v20 = vpop.f32.mrb[4].mxu0 }
 0x6d4   :  { %v1130_v23 = vpop.f32.mrb[5].mxu0  ;;  %1238 = vrot.lane.b32.xlu0 %v5774_v20, %s7140_s24 }
 0x6d5   :  { %1236 = vrot.lane.b32.xlu1 %v1130_v23, %s7140_s24 }
 0x6d7   :  { %v5781_v24 = vpop.f32.mrb[10].mxu1 }
 0x6d8   :  { %1246 = vrot.lane.b32.xlu0 %v5781_v24, %s7141_s0  ;;  %v1217_v25 = vpop.f32.mrb[11].mxu1 }
 0x6d9   :  { %1244 = vrot.lane.b32.xlu1 %v1217_v25, %s7141_s0 }
 0x717   :  { %v1231_v26 = vpop.permute.xlu0 %1230 }
 0x718   :  { %v1229_v27 = vpop.permute.xlu1 %1228  ;;  %v1251_v32 = vsel %vm244_vm5, %v5760_v10, %v1231_v26 }
 0x719   :  { %v1250_v30 = vsel %vm244_vm5, %v956_v11, %v1229_v27  ;;  %v5347_v27 = vld [vmem:[#allocation10 + $0x1] ss:$0 sm:$0xff] }
 0x746   :  { %v1239_v28 = vpop.permute.xlu0 %1238 }
 0x747   :  { %v1237_v29 = vpop.permute.xlu1 %1236  ;;  %v1253_v35 = vsel %vm789_vm9, %v1251_v32, %v1239_v28 }
 0x748   :  { %v1252_v33 = vsel %vm789_vm9, %v1250_v30, %v1237_v29  ;;  %v5348_v30 = vld [vmem:[#allocation11 + $0x1] ss:$0 sm:$0xff] }
 0x74a   :  { %v1247_v31 = vpop.permute.xlu0 %1246 }
 0x74b   :  { %v1245_v34 = vpop.permute.xlu1 %1244  ;;  %v1256_v37 = vsel %vm1254_vm10, %v1253_v35, %v1247_v31 }
 0x74c   :  { %v1255_v36 = vsel %vm1254_vm10, %v1252_v33, %v1245_v34 }
 0x74d   :  { %5790 = vmatprep.mubr.msk.f32.mxu0 %vm265_vm0, %v1255_v36 }
 0x74e   :  { %5791 = vmatmul.mubr.msk.f32.vlgmr.msra.gmra.mrb[6].mxu0 %vm265_vm0, %v1256_v37  ;;  %v5352_v37 = vld [vmem:[#allocation17] ss:$0 sm:$0xff] }
 0x74f   :  { %6176 = vmatpush3.bf16.msra.mxu0 %v6173_v58  ;;  %5812 = vmatprep.mubr.msk.f32.mxu0 %vm265_vm0, %v236_v62 }
 0x750   :  { %6178 = vmatprep.subr.bf16.mxu0 %v6177_v61 }
 0x753   :  { %6180 = vmatpush3.bf16.msra.mxu0 %v6177_v61 }
 0x756   :  { %5813 = vmatmul.mubr.msk.f32.vlgmr.msra.gmra.mrb[8].mxu0 %vm265_vm0, %v237_v6 }
 0x821   :  { %v5792_v39 = vpop.f32.mrb[6].mxu0 }
 0x822   :  { %v1339_v40 = vadd.f32 %v5792_v39, %v5344_v38  ;;  %v1333_v41 = vpop.f32.mrb[7].mxu0 }
 0x823   :  { %v1334_v42 = vadd.f32 %v5344_v38, %v1333_v41 }
 0x824   :  { %v7617_v43 = vadd.f32 %v1339_v40, %v7447_v1 }
 0x825   :  { %v7620_v44 = vadd.f32 %v1334_v42, %v7445_v0 }
 0x826   :  { %v1349_v45 = vsel %vm265_vm0, %v7617_v43, 0.0 }
 0x827   :  { %1350 = vadd.xlane.f32.xlu0 %v1349_v45  ;;  %v1346_v51 = vsel %vm265_vm0, %v7620_v44, 0.0 }
 0x828   :  { %1347 = vadd.xlane.f32.xlu1 %v1346_v51 }
 0x829   :  { %v5814_v38 = vpop.f32.mrb[8].mxu0 }
 0x82a   :  { %v1577_v39 = vadd.f32 %v5814_v38, %v5352_v37  ;;  %v1571_v40 = vpop.f32.mrb[9].mxu0 }
 0x82b   :  { %v1572_v41 = vadd.f32 %v5352_v37, %v1571_v40 }
 0x82d   :  { %v7646_v42 = vpack.i.bf16 %v1577_v39, %v1572_v41  ;;  %v6181_v45 = vpack.c.bf16 %v1577_v39, %v1572_v41 }
 0x82f   :  { %6183 = vmatprep.subr.msk.bf16.mxu1 %vm7492_vm7, %v6181_v45 }
 0x839   :  { %6469 = vrot.lane.b32.xlu1 %v7646_v42, %s7131_s2 }
 0x83d   :  { %6479 = vrot.lane.b32.xlu1 %v7646_v42, %s7134_s20 }
 0x8b4   :  { %v1351_v46 = vpop.xlane.xlu0 %1350 }
 0x8b5   :  { %v1353_v47 = vmul.f32 0.03125, %v1351_v46  ;;  %v1348_v48 = vpop.xlane.xlu1 %1347 }
 0x8b6   :  { %v1352_v49 = vmul.f32 0.03125, %v1348_v48 }
 0x8b7   :  { %v1355_v50 = vsub.f32 %v7617_v43, %v1353_v47 }
 0x8b8   :  { %v1354_v1 = vsub.f32 %v7620_v44, %v1352_v49 }
 0x8b9   :  { %v1357_v53 = vmul.f32 %v1355_v50, %v1355_v50  ;;  %v1371_v32 = vmul.f32 %v5347_v27, %v1355_v50  ;;  %v6470_v51 = vpop.permute.xlu1 %6469 }
 0x8ba   :  { %v1356_v52 = vmul.f32 %v1354_v1, %v1354_v1  ;;  %v1370_v28 = vmul.f32 %v5347_v27, %v1354_v1  ;;  %v6472_v46 = vunpack.i.h.bf16 %v6470_v51  ;;  %v6471_v47 = vunpack.i.l.bf16 %v6470_v51 }
 0x8bb   :  { %v1361_v54 = vsel %vm265_vm0, %v1357_v53, 0.0 }
 0x8bc   :  { %v1358_v0 = vsel %vm265_vm0, %v1356_v52, 0.0  ;;  %v6187_v1 = vpack.c.bf16 %v6472_v46, %v6471_v47 }
 0x8bd   :  { %1359 = vadd.xlane.f32.xlu0 %v1358_v0  ;;  %v6480_v0 = vpop.permute.xlu1 %6479 }
 0x8be   :  { %v6482_v53 = vunpack.i.h.bf16 %v6480_v0  ;;  %6189 = vmatprep.subr.msk.bf16.mxu0 %vm7492_vm7, %v6187_v1 }
 0x8bf   :  { %6192 = vmatpush3.bf16.xpose.msk.msra.mxu0 %vm7492_vm7, %v6187_v1 }
 0x8c1   :  { %1362 = vadd.xlane.f32.xlu0 %v1361_v54  ;;  %v6481_v54 = vunpack.i.l.bf16 %v6480_v0 }
 0x8c3   :  { %v6199_v56 = vpack.c.bf16 %v6482_v53, %v6481_v54 }
 0x8c5   :  { %6201 = vmatprep.subr.msk.bf16.mxu0 %vm7492_vm7, %v6199_v56 }
 0x8d7   :  { %6474 = vrot.lane.b32.xlu0 %v7646_v42, %s7133_s27 }
 0x94a   :  { %v1360_v9 = vpop.xlane.xlu0 %1359 }
 0x94b   :  { %v1364_v10 = vmul.f32 0.032258064, %v1360_v9 }
 0x94d   :  { %6618 = vrsqrt.f32 %v1364_v10  ;;  %vm1374_vm11 = vcmp.eq.f32.partialorder %v1364_v10, inf  ;;  %v1377_v15 = vand.u32 2147483648, %v1364_v10  ;;  %vm1376_vm12 = vcmp.eq.f32.partialorder %v1364_v10, 0.0 }
 0x94e   :  { %v1363_v11 = vpop.xlane.xlu0 %1362 }
 0x94f   :  { %v1365_v12 = vmul.f32 0.032258064, %v1363_v11  ;;  %v251_v11 = vld [vmem:[#allocation8] sm:$0xff] }
 0x950   :  { %vm253_vm1 = vcmp.eq.f32.partialorder %v251_v11, 0.0 }
 0x951   :  { %6620 = vrsqrt.f32 %v1365_v12  ;;  %vm1381_vm13 = vcmp.eq.f32.partialorder %v1365_v12, inf  ;;  %v1384_v23 = vand.u32 2147483648, %v1365_v12  ;;  %vm1383_vm14 = vcmp.eq.f32.partialorder %v1365_v12, 0.0 }
 0x952   :  { %v6475_v48 = vpop.permute.xlu0 %6474 }
 0x953   :  { %v6477_v49 = vunpack.i.h.bf16 %v6475_v48  ;;  %v6476_v50 = vunpack.i.l.bf16 %v6475_v48 }
 0x955   :  { %v6193_v52 = vpack.c.bf16 %v6477_v49, %v6476_v50 }
 0x957   :  { %v6619_v13 = vpop.eup %6618 }
 0x958   :  { %v1373_v14 = vmul.f32 %v6619_v13, %v1364_v10  ;;  %v255_v13 = vsel %vm253_vm1, -1e+09, %v7135_v55 }
 0x95a   :  { %v1375_v16 = vsel %vm1374_vm11, %v1364_v10, %v1373_v14 }
 0x95b   :  { %v6621_v17 = vpop.eup %6620  ;;  %v1378_v18 = vsel %vm1376_vm12, %v1377_v15, %v1375_v16  ;;  %v7691_v15 = vsel %vm244_vm5, %v255_v13, -1e+09 }
 0x95c   :  { %v1380_v19 = vmul.f32 %v6621_v17, %v1365_v12  ;;  %v1386_v20 = vadd.f32 1e-06, %v1378_v18 }
 0x95e   :  { %v1382_v24 = vsel %vm1381_vm13, %v1365_v12, %v1380_v19  ;;  %6622 = vrcp.f32 %v1386_v20 }
 0x95f   :  { %v1385_v25 = vsel %vm1383_vm14, %v1384_v23, %v1382_v24 }
 0x960   :  { %v1387_v26 = vadd.f32 1e-06, %v1385_v25 }
 0x962   :  { %6624 = vrcp.f32 %v1387_v26 }
 0x968   :  { %v6623_v29 = vpop.eup %6622 }
 0x969   :  { %v1389_v31 = vmul.f32 %v6623_v29, %v1370_v28 }
 0x96b   :  { %v1396_v33 = vadd.f32 %v5348_v30, %v1389_v31 }
 0x96c   :  { %v6625_v34 = vpop.eup %6624 }
 0x96d   :  { %v1391_v35 = vmul.f32 %v6625_v34, %v1371_v32  ;;  %5801 = vmatprep.mubr.msk.f32.mxu1 %vm265_vm0, %v1396_v33 }
 0x96f   :  { %v1397_v36 = vadd.f32 %v5348_v30, %v1391_v35 }
 0x971   :  { %5802 = vmatmul.mubr.msk.f32.vlgmr.msra.gmra.mrb[12].mxu1 %vm265_vm0, %v1397_v36 }
 0x972   :  { %6186 = vmatpush3.bf16.xpose.msk.msra.mxu1 %vm7492_vm7, %v6181_v45 }
 0x973   :  { %6195 = vmatprep.subr.msk.bf16.mxu1 %vm7492_vm7, %v6193_v52 }
 0xa44   :  { %v5803_v58 = vpop.f32.mrb[12].mxu1 }
 0xa45   :  { %v1485_v59 = vadd.f32 %v5803_v58, %v5349_v57  ;;  %v1479_v60 = vpop.f32.mrb[13].mxu1 }
 0xa46   :  { %v1480_v61 = vadd.f32 %v5349_v57, %v1479_v60 }
 0xa47   :  { %v1489_v62 = vmul.f32 0.35355338, %v1485_v59 }
 0xa48   :  { %v1488_v2 = vmul.f32 0.35355338, %v1480_v61 }
 0xa49   :  { %1675 = vrot.lane.b32.xlu1 %v1489_v62, %s7131_s2 }
 0xa4a   :  { %1764 = vrot.lane.b32.xlu0 %v1488_v2, %s7133_s27  ;;  %5819 = vmatprep.mubr.msk.f32.mxu1 %vm244_vm5, %v1488_v2 }
 0xa4b   :  { %5820 = vmatmul.mubr.msk.f32.vlgmr.msra.gmra.mrb[14].mxu1 %vm244_vm5, %v1489_v62 }
 0xa4c   :  { %6198 = vmatpush3.bf16.xpose.msk.msra.mxu1 %vm7492_vm7, %v6193_v52 }
 0xa4d   :  { %1673 = vrot.lane.b32.xlu1 %v1488_v2, %s7131_s2 }
 0xa4e   :  { %1855 = vrot.lane.b32.xlu0 %v1488_v2, %s7134_s20 }
 0xa51   :  { %1766 = vrot.lane.b32.xlu1 %v1489_v62, %s7133_s27 }
 0xa52   :  { %259 = vrot.lane.b32.xlu0 %v256_v4, %s7115_s26 }
 0xa55   :  { %1857 = vrot.lane.b32.xlu1 %v1489_v62, %s7134_s20 }
 0xabb   :  { %v1676_v5 = vpop.permute.xlu1 %1675 }
 0xabc   :  { %v1765_v6 = vpop.permute.xlu0 %1764 }
 0xabd   :  { %5833 = vmatprep.mubr.msk.f32.mxu1 %vm244_vm5, %v1765_v6 }
 0xabf   :  { %v1674_v7 = vpop.permute.xlu1 %1673 }
 0xac0   :  { %v1856_v8 = vpop.permute.xlu0 %1855  ;;  %5826 = vmatprep.mubr.msk.f32.mxu0 %vm244_vm5, %v1674_v7 }
 0xac1   :  { %5827 = vmatmul.mubr.msk.f32.vlgmr.msra.gmra.mrb[10].mxu0 %vm244_vm5, %v1676_v5 }
 0xac2   :  { %6204 = vmatpush3.bf16.xpose.msk.msra.mxu0 %vm7492_vm7, %v6199_v56  ;;  %5840 = vmatprep.mubr.msk.f32.mxu0 %vm244_vm5, %v1856_v8 }
 0xac3   :  { %v1767_v9 = vpop.permute.xlu1 %1766 }
 0xac4   :  { %5834 = vmatmul.mubr.msk.f32.vlgmr.msra.gmra.mrb[16].mxu1 %vm244_vm5, %v1767_v9  ;;  %v260_v12 = vpop.permute.xlu0 %259 }
 0xac5   :  { %v7688_v14 = vsel %vm244_vm5, -1e+09, %v260_v12 }
 0xac7   :  { %v1858_v10 = vpop.permute.xlu1 %1857 }
 0xac9   :  { %5841 = vmatmul.mubr.msk.f32.vlgmr.msra.gmra.mrb[12].mxu0 %vm244_vm5, %v1858_v10 }
 0xb1e   :  { %v5821_v16 = vpop.f32.mrb[14].mxu1 }
 0xb1f   :  { %v1947_v17 = vadd.f32 %v5821_v16, %v7688_v14  ;;  %v1664_v18 = vpop.f32.mrb[15].mxu1 }
 0xb20   :  { %v1946_v19 = vadd.f32 %v1664_v18, %v7691_v15 }
 0xb21   :  { %v1957_v20 = vsel %vm789_vm9, %v1947_v17, -inf }
 0xb22   :  { %1958 = vmax.xlane.f32.xlu0 %v1957_v20  ;;  %v1954_v23 = vsel %vm789_vm9, %v1946_v19, -inf }
 0xb23   :  { %1955 = vmax.xlane.f32.xlu1 %v1954_v23 }
 0xb94   :  { %v5828_v24 = vpop.f32.mrb[10].mxu0 }
 0xb95   :  { %v1949_v55 = vadd.f32 %v5828_v24, %v7688_v14  ;;  %v1755_v25 = vpop.f32.mrb[11].mxu0 }
 0xb96   :  { %v1948_v26 = vadd.f32 %v1755_v25, %v7691_v15 }
 0xb97   :  { %v5835_v27 = vpop.f32.mrb[16].mxu1  ;;  %v1963_v28 = vsel %vm789_vm9, %v1949_v55, -inf }
 0xb98   :  { %v1846_v29 = vpop.f32.mrb[17].mxu1  ;;  %1964 = vmax.xlane.f32.xlu0 %v1963_v28  ;;  %v1951_v31 = vadd.f32 %v5835_v27, %v7688_v14  ;;  %v1960_v33 = vsel %vm789_vm9, %v1948_v26, -inf }
 0xb99   :  { %v1950_v30 = vadd.f32 %v1846_v29, %v7691_v15 }
 0xb9a   :  { %v1969_v38 = vsel %vm789_vm9, %v1951_v31, -inf }
 0xb9b   :  { %v1966_v32 = vsel %vm789_vm9, %v1950_v30, -inf }
 0xb9c   :  { %v5842_v34 = vpop.f32.mrb[12].mxu0  ;;  %1967 = vmax.xlane.f32.xlu1 %v1966_v32  ;;  %1961 = vmax.xlane.f32.xlu0 %v1960_v33 }
 0xb9d   :  { %v1937_v35 = vpop.f32.mrb[13].mxu0  ;;  %v1953_v37 = vadd.f32 %v5842_v34, %v7688_v14 }
 0xb9e   :  { %v7705_v36 = vadd.f32 %v1937_v35, %v7691_v15 }
 0xb9f   :  { %v1975_v40 = vsel %vm789_vm9, %v1953_v37, -inf }
 0xba0   :  { %1970 = vmax.xlane.f32.xlu0 %v1969_v38  ;;  %v1972_v39 = vsel %vm789_vm9, %v7705_v36, -inf }
 0xba1   :  { %1973 = vmax.xlane.f32.xlu1 %v1972_v39 }
 0xba4   :  { %1976 = vmax.xlane.f32.xlu0 %v1975_v40 }
 0xbaf   :  { %v1959_v41 = vpop.xlane.xlu0 %1958 }
 0xbb0   :  { %v1979_v45 = vsub.f32 %v1947_v17, %v1959_v41  ;;  %v1956_v46 = vpop.xlane.xlu1 %1955 }
 0xbb1   :  { %v1978_v49 = vsub.f32 %v1946_v19, %v1956_v46 }
 0xbb2   :  { %v1988_v51 = vmul.f32 1.442695, %v1979_v45  ;;  %6484 = vrot.lane.b32.xlu1 %v7646_v42, %s7129_s7 }
 0xbb3   :  { %v1986_v50 = vmul.f32 1.442695, %v1978_v49 }
 0xbb4   :  { %6626 = vpow2.f32 %v1988_v51 }
 0xbb5   :  { %6628 = vpow2.f32 %v1986_v50 }
 0xbbe   :  { %v7714_v47 = vpop.eup %6626 }
 0xbbf   :  { %v2005_v48 = vsel %vm789_vm9, %v7714_v47, 0.0  ;;  %v6629_v1 = vpop.eup %6628 }
 0xbc0   :  { %2006 = vadd.xlane.f32.xlu0 %v2005_v48  ;;  %v2002_v52 = vsel %vm789_vm9, %v6629_v1, 0.0 }
 0xbd6   :  { %2003 = vadd.xlane.f32.xlu1 %v2002_v52 }
 0xc25   :  { %v1965_v0 = vpop.xlane.xlu0 %1964 }
 0xc26   :  { %v1981_v53 = vsub.f32 %v1949_v55, %v1965_v0 }
 0xc28   :  { %v1992_v54 = vmul.f32 1.442695, %v1981_v53 }
 0xc29   :  { %v1968_v56 = vpop.xlane.xlu1 %1967  ;;  %v1962_v57 = vpop.xlane.xlu0 %1961 }
 0xc2a   :  { %6630 = vpow2.f32 %v1992_v54  ;;  %v1982_v58 = vsub.f32 %v1950_v30, %v1968_v56  ;;  %v1980_v59 = vsub.f32 %v1948_v26, %v1962_v57 }
 0xc2c   :  { %v1990_v60 = vmul.f32 1.442695, %v1980_v59  ;;  %v1994_v61 = vmul.f32 1.442695, %v1982_v58 }
 0xc2d   :  { %v1971_v62 = vpop.xlane.xlu0 %1970 }
 0xc2e   :  { %v1983_v2 = vsub.f32 %v1951_v31, %v1971_v62  ;;  %v1974_v3 = vpop.xlane.xlu1 %1973  ;;  %6632 = vpow2.f32 %v1990_v60 }
 0xc2f   :  { %6634 = vpow2.f32 %v1994_v61  ;;  %v1984_v25 = vsub.f32 %v7705_v36, %v1974_v3 }
 0xc30   :  { %v1996_v4 = vmul.f32 1.442695, %v1983_v2 }
 0xc31   :  { %v1977_v5 = vpop.xlane.xlu0 %1976  ;;  %v1998_v27 = vmul.f32 1.442695, %v1984_v25 }
 0xc32   :  { %6636 = vpow2.f32 %v1996_v4  ;;  %v1985_v6 = vsub.f32 %v1953_v37, %v1977_v5  ;;  %v6485_v7 = vpop.permute.xlu1 %6484 }
 0xc33   :  { %v6487_v8 = vunpack.i.h.bf16 %v6485_v7  ;;  %v6486_v9 = vunpack.i.l.bf16 %v6485_v7  ;;  %v5355_v7 = vld [vmem:[%s8202_s12 + $0x20] sm:$0xff] }
 0xc34   :  { %v7719_v10 = vpop.eup %6630  ;;  %v2000_v11 = vmul.f32 1.442695, %v1985_v6 }
 0xc35   :  { %v2011_v12 = vsel %vm789_vm9, %v7719_v10, 0.0  ;;  %v6205_v13 = vpack.c.bf16 %v6487_v8, %v6486_v9  ;;  %v5356_v8 = vld [vmem:[%s8202_s12 + $0x28] sm:$0xff]  ;;  %v5357_v9 = vld [vmem:[%s8202_s12 + $0x30] sm:$0xff] }
 0xc36   :  { %6638 = vpow2.f32 %v2000_v11  ;;  %2012 = vadd.xlane.f32.xlu0 %v2011_v12  ;;  %v5358_v11 = vld [vmem:[%s8202_s12 + $0x38] sm:$0xff] }
 0xc37   :  { %6206 = vmatprep.subr.bf16.mxu1 %v6205_v13  ;;  %v6225_v12 = vpack.c.bf16 %v5358_v11, %v5357_v9 }
 0xc38   :  { %6208 = vmatpush3.bf16.msra.mxu1 %v6205_v13  ;;  %v6633_v16 = vpop.eup %6632 }
 0xc39   :  { %v2008_v17 = vsel %vm789_vm9, %v6633_v16, 0.0  ;;  %v6635_v18 = vpop.eup %6634 }
 0xc3a   :  { %2009 = vadd.xlane.f32.xlu1 %v2008_v17  ;;  %v2014_v23 = vsel %vm789_vm9, %v6635_v18, 0.0 }
 0xc3c   :  { %v6637_v19 = vpop.eup %6636 }
 0xc3d   :  { %v2017_v20 = vsel %vm789_vm9, %v6637_v19, 0.0 }
 0xc3e   :  { %2018 = vadd.xlane.f32.xlu0 %v2017_v20  ;;  %2015 = vadd.xlane.f32.xlu1 %v2014_v23 }
 0xc40   :  { %v7726_v24 = vpop.eup %6638 }
 0xc41   :  { %v2023_v55 = vsel %vm789_vm9, %v7726_v24, 0.0 }
 0xc42   :  { %2024 = vadd.xlane.f32.xlu0 %v2023_v55 }
 0xc4d   :  { %v2007_v26 = vpop.xlane.xlu0 %2006 }
 0xc4e   :  { %6640 = vrcp.f32 %v2007_v26 }
 0xc4f   :  { %6494 = vrot.lane.b32.xlu1 %v7646_v42, %s7130_s3 }
 0xc58   :  { %6489 = vrot.lane.b32.xlu0 %v7646_v42, %s7128_s19  ;;  %v6641_v29 = vpop.eup %6640 }
 0xc59   :  { %v2029_v33 = vmul.f32 %v6641_v29, %v7714_v47 }
 0xc63   :  { %v2004_v28 = vpop.xlane.xlu1 %2003 }
 0xc64   :  { %6642 = vrcp.f32 %v2004_v28 }
 0xc65   :  { %6644 = vpow2.f32 %v1998_v27 }
 0xc6e   :  { %v6643_v30 = vpop.eup %6642 }
 0xc6f   :  { %v2027_v31 = vmul.f32 %v6643_v30, %v6629_v1  ;;  %v6645_v32 = vpop.eup %6644 }
 0xc70   :  { %v2020_v34 = vsel %vm789_vm9, %v6645_v32, 0.0 }
 0xc71   :  { %5847 = vmatprep.mubr.msk.f32.mxu1 %vm789_vm9, %v2027_v31 }
 0xc72   :  { %5848 = vmatmul.mubr.msk.f32.vlgmr.msra.gmra.mrb[18].mxu1 %vm789_vm9, %v2029_v33 }
 0xc73   :  { %2021 = vadd.xlane.f32.xlu1 %v2020_v34  ;;  %v5383_v34 = vld [vmem:[#allocation19 + $0x1] ss:$0 sm:$0xff] }
 0xc84   :  { %6499 = vrot.lane.b32.xlu1 %v7646_v42, %s7132_s13 }
 0xcc3   :  { %v2013_v35 = vpop.xlane.xlu0 %2012 }
 0xcc7   :  { %v2010_v36 = vpop.xlane.xlu1 %2009 }
 0xcc8   :  { %6646 = vrcp.f32 %v2010_v36 }
 0xcc9   :  { %6648 = vrcp.f32 %v2013_v35 }
 0xccb   :  { %v2019_v37 = vpop.xlane.xlu0 %2018  ;;  %v2016_v38 = vpop.xlane.xlu1 %2015 }
 0xccc   :  { %6650 = vrcp.f32 %v2019_v37 }
 0xccd   :  { %6652 = vrcp.f32 %v2016_v38 }
 0xccf   :  { %v2025_v39 = vpop.xlane.xlu0 %2024  ;;  %v6495_v40 = vpop.permute.xlu1 %6494 }
 0xcd0   :  { %v6497_v41 = vunpack.i.h.bf16 %v6495_v40  ;;  %v6496_v45 = vunpack.i.l.bf16 %v6495_v40  ;;  %6654 = vrcp.f32 %v2025_v39 }
 0xcd2   :  { %v6647_v51 = vpop.eup %6646  ;;  %v6213_v47 = vpack.c.bf16 %v6497_v41, %v6496_v45 }
 0xcd3   :  { %v6490_v46 = vpop.permute.xlu0 %6489  ;;  %v2031_v50 = vmul.f32 %v6647_v51, %v6633_v16  ;;  %v6649_v1 = vpop.eup %6648 }
 0xcd4   :  { %v6492_v48 = vunpack.i.h.bf16 %v6490_v46  ;;  %v6491_v49 = vunpack.i.l.bf16 %v6490_v46  ;;  %6214 = vmatprep.subr.bf16.mxu0 %v6213_v47  ;;  %v2033_v56 = vmul.f32 %v6649_v1, %v7719_v10  ;;  %v6221_v10 = vpack.c.bf16 %v5356_v8, %v5355_v7 }
 0xcd5   :  { %5854 = vmatprep.mubr.msk.f32.mxu1 %vm789_vm9, %v2031_v50  ;;  %6216 = vmatpush3.bf16.msra.mxu0 %v6213_v47 }
 0xcd6   :  { %v6651_v42 = vpop.eup %6650  ;;  %v6209_v52 = vpack.c.bf16 %v6492_v48, %v6491_v49  ;;  %6222 = vmatprep.subr.bf16.mxu0 %v6221_v10 }
 0xcd7   :  { %v6653_v0 = vpop.eup %6652  ;;  %v2037_v53 = vmul.f32 %v6651_v42, %v6637_v19 }
 0xcd8   :  { %6210 = vmatprep.subr.bf16.mxu1 %v6209_v52  ;;  %v2035_v54 = vmul.f32 %v6653_v0, %v6635_v18  ;;  %v2562_v0 = vld [vmem:[#allocation20 + $0x8] sm:$0xff] }
 0xcd9   :  { %6212 = vmatpush3.bf16.msra.mxu1 %v6209_v52  ;;  %v2561_v52 = vld [vmem:[#allocation20] sm:$0xff] }
 0xcda   :  { %5861 = vmatprep.mubr.msk.f32.mxu0 %vm789_vm9, %v2035_v54  ;;  %v6655_v62 = vpop.eup %6654  ;;  %v6229_v54 = vpack.c.bf16 %v2562_v0, %v2561_v52 }
 0xcdb   :  { %5862 = vmatmul.mubr.msk.f32.vlgmr.msra.gmra.mrb[14].mxu0 %vm789_vm9, %v2037_v53  ;;  %v2041_v4 = vmul.f32 %v6655_v62, %v7726_v24  ;;  %v2563_v53 = vld [vmem:[#allocation20 + $0x10] sm:$0xff]  ;;  %v2656_v62 = vld [vmem:[%s8206_s16 + $0x18] sm:$0xff] }
 0xcdc   :  { %5855 = vmatmul.mubr.msk.f32.vlgmr.msra.gmra.mrb[20].mxu1 %vm789_vm9, %v2033_v56  ;;  %6224 = vmatpush3.bf16.msra.mxu0 %v6221_v10  ;;  %v2564_v56 = vld [vmem:[#allocation20 + $0x18] sm:$0xff] }
 0xcdd   :  { %6226 = vmatprep.subr.bf16.mxu0 %v6225_v12 }
 0xce0   :  { %6228 = vmatpush3.bf16.msra.mxu0 %v6225_v12 }
 0xd00   :  { %v2022_v57 = vpop.xlane.xlu1 %2021 }
 0xd01   :  { %6656 = vrcp.f32 %v2022_v57  ;;  %v6233_v57 = vpack.c.bf16 %v2564_v56, %v2563_v53 }
 0xd04   :  { %v6500_v58 = vpop.permute.xlu1 %6499 }
 0xd05   :  { %v6502_v59 = vunpack.i.h.bf16 %v6500_v58  ;;  %v6501_v60 = vunpack.i.l.bf16 %v6500_v58  ;;  %v2653_v58 = vld [vmem:[%s8206_s16] sm:$0xff] }
 0xd07   :  { %v6217_v61 = vpack.c.bf16 %v6502_v59, %v6501_v60  ;;  %v2654_v59 = vld [vmem:[%s8206_s16 + $0x8] sm:$0xff]  ;;  %v2655_v60 = vld [vmem:[%s8206_s16 + $0x10] sm:$0xff] }
 0xd09   :  { %6218 = vmatprep.subr.bf16.mxu1 %v6217_v61 }
 0xd0a   :  { %6220 = vmatpush3.bf16.msra.mxu1 %v6217_v61  ;;  %v6237_v61 = vpack.c.bf16 %v2654_v59, %v2653_v58 }
 0xd0b   :  { %v6657_v2 = vpop.eup %6656  ;;  %6230 = vmatprep.subr.bf16.mxu1 %v6229_v54 }
 0xd0c   :  { %v2039_v3 = vmul.f32 %v6657_v2, %v6645_v32  ;;  %v6241_v2 = vpack.c.bf16 %v2656_v62, %v2655_v60  ;;  %6238 = vmatprep.subr.bf16.mxu0 %v6237_v61 }
 0xd0e   :  { %5868 = vmatprep.mubr.msk.f32.mxu1 %vm789_vm9, %v2039_v3  ;;  %v2657_v3 = vld [vmem:[%s8206_s16 + $0x20] sm:$0xff] }
 0xd0f   :  { %5869 = vmatmul.mubr.msk.f32.vlgmr.msra.gmra.mrb[22].mxu1 %vm789_vm9, %v2041_v4  ;;  %v2658_v4 = vld [vmem:[%s8206_s16 + $0x28] sm:$0xff] }
 0xd10   :  { %6232 = vmatpush3.bf16.msra.mxu1 %v6229_v54 }
 0xd11   :  { %6234 = vmatprep.subr.bf16.mxu1 %v6233_v57 }
 0xd14   :  { %6236 = vmatpush3.bf16.msra.mxu1 %v6233_v57 }
 0xd45   :  { %v5849_v5 = vpop.f32.mrb[18].mxu1 }
 0xd46   :  { %v2120_v6 = vpop.f32.mrb[19].mxu1 }
 0xdae   :  { %v5863_v13 = vpop.f32.mrb[14].mxu0 }
 0xdaf   :  { %v2294_v16 = vpop.f32.mrb[15].mxu0  ;;  %v5856_v17 = vpop.f32.mrb[20].mxu1 }
 0xdb0   :  { %2394 = vrot.lane.b32.xlu0 %v5856_v17, %s7115_s26  ;;  %v2207_v18 = vpop.f32.mrb[21].mxu1 }
 0xdb1   :  { %2392 = vrot.lane.b32.xlu1 %v2207_v18, %s7115_s26 }
 0xdb4   :  { %2402 = vrot.lane.b32.xlu0 %v5863_v13, %s7140_s24 }
 0xdb5   :  { %2400 = vrot.lane.b32.xlu1 %v2294_v16, %s7140_s24 }
 0xde2   :  { %v5870_v19 = vpop.f32.mrb[22].mxu1 }
 0xde3   :  { %2410 = vrot.lane.b32.xlu0 %v5870_v19, %s7141_s0  ;;  %v2381_v20 = vpop.f32.mrb[23].mxu1 }
 0xde4   :  { %2408 = vrot.lane.b32.xlu1 %v2381_v20, %s7141_s0 }
 0xe22   :  { %v2395_v23 = vpop.permute.xlu0 %2394 }
 0xe23   :  { %v2393_v24 = vpop.permute.xlu1 %2392  ;;  %v2415_v28 = vsel %vm244_vm5, %v5849_v5, %v2395_v23  ;;  %v6245_v5 = vpack.c.bf16 %v2658_v4, %v2657_v3  ;;  %v5397_v3 = vld [vmem:[%s8196_s6 + $0x28] sm:$0xff]  ;;  %v5398_v4 = vld [vmem:[%s8196_s6 + $0x30] sm:$0xff] }
 0xe24   :  { %v2414_v26 = vsel %vm244_vm5, %v2120_v6, %v2393_v24 }
 0xe26   :  { %v2403_v55 = vpop.permute.xlu0 %2402 }
 0xe27   :  { %v2401_v25 = vpop.permute.xlu1 %2400  ;;  %v2417_v31 = vsel %vm789_vm9, %v2415_v28, %v2403_v55  ;;  %v5387_v28 = vld [vmem:[#allocation11 + $0x2] ss:$0 sm:$0xff] }
 0xe28   :  { %v2416_v29 = vsel %vm789_vm9, %v2414_v26, %v2401_v25  ;;  %v5386_v25 = vld [vmem:[#allocation10 + $0x2] ss:$0 sm:$0xff] }
 0xe55   :  { %v2411_v27 = vpop.permute.xlu0 %2410 }
 0xe56   :  { %v2409_v30 = vpop.permute.xlu1 %2408  ;;  %v2419_v33 = vsel %vm1254_vm10, %v2417_v31, %v2411_v27 }
 0xe57   :  { %v2418_v32 = vsel %vm1254_vm10, %v2416_v29, %v2409_v30 }
 0xe58   :  { %5879 = vmatprep.mubr.msk.f32.mxu0 %vm265_vm0, %v2418_v32 }
 0xe59   :  { %5880 = vmatmul.mubr.msk.f32.vlgmr.msra.gmra.mrb[16].mxu0 %vm265_vm0, %v2419_v33 }
 0xe5a   :  { %6240 = vmatpush3.bf16.msra.mxu0 %v6237_v61 }
 0xe5b   :  { %6242 = vmatprep.subr.bf16.mxu0 %v6241_v2 }
 0xe5e   :  { %6244 = vmatpush3.bf16.msra.mxu0 %v6241_v2  ;;  %v5396_v2 = vld [vmem:[%s8196_s6 + $0x20] sm:$0xff] }
 0xe5f   :  { %6246 = vmatprep.subr.bf16.mxu0 %v6245_v5 }
 0xe62   :  { %6248 = vmatpush3.bf16.msra.mxu0 %v6245_v5  ;;  %v6253_v5 = vpack.c.bf16 %v5397_v3, %v5396_v2 }
 0xe64   :  { %6254 = vmatprep.subr.bf16.mxu1 %v6253_v5 }
 0xf2c   :  { %v5881_v35 = vpop.f32.mrb[16].mxu0 }
 0xf2d   :  { %v2502_v36 = vadd.f32 %v5881_v35, %v5383_v34  ;;  %v2496_v37 = vpop.f32.mrb[17].mxu0  ;;  %v2659_v35 = vld [vmem:[%s8206_s16 + $0x30] sm:$0xff] }
 0xf2e   :  { %v2497_v38 = vadd.f32 %v5383_v34, %v2496_v37 }
 0xf2f   :  { %v7776_v39 = vadd.f32 %v2502_v36, %v7617_v43  ;;  %v2660_v36 = vld [vmem:[%s8206_s16 + $0x38] sm:$0xff] }
 0xf30   :  { %v7779_v40 = vadd.f32 %v2497_v38, %v7620_v44  ;;  %v6249_v37 = vpack.c.bf16 %v2660_v36, %v2659_v35  ;;  %v5388_v38 = vld [vmem:[#allocation22] ss:$0 sm:$0xff] }
 0xf31   :  { %v2512_v41 = vsel %vm265_vm0, %v7776_v39, 0.0 }
 0xf32   :  { %2513 = vadd.xlane.f32.xlu0 %v2512_v41  ;;  %v2509_v45 = vsel %vm265_vm0, %v7779_v40, 0.0  ;;  %6250 = vmatprep.subr.bf16.mxu0 %v6249_v37 }
 0xf33   :  { %2510 = vadd.xlane.f32.xlu1 %v2509_v45  ;;  %6252 = vmatpush3.bf16.msra.mxu0 %v6249_v37  ;;  %v5400_v37 = vld [vmem:[#allocation13 + $0x1] ss:$0 sm:$0xff] }
 0xfbf   :  { %v2514_v51 = vpop.xlane.xlu0 %2513 }
 0xfc0   :  { %v2516_v46 = vmul.f32 0.03125, %v2514_v51  ;;  %v2511_v47 = vpop.xlane.xlu1 %2510 }
 0xfc1   :  { %v2515_v48 = vmul.f32 0.03125, %v2511_v47 }
 0xfc2   :  { %v2518_v49 = vsub.f32 %v7776_v39, %v2516_v46 }
 0xfc3   :  { %v2517_v43 = vsub.f32 %v7779_v40, %v2515_v48 }
 0xfc4   :  { %v2520_v1 = vmul.f32 %v2518_v49, %v2518_v49  ;;  %v2534_v30 = vmul.f32 %v5386_v25, %v2518_v49 }
 0xfc5   :  { %v2519_v50 = vmul.f32 %v2517_v43, %v2517_v43  ;;  %v2533_v26 = vmul.f32 %v5386_v25, %v2517_v43  ;;  %v5393_v43 = vld [vmem:[#allocation23] ss:$0 sm:$0xff] }
 0xfc6   :  { %v2524_v42 = vsel %vm265_vm0, %v2520_v1, 0.0 }
 0xfc7   :  { %v2521_v44 = vsel %vm265_vm0, %v2519_v50, 0.0 }
 0xfc8   :  { %2522 = vadd.xlane.f32.xlu0 %v2521_v44 }
 0xfcc   :  { %2525 = vadd.xlane.f32.xlu0 %v2524_v42 }
0x1055   :  { %v2523_v6 = vpop.xlane.xlu0 %2522 }
0x1056   :  { %v2527_v7 = vmul.f32 0.032258064, %v2523_v6  ;;  %v5399_v6 = vld [vmem:[%s8196_s6 + $0x38] sm:$0xff] }
0x1058   :  { %6658 = vrsqrt.f32 %v2527_v7  ;;  %vm2537_vm2 = vcmp.eq.f32.partialorder %v2527_v7, inf  ;;  %v2540_v12 = vand.u32 2147483648, %v2527_v7  ;;  %vm2539_vm3 = vcmp.eq.f32.partialorder %v2527_v7, 0.0 }
0x1059   :  { %v2526_v8 = vpop.xlane.xlu0 %2525 }
0x105a   :  { %v2528_v9 = vmul.f32 0.032258064, %v2526_v8 }
0x105c   :  { %6660 = vrsqrt.f32 %v2528_v9  ;;  %vm2544_vm4 = vcmp.eq.f32.partialorder %v2528_v9, inf  ;;  %v2547_v20 = vand.u32 2147483648, %v2528_v9  ;;  %vm2546_vm6 = vcmp.eq.f32.partialorder %v2528_v9, 0.0 }
0x1062   :  { %v6659_v10 = vpop.eup %6658 }
0x1063   :  { %v2536_v11 = vmul.f32 %v6659_v10, %v2527_v7 }
0x1065   :  { %v2538_v13 = vsel %vm2537_vm2, %v2527_v7, %v2536_v11  ;;  %v6257_v7 = vpack.c.bf16 %v5399_v6, %v5398_v4 }
0x1066   :  { %v6661_v16 = vpop.eup %6660  ;;  %v2541_v17 = vsel %vm2539_vm3, %v2540_v12, %v2538_v13 }
0x1067   :  { %v2543_v18 = vmul.f32 %v6661_v16, %v2528_v9  ;;  %v2549_v19 = vadd.f32 1e-06, %v2541_v17 }
0x1069   :  { %v2545_v23 = vsel %vm2544_vm4, %v2528_v9, %v2543_v18  ;;  %6662 = vrcp.f32 %v2549_v19 }
0x106a   :  { %v2548_v24 = vsel %vm2546_vm6, %v2547_v20, %v2545_v23 }
0x106b   :  { %v2550_v55 = vadd.f32 1e-06, %v2548_v24 }
0x106d   :  { %6664 = vrcp.f32 %v2550_v55 }
0x1073   :  { %v6663_v27 = vpop.eup %6662 }
0x1074   :  { %v2552_v29 = vmul.f32 %v6663_v27, %v2533_v26  ;;  %v5394_v27 = vld [vmem:[#allocation10 + $0x3] ss:$0 sm:$0xff] }
0x1076   :  { %v2559_v31 = vadd.f32 %v5387_v28, %v2552_v29 }
0x1077   :  { %v6665_v32 = vpop.eup %6664 }
0x1078   :  { %v2554_v33 = vmul.f32 %v6665_v32, %v2534_v30  ;;  %5890 = vmatprep.mubr.msk.f32.mxu1 %vm265_vm0, %v2559_v31  ;;  %v5395_v32 = vld [vmem:[#allocation11 + $0x3] ss:$0 sm:$0xff] }
0x107a   :  { %v2560_v34 = vadd.f32 %v5387_v28, %v2554_v33 }
0x107c   :  { %5891 = vmatmul.mubr.msk.f32.vlgmr.msra.gmra.mrb[24].mxu1 %vm265_vm0, %v2560_v34 }
0x107d   :  { %6256 = vmatpush3.bf16.msra.mxu1 %v6253_v5 }
0x107e   :  { %6258 = vmatprep.subr.bf16.mxu1 %v6257_v7 }
0x1081   :  { %6260 = vmatpush3.bf16.msra.mxu1 %v6257_v7 }
0x114f   :  { %v5892_v41 = vpop.f32.mrb[24].mxu1 }
0x1150   :  { %v2648_v45 = vadd.f32 %v5892_v41, %v5388_v38  ;;  %v2642_v51 = vpop.f32.mrb[25].mxu1 }
0x1151   :  { %v2643_v46 = vadd.f32 %v5388_v38, %v2642_v51 }
0x1152   :  { %v2652_v48 = vmax.f32 %v2648_v45, 0.0 }
0x1153   :  { %v2651_v47 = vmax.f32 %v2643_v46, 0.0 }
0x1155   :  { %5909 = vmatprep.mubr.msk.f32.mxu0 %vm2661_vm8, %v2651_v47 }
0x1156   :  { %5910 = vmatmul.mubr.msk.f32.vlgmr.msra.gmra.mrb[18].mxu0 %vm2661_vm8, %v2652_v48 }
0x1229   :  { %v5911_v49 = vpop.f32.mrb[18].mxu0 }
0x122a   :  { %v2744_v50 = vadd.f32 %v5911_v49, %v7776_v39  ;;  %v2734_v44 = vpop.f32.mrb[19].mxu0 }
0x122b   :  { %v2743_v1 = vadd.f32 %v2734_v44, %v7779_v40 }
0x122c   :  { %v7819_v42 = vadd.f32 %v5393_v43, %v2744_v50 }
0x122d   :  { %v7821_v52 = vadd.f32 %v5393_v43, %v2743_v1 }
0x122e   :  { %v2757_v0 = vsel %vm265_vm0, %v7819_v42, 0.0 }
0x122f   :  { %2758 = vadd.xlane.f32.xlu0 %v2757_v0  ;;  %v2754_v53 = vsel %vm265_vm0, %v7821_v52, 0.0 }
0x1230   :  { %2755 = vadd.xlane.f32.xlu1 %v2754_v53 }
0x12bc   :  { %v2759_v54 = vpop.xlane.xlu0 %2758 }
0x12bd   :  { %v2761_v56 = vmul.f32 0.03125, %v2759_v54  ;;  %v2756_v57 = vpop.xlane.xlu1 %2755 }
0x12be   :  { %v2760_v58 = vmul.f32 0.03125, %v2756_v57 }
0x12bf   :  { %v2763_v39 = vsub.f32 %v7819_v42, %v2761_v56 }
0x12c0   :  { %v2762_v40 = vsub.f32 %v7821_v52, %v2760_v58 }
0x12c1   :  { %v2765_v59 = vmul.f32 %v2763_v39, %v2763_v39  ;;  %v2779_v28 = vmul.f32 %v5394_v27, %v2763_v39 }
0x12c2   :  { %v2764_v60 = vmul.f32 %v2762_v40, %v2762_v40  ;;  %v2778_v30 = vmul.f32 %v5394_v27, %v2762_v40 }
0x12c3   :  { %v2769_v61 = vsel %vm265_vm0, %v2765_v59, 0.0 }
0x12c4   :  { %2770 = vadd.xlane.f32.xlu0 %v2769_v61  ;;  %v2766_v62 = vsel %vm265_vm0, %v2764_v60, 0.0 }
0x12c5   :  { %2767 = vadd.xlane.f32.xlu1 %v2766_v62 }
0x1351   :  { %v2771_v8 = vpop.xlane.xlu0 %2770 }
0x1352   :  { %v2773_v9 = vmul.f32 0.032258064, %v2771_v8  ;;  %v2768_v10 = vpop.xlane.xlu1 %2767 }
0x1353   :  { %v2772_v11 = vmul.f32 0.032258064, %v2768_v10 }
0x1354   :  { %6666 = vrsqrt.f32 %v2773_v9  ;;  %vm2789_vm11 = vcmp.eq.f32.partialorder %v2773_v9, inf  ;;  %v2792_v17 = vand.u32 2147483648, %v2773_v9  ;;  %vm2791_vm12 = vcmp.eq.f32.partialorder %v2773_v9, 0.0 }
0x1355   :  { %6668 = vrsqrt.f32 %v2772_v11  ;;  %vm2782_vm13 = vcmp.eq.f32.partialorder %v2772_v11, inf  ;;  %v2785_v20 = vand.u32 2147483648, %v2772_v11  ;;  %vm2784_vm14 = vcmp.eq.f32.partialorder %v2772_v11, 0.0 }
0x135e   :  { %v6667_v12 = vpop.eup %6666 }
0x135f   :  { %v6669_v13 = vpop.eup %6668  ;;  %v2788_v16 = vmul.f32 %v6667_v12, %v2773_v9 }
0x1360   :  { %v2781_v18 = vmul.f32 %v6669_v13, %v2772_v11 }
0x1361   :  { %v2790_v19 = vsel %vm2789_vm11, %v2773_v9, %v2788_v16 }
0x1362   :  { %v2793_v23 = vsel %vm2791_vm12, %v2792_v17, %v2790_v19  ;;  %v2783_v24 = vsel %vm2782_vm13, %v2772_v11, %v2781_v18 }
0x1363   :  { %v2795_v55 = vadd.f32 1e-06, %v2793_v23  ;;  %v2786_v25 = vsel %vm2784_vm14, %v2785_v20, %v2783_v24 }
0x1364   :  { %v2794_v26 = vadd.f32 1e-06, %v2786_v25 }
0x1365   :  { %6670 = vrcp.f32 %v2795_v55 }
0x1366   :  { %6672 = vrcp.f32 %v2794_v26 }
0x136f   :  { %v6671_v29 = vpop.eup %6670 }
0x1370   :  { %v6673_v31 = vpop.eup %6672  ;;  %v2799_v33 = vmul.f32 %v6671_v29, %v2779_v28 }
0x1371   :  { %v2797_v34 = vmul.f32 %v6673_v31, %v2778_v30 }
0x1372   :  { %v2805_v36 = vadd.f32 %v5395_v32, %v2799_v33 }
0x1373   :  { %v2804_v35 = vadd.f32 %v5395_v32, %v2797_v34 }
0x1375   :  { %5920 = vmatprep.mubr.msk.f32.mxu1 %vm265_vm0, %v2804_v35 }
0x1376   :  { %5921 = vmatmul.mubr.msk.f32.vlgmr.msra.gmra.mrb[26].mxu1 %vm265_vm0, %v2805_v36 }
0x1449   :  { %v5922_v38 = vpop.f32.mrb[26].mxu1 }
0x144a   :  { %v2894_v41 = vadd.f32 %v5922_v38, %v5400_v37  ;;  %v2888_v45 = vpop.f32.mrb[27].mxu1 }
0x144b   :  { %v2889_v51 = vadd.f32 %v5400_v37, %v2888_v45 }
0x144c   :  { %v2898_v48 = vmul.f32 0.35355338, %v2894_v41 }
0x144d   :  { %v7845_v46 = vpack.i.bf16 %v2894_v41, %v2889_v51  ;;  %v2897_v47 = vmul.f32 0.35355338, %v2889_v51 }
0x144f   :  { %6509 = vrot.lane.b32.xlu0 %v7845_v46, %s7128_s19  ;;  %6504 = vrot.lane.b32.xlu1 %v7845_v46, %s7129_s7 }
0x1450   :  { %5927 = vmatprep.mubr.msk.f32.mxu1 %vm244_vm5, %v2897_v47 }
0x1453   :  { %2998 = vrot.lane.b32.xlu0 %v2898_v48, %s7131_s2  ;;  %6514 = vrot.lane.b32.xlu1 %v7845_v46, %s7130_s3 }
0x1457   :  { %3089 = vrot.lane.b32.xlu0 %v2898_v48, %s7133_s27  ;;  %6519 = vrot.lane.b32.xlu1 %v7845_v46, %s7132_s13 }
0x145b   :  { %3180 = vrot.lane.b32.xlu0 %v2898_v48, %s7134_s20  ;;  %2996 = vrot.lane.b32.xlu1 %v2897_v47, %s7131_s2 }
0x145f   :  { %3087 = vrot.lane.b32.xlu1 %v2897_v47, %s7133_s27 }
0x1463   :  { %3178 = vrot.lane.b32.xlu1 %v2897_v47, %s7134_s20 }
0x14c1   :  { %v6510_v49 = vpop.permute.xlu0 %6509  ;;  %v6505_v43 = vpop.permute.xlu1 %6504 }
0x14c2   :  { %v6512_v50 = vunpack.i.h.bf16 %v6510_v49  ;;  %v6511_v44 = vunpack.i.l.bf16 %v6510_v49  ;;  %v6507_v1 = vunpack.i.h.bf16 %v6505_v43  ;;  %v6506_v0 = vunpack.i.l.bf16 %v6505_v43 }
0x14c4   :  { %v6267_v53 = vpack.c.bf16 %v6512_v50, %v6511_v44  ;;  %v6261_v54 = vpack.c.bf16 %v6507_v1, %v6506_v0 }
0x14c5   :  { %v6515_v56 = vpop.permute.xlu1 %6514  ;;  %v2999_v59 = vpop.permute.xlu0 %2998 }
0x14c6   :  { %v6517_v57 = vunpack.i.h.bf16 %v6515_v56  ;;  %v6516_v58 = vunpack.i.l.bf16 %v6515_v56  ;;  %6263 = vmatprep.subr.msk.bf16.mxu1 %vm7492_vm7, %v6261_v54  ;;  %6269 = vmatprep.subr.msk.bf16.mxu0 %vm7492_vm7, %v6267_v53 }
0x14c7   :  { %6266 = vmatpush3.bf16.xpose.msk.msra.mxu1 %vm7492_vm7, %v6261_v54  ;;  %6272 = vmatpush3.bf16.xpose.msk.msra.mxu0 %vm7492_vm7, %v6267_v53 }
0x14c8   :  { %v6273_v39 = vpack.c.bf16 %v6517_v57, %v6516_v58 }
0x14c9   :  { %v6520_v40 = vpop.permute.xlu1 %6519  ;;  %v3090_v3 = vpop.permute.xlu0 %3089 }
0x14ca   :  { %v6522_v60 = vunpack.i.h.bf16 %v6520_v40  ;;  %v6521_v61 = vunpack.i.l.bf16 %v6520_v40  ;;  %6275 = vmatprep.subr.msk.bf16.mxu1 %vm7492_vm7, %v6273_v39 }
0x14cc   :  { %v6279_v62 = vpack.c.bf16 %v6522_v60, %v6521_v61 }
0x14cd   :  { %v2997_v2 = vpop.permute.xlu1 %2996  ;;  %v3181_v6 = vpop.permute.xlu0 %3180 }
0x14ce   :  { %5928 = vmatmul.mubr.msk.f32.vlgmr.msra.gmra.mrb[28].mxu1 %vm244_vm5, %v2898_v48  ;;  %5934 = vmatprep.mubr.msk.f32.mxu0 %vm244_vm5, %v2997_v2 }
0x14cf   :  { %6281 = vmatprep.subr.msk.bf16.mxu0 %vm7492_vm7, %v6279_v62  ;;  %5935 = vmatmul.mubr.msk.f32.vlgmr.msra.gmra.mrb[20].mxu0 %vm244_vm5, %v2999_v59 }
0x14d0   :  { %6278 = vmatpush3.bf16.xpose.msk.msra.mxu1 %vm7492_vm7, %v6273_v39  ;;  %6284 = vmatpush3.bf16.xpose.msk.msra.mxu0 %vm7492_vm7, %v6279_v62 }
0x14d1   :  { %v3088_v4 = vpop.permute.xlu1 %3087 }
0x14d2   :  { %5941 = vmatprep.mubr.msk.f32.mxu1 %vm244_vm5, %v3088_v4 }
0x14d5   :  { %v3179_v5 = vpop.permute.xlu1 %3178 }
0x14d6   :  { %5948 = vmatprep.mubr.msk.f32.mxu0 %vm244_vm5, %v3179_v5 }
0x14d7   :  { %5942 = vmatmul.mubr.msk.f32.vlgmr.msra.gmra.mrb[30].mxu1 %vm244_vm5, %v3090_v3  ;;  %5949 = vmatmul.mubr.msk.f32.vlgmr.msra.gmra.mrb[22].mxu0 %vm244_vm5, %v3181_v6 }
0x15a1   :  { %v5929_v7 = vpop.f32.mrb[28].mxu1 }
0x15a2   :  { %v3270_v8 = vadd.f32 %v5929_v7, %v7521_v21  ;;  %v2987_v9 = vpop.f32.mrb[29].mxu1  ;;  %v5936_v10 = vpop.f32.mrb[20].mxu0 }
0x15a3   :  { %v3269_v11 = vadd.f32 %v2987_v9, %v7524_v22  ;;  %v3078_v12 = vpop.f32.mrb[21].mxu0  ;;  %v3272_v13 = vadd.f32 %v5936_v10, %v7521_v21 }
0x15a4   :  { %v3280_v16 = vsel %vm789_vm9, %v3270_v8, -inf  ;;  %v3271_v18 = vadd.f32 %v3078_v12, %v7524_v22 }
0x15a5   :  { %3281 = vmax.xlane.f32.xlu0 %v3280_v16  ;;  %v3277_v17 = vsel %vm789_vm9, %v3269_v11, -inf  ;;  %v3286_v19 = vsel %vm789_vm9, %v3272_v13, -inf }
0x15a6   :  { %3278 = vmax.xlane.f32.xlu1 %v3277_v17  ;;  %v3283_v27 = vsel %vm789_vm9, %v3271_v18, -inf }
0x15a9   :  { %3287 = vmax.xlane.f32.xlu0 %v3286_v19 }
0x15aa   :  { %v5943_v20 = vpop.f32.mrb[30].mxu1  ;;  %v5950_v23 = vpop.f32.mrb[22].mxu0 }
0x15ab   :  { %v3169_v24 = vpop.f32.mrb[31].mxu1  ;;  %v3260_v55 = vpop.f32.mrb[23].mxu0  ;;  %v3274_v25 = vadd.f32 %v5943_v20, %v7521_v21  ;;  %v3276_v30 = vadd.f32 %v5950_v23, %v7521_v21 }
0x15ac   :  { %v7894_v26 = vadd.f32 %v3169_v24, %v7524_v22  ;;  %v7898_v28 = vadd.f32 %v3260_v55, %v7524_v22 }
0x15ad   :  { %3284 = vmax.xlane.f32.xlu0 %v3283_v27  ;;  %v3292_v31 = vsel %vm789_vm9, %v3274_v25, -inf  ;;  %v3298_v33 = vsel %vm789_vm9, %v3276_v30, -inf }
0x15ae   :  { %v3289_v29 = vsel %vm789_vm9, %v7894_v26, -inf  ;;  %v3295_v32 = vsel %vm789_vm9, %v7898_v28, -inf }
0x15af   :  { %3290 = vmax.xlane.f32.xlu1 %v3289_v29 }
0x15b1   :  { %3293 = vmax.xlane.f32.xlu0 %v3292_v31 }
0x15b3   :  { %3296 = vmax.xlane.f32.xlu1 %v3295_v32 }
0x15b5   :  { %3299 = vmax.xlane.f32.xlu0 %v3298_v33 }
0x15c4   :  { %6524 = vrot.lane.b32.xlu1 %v7845_v46, %s7136_s22 }
0x1632   :  { %v3282_v22 = vpop.xlane.xlu0 %3281 }
0x1633   :  { %v3302_v34 = vsub.f32 %v3270_v8, %v3282_v22  ;;  %v3279_v35 = vpop.xlane.xlu1 %3278 }
0x1634   :  { %v3301_v36 = vsub.f32 %v3269_v11, %v3279_v35 }
0x1635   :  { %v3311_v37 = vmul.f32 1.442695, %v3302_v34 }
0x1636   :  { %v3309_v38 = vmul.f32 1.442695, %v3301_v36  ;;  %v3288_v21 = vpop.xlane.xlu0 %3287 }
0x1637   :  { %6674 = vpow2.f32 %v3311_v37  ;;  %v3304_v41 = vsub.f32 %v3272_v13, %v3288_v21 }
0x1638   :  { %6676 = vpow2.f32 %v3309_v38 }
0x1639   :  { %v3315_v45 = vmul.f32 1.442695, %v3304_v41 }
0x163a   :  { %v3285_v51 = vpop.xlane.xlu0 %3284 }
0x163b   :  { %6678 = vpow2.f32 %v3315_v45  ;;  %v3303_v47 = vsub.f32 %v3271_v18, %v3285_v51 }
0x163c   :  { %v3291_v48 = vpop.xlane.xlu1 %3290 }
0x163d   :  { %v3313_v49 = vmul.f32 1.442695, %v3303_v47  ;;  %v3305_v9 = vsub.f32 %v7894_v26, %v3291_v48 }
0x163e   :  { %v3294_v43 = vpop.xlane.xlu0 %3293 }
0x163f   :  { %6680 = vpow2.f32 %v3313_v49  ;;  %v3306_v50 = vsub.f32 %v3274_v25, %v3294_v43  ;;  %v3317_v10 = vmul.f32 1.442695, %v3305_v9 }
0x1640   :  { %v3297_v44 = vpop.xlane.xlu1 %3296 }
0x1641   :  { %v6675_v1 = vpop.eup %6674  ;;  %v3319_v0 = vmul.f32 1.442695, %v3306_v50  ;;  %v3307_v11 = vsub.f32 %v7898_v28, %v3297_v44 }
0x1642   :  { %v6677_v53 = vpop.eup %6676  ;;  %v3300_v54 = vpop.xlane.xlu0 %3299  ;;  %v3328_v56 = vsel %vm789_vm9, %v6675_v1, 0.0 }
0x1643   :  { %6682 = vpow2.f32 %v3319_v0  ;;  %v3308_v57 = vsub.f32 %v3276_v30, %v3300_v54  ;;  %3329 = vadd.xlane.f32.xlu0 %v3328_v56  ;;  %v3325_v58 = vsel %vm789_vm9, %v6677_v53, 0.0  ;;  %v3321_v12 = vmul.f32 1.442695, %v3307_v11 }
0x1644   :  { %v6525_v39 = vpop.permute.xlu1 %6524  ;;  %3326 = vadd.xlane.f32.xlu1 %v3325_v58 }
0x1645   :  { %v7911_v40 = vpop.eup %6678  ;;  %v3323_v59 = vmul.f32 1.442695, %v3308_v57  ;;  %v6527_v60 = vunpack.i.h.bf16 %v6525_v39  ;;  %v6526_v61 = vunpack.i.l.bf16 %v6525_v39  ;;  %v5403_v39 = vld [vmem:[%s8202_s12 + $0x40] sm:$0xff] }
0x1646   :  { %v3334_v62 = vsel %vm789_vm9, %v7911_v40, 0.0 }
0x1647   :  { %6684 = vpow2.f32 %v3323_v59  ;;  %v6285_v2 = vpack.c.bf16 %v6527_v60, %v6526_v61  ;;  %3335 = vadd.xlane.f32.xlu0 %v3334_v62  ;;  %v5405_v62 = vld [vmem:[%s8202_s12 + $0x50] sm:$0xff] }
0x1648   :  { %6686 = vpow2.f32 %v3317_v10 }
0x1649   :  { %v6681_v3 = vpop.eup %6680  ;;  %6286 = vmatprep.subr.bf16.mxu1 %v6285_v2  ;;  %6688 = vpow2.f32 %v3321_v12 }
0x164a   :  { %6288 = vmatpush3.bf16.msra.mxu1 %v6285_v2  ;;  %v3331_v4 = vsel %vm789_vm9, %v6681_v3, 0.0  ;;  %v5406_v2 = vld [vmem:[%s8202_s12 + $0x58] sm:$0xff] }
0x164b   :  { %3332 = vadd.xlane.f32.xlu1 %v3331_v4 }
0x164d   :  { %v7916_v5 = vpop.eup %6682 }
0x164e   :  { %v3340_v6 = vsel %vm789_vm9, %v7916_v5, 0.0 }
0x164f   :  { %3341 = vadd.xlane.f32.xlu0 %v3340_v6 }
0x1651   :  { %v7920_v7 = vpop.eup %6684 }
0x1652   :  { %v3346_v8 = vsel %vm789_vm9, %v7920_v7, 0.0  ;;  %v6687_v13 = vpop.eup %6686 }
0x1653   :  { %3347 = vadd.xlane.f32.xlu0 %v3346_v8  ;;  %v3337_v16 = vsel %vm789_vm9, %v6687_v13, 0.0  ;;  %v6689_v17 = vpop.eup %6688 }
0x1654   :  { %v3343_v18 = vsel %vm789_vm9, %v6689_v17, 0.0 }
0x165c   :  { %6534 = vrot.lane.b32.xlu1 %v7845_v46, %s7137_s5 }
0x1669   :  { %6529 = vrot.lane.b32.xlu0 %v7845_v46, %s7138_s23 }
0x1680   :  { %3338 = vadd.xlane.f32.xlu1 %v3337_v16 }
0x1684   :  { %3344 = vadd.xlane.f32.xlu1 %v3343_v18 }
0x1695   :  { %6539 = vrot.lane.b32.xlu1 %v7845_v46, %s7139_s14 }
0x16d0   :  { %v3330_v19 = vpop.xlane.xlu0 %3329 }
0x16d1   :  { %6690 = vrcp.f32 %v3330_v19  ;;  %v3327_v20 = vpop.xlane.xlu1 %3326 }
0x16d2   :  { %6692 = vrcp.f32 %v3327_v20 }
0x16d4   :  { %v3336_v23 = vpop.xlane.xlu0 %3335 }
0x16d8   :  { %v3333_v24 = vpop.xlane.xlu1 %3332 }
0x16d9   :  { %6694 = vrcp.f32 %v3333_v24  ;;  %v6762_v24 = vld [vmem:[#allocation5] sm:$0xff] }
0x16da   :  { %6696 = vrcp.f32 %v3336_v23 }
0x16db   :  { %v6691_v55 = vpop.eup %6690 }
0x16dc   :  { %v6693_v25 = vpop.eup %6692  ;;  %v3342_v26 = vpop.xlane.xlu0 %3341  ;;  %v3352_v31 = vmul.f32 %v6691_v55, %v6675_v1  ;;  %v5431_v55 = vld [vmem:[#allocation19 + $0x2] ss:$0 sm:$0xff] }
0x16dd   :  { %v6535_v27 = vpop.permute.xlu1 %6534  ;;  %v3350_v30 = vmul.f32 %v6693_v25, %v6677_v53  ;;  %6698 = vrcp.f32 %v3342_v26 }
0x16de   :  { %v6537_v28 = vunpack.i.h.bf16 %v6535_v27  ;;  %v6536_v29 = vunpack.i.l.bf16 %v6535_v27 }
0x16df   :  { %5955 = vmatprep.mubr.msk.f32.mxu1 %vm789_vm9, %v3350_v30 }
0x16e0   :  { %v6293_v32 = vpack.c.bf16 %v6537_v28, %v6536_v29  ;;  %v3348_v46 = vpop.xlane.xlu0 %3347  ;;  %5956 = vmatmul.mubr.msk.f32.vlgmr.msra.gmra.mrb[32].mxu1 %vm789_vm9, %v3352_v31 }
0x16e2   :  { %6294 = vmatprep.subr.bf16.mxu0 %v6293_v32 }
0x16e3   :  { %6296 = vmatpush3.bf16.msra.mxu0 %v6293_v32  ;;  %v6695_v33 = vpop.eup %6694 }
0x16e4   :  { %v6530_v22 = vpop.permute.xlu0 %6529  ;;  %v3354_v34 = vmul.f32 %v6695_v33, %v6681_v3  ;;  %v6697_v38 = vpop.eup %6696  ;;  %v6305_v3 = vpack.c.bf16 %v5406_v2, %v5405_v62 }
0x16e5   :  { %v6532_v35 = vunpack.i.h.bf16 %v6530_v22  ;;  %v6531_v36 = vunpack.i.l.bf16 %v6530_v22  ;;  %v3356_v21 = vmul.f32 %v6697_v38, %v7911_v40  ;;  %v5404_v40 = vld [vmem:[%s8202_s12 + $0x48] sm:$0xff] }
0x16e6   :  { %5962 = vmatprep.mubr.msk.f32.mxu1 %vm789_vm9, %v3354_v34  ;;  %v6301_v59 = vpack.c.bf16 %v5404_v40, %v5403_v39 }
0x16e7   :  { %v6289_v37 = vpack.c.bf16 %v6532_v35, %v6531_v36  ;;  %v6699_v49 = vpop.eup %6698 }
0x16e8   :  { %v3360_v1 = vmul.f32 %v6699_v49, %v7916_v5  ;;  %6302 = vmatprep.subr.bf16.mxu0 %v6301_v59  ;;  %v5436_v49 = vld [vmem:[%s8198_s8 + $0x20] sm:$0xff] }
0x16e9   :  { %6290 = vmatprep.subr.bf16.mxu1 %v6289_v37 }
0x16ea   :  { %6292 = vmatpush3.bf16.msra.mxu1 %v6289_v37 }
0x16ed   :  { %5963 = vmatmul.mubr.msk.f32.vlgmr.msra.gmra.mrb[34].mxu1 %vm789_vm9, %v3356_v21  ;;  %v3978_v21 = vld [vmem:[#allocation16 + $0x20] sm:$0xff] }
0x170d   :  { %v3339_v41 = vpop.xlane.xlu1 %3338 }
0x170e   :  { %6700 = vrcp.f32 %v3339_v41  ;;  %v3979_v41 = vld [vmem:[#allocation16 + $0x28] sm:$0xff] }
0x170f   :  { %6702 = vrcp.f32 %v3348_v46 }
0x1711   :  { %v3345_v45 = vpop.xlane.xlu1 %3344 }
0x1712   :  { %6704 = vrcp.f32 %v3345_v45  ;;  %v6317_v45 = vpack.c.bf16 %v3979_v41, %v3978_v21 }
0x1715   :  { %v6540_v51 = vpop.permute.xlu1 %6539 }
0x1716   :  { %v6542_v47 = vunpack.i.h.bf16 %v6540_v51  ;;  %v6541_v48 = vunpack.i.l.bf16 %v6540_v51  ;;  %v3980_v51 = vld [vmem:[#allocation16 + $0x30] sm:$0xff] }
0x1718   :  { %v6701_v43 = vpop.eup %6700  ;;  %v6297_v50 = vpack.c.bf16 %v6542_v47, %v6541_v48  ;;  %v3981_v47 = vld [vmem:[#allocation16 + $0x38] sm:$0xff] }
0x1719   :  { %v3358_v44 = vmul.f32 %v6701_v43, %v6687_v13  ;;  %v6703_v0 = vpop.eup %6702  ;;  %v6321_v48 = vpack.c.bf16 %v3981_v47, %v3980_v51  ;;  %v5437_v43 = vld [vmem:[%s8198_s8 + $0x28] sm:$0xff] }
0x171a   :  { %6298 = vmatprep.subr.bf16.mxu1 %v6297_v50  ;;  %v3364_v56 = vmul.f32 %v6703_v0, %v7920_v7 }
0x171b   :  { %5969 = vmatprep.mubr.msk.f32.mxu0 %vm789_vm9, %v3358_v44  ;;  %6300 = vmatpush3.bf16.msra.mxu1 %v6297_v50  ;;  %v5438_v50 = vld [vmem:[%s8198_s8 + $0x30] sm:$0xff]  ;;  %v6309_v44 = vpack.c.bf16 %v5437_v43, %v5436_v49 }
0x171c   :  { %v6705_v53 = vpop.eup %6704  ;;  %5970 = vmatmul.mubr.msk.f32.vlgmr.msra.gmra.mrb[24].mxu0 %vm789_vm9, %v3360_v1  ;;  %v5439_v1 = vld [vmem:[%s8198_s8 + $0x38] sm:$0xff] }
0x171d   :  { %v3362_v54 = vmul.f32 %v6705_v53, %v6689_v17  ;;  %6304 = vmatpush3.bf16.msra.mxu0 %v6301_v59  ;;  %v6313_v0 = vpack.c.bf16 %v5439_v1, %v5438_v50  ;;  %v6763_v53 = vld [vmem:[#allocation5 + $0x8] sm:$0xff]  ;;  %6310 = vmatprep.subr.bf16.mxu1 %v6309_v44 }
0x171e   :  { %6306 = vmatprep.subr.bf16.mxu0 %v6305_v3 }
0x171f   :  { %5976 = vmatprep.mubr.msk.f32.mxu1 %vm789_vm9, %v3362_v54 }
0x1720   :  { %5977 = vmatmul.mubr.msk.f32.vlgmr.msra.gmra.mrb[36].mxu1 %vm789_vm9, %v3364_v56 }
0x1721   :  { %6308 = vmatpush3.bf16.msra.mxu0 %v6305_v3  ;;  %6312 = vmatpush3.bf16.msra.mxu1 %v6309_v44 }
0x1722   :  { %6318 = vmatprep.subr.bf16.mxu0 %v6317_v45  ;;  %6314 = vmatprep.subr.bf16.mxu1 %v6313_v0 }
0x1725   :  { %6316 = vmatpush3.bf16.msra.mxu1 %v6313_v0 }
0x17b3   :  { %v5957_v57 = vpop.f32.mrb[32].mxu1 }
0x17b4   :  { %v3443_v58 = vpop.f32.mrb[33].mxu1 }
0x17c0   :  { %v5964_v60 = vpop.f32.mrb[34].mxu1 }
0x17c1   :  { %3717 = vrot.lane.b32.xlu0 %v5964_v60, %s7115_s26  ;;  %v3530_v61 = vpop.f32.mrb[35].mxu1 }
0x17c2   :  { %3715 = vrot.lane.b32.xlu1 %v3530_v61, %s7115_s26 }
0x17ef   :  { %v5971_v4 = vpop.f32.mrb[24].mxu0 }
0x17f0   :  { %v3617_v5 = vpop.f32.mrb[25].mxu0  ;;  %3725 = vrot.lane.b32.xlu0 %v5971_v4, %s7140_s24 }
0x17f1   :  { %3723 = vrot.lane.b32.xlu1 %v3617_v5, %s7140_s24 }
0x17f3   :  { %v5978_v6 = vpop.f32.mrb[36].mxu1 }
0x17f4   :  { %3733 = vrot.lane.b32.xlu0 %v5978_v6, %s7141_s0  ;;  %v3704_v7 = vpop.f32.mrb[37].mxu1 }
0x17f5   :  { %3731 = vrot.lane.b32.xlu1 %v3704_v7, %s7141_s0 }
0x1833   :  { %v3718_v8 = vpop.permute.xlu0 %3717 }
0x1834   :  { %v3716_v9 = vpop.permute.xlu1 %3715  ;;  %v3738_v16 = vsel %vm244_vm5, %v5957_v57, %v3718_v8  ;;  %v5434_v8 = vld [vmem:[#allocation10 + $0x4] ss:$0 sm:$0xff] }
0x1835   :  { %v3737_v12 = vsel %vm244_vm5, %v3443_v58, %v3716_v9 }
0x1862   :  { %v3726_v10 = vpop.permute.xlu0 %3725 }
0x1863   :  { %v3724_v11 = vpop.permute.xlu1 %3723  ;;  %v3740_v19 = vsel %vm789_vm9, %v3738_v16, %v3726_v10 }
0x1864   :  { %v3739_v17 = vsel %vm789_vm9, %v3737_v12, %v3724_v11  ;;  %v5435_v11 = vld [vmem:[#allocation11 + $0x4] ss:$0 sm:$0xff] }
0x1866   :  { %v3734_v13 = vpop.permute.xlu0 %3733 }
0x1867   :  { %v3732_v18 = vpop.permute.xlu1 %3731  ;;  %v3742_v23 = vsel %vm1254_vm10, %v3740_v19, %v3734_v13 }
0x1868   :  { %v3741_v20 = vsel %vm1254_vm10, %v3739_v17, %v3732_v18 }
0x1869   :  { %5987 = vmatprep.mubr.msk.f32.mxu0 %vm265_vm0, %v3741_v20  ;;  %v5443_v20 = vld [vmem:[#allocation17 + $0x1] ss:$0 sm:$0xff] }
0x186a   :  { %5988 = vmatmul.mubr.msk.f32.vlgmr.msra.gmra.mrb[26].mxu0 %vm265_vm0, %v3742_v23 }
0x186b   :  { %6009 = vmatprep.mubr.msk.f32.mxu0 %vm265_vm0, %v6762_v24  ;;  %6320 = vmatpush3.bf16.msra.mxu0 %v6317_v45 }
0x186c   :  { %6322 = vmatprep.subr.bf16.mxu0 %v6321_v48 }
0x186f   :  { %6324 = vmatpush3.bf16.msra.mxu0 %v6321_v48 }
0x1872   :  { %6010 = vmatmul.mubr.msk.f32.vlgmr.msra.gmra.mrb[28].mxu0 %vm265_vm0, %v6763_v53 }
0x193d   :  { %v5989_v25 = vpop.f32.mrb[26].mxu0 }
0x193e   :  { %v3825_v26 = vadd.f32 %v5989_v25, %v5431_v55  ;;  %v3819_v27 = vpop.f32.mrb[27].mxu0 }
0x193f   :  { %v3820_v28 = vadd.f32 %v5431_v55, %v3819_v27 }
0x1940   :  { %v7973_v29 = vadd.f32 %v3825_v26, %v7819_v42 }
0x1941   :  { %v7976_v30 = vadd.f32 %v3820_v28, %v7821_v52 }
0x1942   :  { %v3835_v31 = vsel %vm265_vm0, %v7973_v29, 0.0 }
0x1943   :  { %3836 = vadd.xlane.f32.xlu0 %v3835_v31  ;;  %v3832_v32 = vsel %vm265_vm0, %v7976_v30, 0.0 }
0x1944   :  { %3833 = vadd.xlane.f32.xlu1 %v3832_v32 }
0x1945   :  { %v6011_v23 = vpop.f32.mrb[28].mxu0 }
0x1946   :  { %v4059_v24 = vadd.f32 %v6011_v23, %v5443_v20  ;;  %v4053_v55 = vpop.f32.mrb[29].mxu0 }
0x1947   :  { %v4054_v25 = vadd.f32 %v5443_v20, %v4053_v55 }
0x1949   :  { %v8001_v26 = vpack.i.bf16 %v4059_v24, %v4054_v25  ;;  %v6325_v27 = vpack.c.bf16 %v4059_v24, %v4054_v25 }
0x194b   :  { %6327 = vmatprep.subr.msk.bf16.mxu1 %vm7492_vm7, %v6325_v27 }
0x1955   :  { %6544 = vrot.lane.b32.xlu1 %v8001_v26, %s7131_s2 }
0x1959   :  { %6554 = vrot.lane.b32.xlu1 %v8001_v26, %s7134_s20 }
0x19d0   :  { %v3837_v46 = vpop.xlane.xlu0 %3836 }
0x19d1   :  { %v3839_v33 = vmul.f32 0.03125, %v3837_v46  ;;  %v3834_v22 = vpop.xlane.xlu1 %3833 }
0x19d2   :  { %v3838_v34 = vmul.f32 0.03125, %v3834_v22 }
0x19d3   :  { %v3841_v35 = vsub.f32 %v7973_v29, %v3839_v33 }
0x19d4   :  { %v3840_v42 = vsub.f32 %v7976_v30, %v3838_v34 }
0x19d5   :  { %v3843_v37 = vmul.f32 %v3841_v35, %v3841_v35  ;;  %v3857_v13 = vmul.f32 %v5434_v8, %v3841_v35  ;;  %v6545_v28 = vpop.permute.xlu1 %6544 }
0x19d6   :  { %v3842_v36 = vmul.f32 %v3840_v42, %v3840_v42  ;;  %v3856_v9 = vmul.f32 %v5434_v8, %v3840_v42  ;;  %v6547_v31 = vunpack.i.h.bf16 %v6545_v28  ;;  %v6546_v32 = vunpack.i.l.bf16 %v6545_v28 }
0x19d7   :  { %v3847_v38 = vsel %vm265_vm0, %v3843_v37, 0.0 }
0x19d8   :  { %v3844_v52 = vsel %vm265_vm0, %v3842_v36, 0.0  ;;  %v6331_v34 = vpack.c.bf16 %v6547_v31, %v6546_v32 }
0x19d9   :  { %3845 = vadd.xlane.f32.xlu0 %v3844_v52  ;;  %v6555_v42 = vpop.permute.xlu1 %6554 }
0x19da   :  { %v6557_v36 = vunpack.i.h.bf16 %v6555_v42  ;;  %v6556_v52 = vunpack.i.l.bf16 %v6555_v42  ;;  %6333 = vmatprep.subr.msk.bf16.mxu0 %vm7492_vm7, %v6331_v34 }
0x19db   :  { %6336 = vmatpush3.bf16.xpose.msk.msra.mxu0 %vm7492_vm7, %v6331_v34 }
0x19dc   :  { %v6343_v37 = vpack.c.bf16 %v6557_v36, %v6556_v52 }
0x19dd   :  { %3848 = vadd.xlane.f32.xlu0 %v3847_v38  ;;  %v5440_v38 = vld [vmem:[#allocation14 + $0x1] ss:$0 sm:$0xff] }
0x19de   :  { %6345 = vmatprep.subr.msk.bf16.mxu0 %vm7492_vm7, %v6343_v37 }
0x19f3   :  { %6549 = vrot.lane.b32.xlu0 %v8001_v26, %s7133_s27 }
0x1a66   :  { %v3846_v54 = vpop.xlane.xlu0 %3845 }
0x1a67   :  { %v3850_v56 = vmul.f32 0.032258064, %v3846_v54 }
0x1a69   :  { %6706 = vrsqrt.f32 %v3850_v56  ;;  %vm3860_vm15 = vcmp.eq.f32.partialorder %v3850_v56, inf  ;;  %v3863_v59 = vand.u32 2147483648, %v3850_v56  ;;  %vm3862_vm1 = vcmp.eq.f32.partialorder %v3850_v56, 0.0 }
0x1a6a   :  { %v3849_v57 = vpop.xlane.xlu0 %3848 }
0x1a6b   :  { %v3851_v58 = vmul.f32 0.032258064, %v3849_v57 }
0x1a6d   :  { %6708 = vrsqrt.f32 %v3851_v58  ;;  %vm3867_vm2 = vcmp.eq.f32.partialorder %v3851_v58, inf  ;;  %v3870_v4 = vand.u32 2147483648, %v3851_v58  ;;  %vm3869_vm3 = vcmp.eq.f32.partialorder %v3851_v58, 0.0 }
0x1a6e   :  { %v6550_v46 = vpop.permute.xlu0 %6549 }
0x1a6f   :  { %v6552_v33 = vunpack.i.h.bf16 %v6550_v46  ;;  %v6551_v22 = vunpack.i.l.bf16 %v6550_v46 }
0x1a71   :  { %v6337_v35 = vpack.c.bf16 %v6552_v33, %v6551_v22 }
0x1a73   :  { %v6707_v39 = vpop.eup %6706 }
0x1a74   :  { %v3859_v40 = vmul.f32 %v6707_v39, %v3850_v56 }
0x1a76   :  { %v3861_v60 = vsel %vm3860_vm15, %v3850_v56, %v3859_v40 }
0x1a77   :  { %v6709_v61 = vpop.eup %6708  ;;  %v3864_v62 = vsel %vm3862_vm1, %v3863_v59, %v3861_v60 }
0x1a78   :  { %v3866_v2 = vmul.f32 %v6709_v61, %v3851_v58  ;;  %v3872_v3 = vadd.f32 1e-06, %v3864_v62 }
0x1a7a   :  { %v3868_v5 = vsel %vm3867_vm2, %v3851_v58, %v3866_v2  ;;  %6710 = vrcp.f32 %v3872_v3 }
0x1a7b   :  { %v3871_v6 = vsel %vm3869_vm3, %v3870_v4, %v3868_v5 }
0x1a7c   :  { %v3873_v7 = vadd.f32 1e-06, %v3871_v6 }
0x1a7e   :  { %6712 = vrcp.f32 %v3873_v7 }
0x1a84   :  { %v6711_v10 = vpop.eup %6710 }
0x1a85   :  { %v3875_v12 = vmul.f32 %v6711_v10, %v3856_v9 }
0x1a87   :  { %v3882_v16 = vadd.f32 %v5435_v11, %v3875_v12 }
0x1a88   :  { %v6713_v17 = vpop.eup %6712 }
0x1a89   :  { %v3877_v18 = vmul.f32 %v6713_v17, %v3857_v13  ;;  %5998 = vmatprep.mubr.msk.f32.mxu1 %vm265_vm0, %v3882_v16 }
0x1a8b   :  { %v3883_v19 = vadd.f32 %v5435_v11, %v3877_v18 }
0x1a8d   :  { %5999 = vmatmul.mubr.msk.f32.vlgmr.msra.gmra.mrb[38].mxu1 %vm265_vm0, %v3883_v19 }
0x1a8e   :  { %6330 = vmatpush3.bf16.xpose.msk.msra.mxu1 %vm7492_vm7, %v6325_v27 }
0x1a8f   :  { %6339 = vmatprep.subr.msk.bf16.mxu1 %vm7492_vm7, %v6337_v35 }
0x1b60   :  { %v6000_v21 = vpop.f32.mrb[38].mxu1 }
0x1b61   :  { %v3972_v41 = vadd.f32 %v6000_v21, %v5440_v38  ;;  %v3966_v45 = vpop.f32.mrb[39].mxu1 }
0x1b62   :  { %v3967_v51 = vadd.f32 %v5440_v38, %v3966_v45 }
0x1b63   :  { %v3976_v47 = vmul.f32 0.35355338, %v3972_v41 }
0x1b64   :  { %v3975_v48 = vmul.f32 0.35355338, %v3967_v51 }
0x1b65   :  { %4157 = vrot.lane.b32.xlu1 %v3976_v47, %s7131_s2 }
0x1b66   :  { %4246 = vrot.lane.b32.xlu0 %v3975_v48, %s7133_s27  ;;  %6016 = vmatprep.mubr.msk.f32.mxu1 %vm244_vm5, %v3975_v48 }
0x1b67   :  { %6017 = vmatmul.mubr.msk.f32.vlgmr.msra.gmra.mrb[40].mxu1 %vm244_vm5, %v3976_v47 }
0x1b68   :  { %6342 = vmatpush3.bf16.xpose.msk.msra.mxu1 %vm7492_vm7, %v6337_v35 }
0x1b69   :  { %4155 = vrot.lane.b32.xlu1 %v3975_v48, %s7131_s2 }
0x1b6a   :  { %4337 = vrot.lane.b32.xlu0 %v3975_v48, %s7134_s20 }
0x1b6d   :  { %4248 = vrot.lane.b32.xlu1 %v3976_v47, %s7133_s27 }
0x1b71   :  { %4339 = vrot.lane.b32.xlu1 %v3976_v47, %s7134_s20 }
0x1bd7   :  { %v4158_v49 = vpop.permute.xlu1 %4157 }
0x1bd8   :  { %v4247_v43 = vpop.permute.xlu0 %4246 }
0x1bd9   :  { %6030 = vmatprep.mubr.msk.f32.mxu1 %vm244_vm5, %v4247_v43 }
0x1bdb   :  { %v4156_v50 = vpop.permute.xlu1 %4155 }
0x1bdc   :  { %v4338_v44 = vpop.permute.xlu0 %4337  ;;  %6023 = vmatprep.mubr.msk.f32.mxu0 %vm244_vm5, %v4156_v50 }
0x1bdd   :  { %6024 = vmatmul.mubr.msk.f32.vlgmr.msra.gmra.mrb[30].mxu0 %vm244_vm5, %v4158_v49 }
0x1bde   :  { %6348 = vmatpush3.bf16.xpose.msk.msra.mxu0 %vm7492_vm7, %v6343_v37  ;;  %6037 = vmatprep.mubr.msk.f32.mxu0 %vm244_vm5, %v4338_v44 }
0x1bdf   :  { %v4249_v1 = vpop.permute.xlu1 %4248 }
0x1be0   :  { %6031 = vmatmul.mubr.msk.f32.vlgmr.msra.gmra.mrb[42].mxu1 %vm244_vm5, %v4249_v1 }
0x1be3   :  { %v4340_v0 = vpop.permute.xlu1 %4339 }
0x1be5   :  { %6038 = vmatmul.mubr.msk.f32.vlgmr.msra.gmra.mrb[32].mxu0 %vm244_vm5, %v4340_v0 }
0x1c3a   :  { %v6018_v53 = vpop.f32.mrb[40].mxu1 }
0x1c3b   :  { %v4429_v54 = vadd.f32 %v6018_v53, %v7688_v14  ;;  %v4146_v56 = vpop.f32.mrb[41].mxu1 }
0x1c3c   :  { %v4428_v57 = vadd.f32 %v4146_v56, %v7691_v15 }
0x1c3d   :  { %v4439_v58 = vsel %vm789_vm9, %v4429_v54, -inf }
0x1c3e   :  { %4440 = vmax.xlane.f32.xlu1 %v4439_v58  ;;  %v4436_v63 = vsel %vm789_vm9, %v4428_v57, -inf }
0x1c3f   :  { %4437 = vmax.xlane.f32.xlu0 %v4436_v63 }
0x1cb0   :  { %v6025_v39 = vpop.f32.mrb[30].mxu0 }
0x1cb1   :  { %v4431_v40 = vadd.f32 %v6025_v39, %v7688_v14  ;;  %v4237_v59 = vpop.f32.mrb[31].mxu0 }
0x1cb2   :  { %v4430_v60 = vadd.f32 %v4237_v59, %v7691_v15 }
0x1cb3   :  { %v6032_v61 = vpop.f32.mrb[42].mxu1  ;;  %v4445_v62 = vsel %vm789_vm9, %v4431_v40, -inf }
0x1cb4   :  { %v4433_v2 = vadd.f32 %v6032_v61, %v7688_v14  ;;  %v4328_v3 = vpop.f32.mrb[43].mxu1  ;;  %4446 = vmax.xlane.f32.xlu0 %v4445_v62  ;;  %v4442_v6 = vsel %vm789_vm9, %v4430_v60, -inf }
0x1cb5   :  { %v4432_v5 = vadd.f32 %v4328_v3, %v7691_v15 }
0x1cb6   :  { %v4451_v4 = vsel %vm789_vm9, %v4433_v2, -inf }
0x1cb7   :  { %4452 = vmax.xlane.f32.xlu1 %v4451_v4  ;;  %v4448_v12 = vsel %vm789_vm9, %v4432_v5, -inf }
0x1cb8   :  { %v6039_v7 = vpop.f32.mrb[32].mxu0  ;;  %4443 = vmax.xlane.f32.xlu0 %v4442_v6 }
0x1cb9   :  { %v4435_v8 = vadd.f32 %v6039_v7, %v7688_v14  ;;  %v4419_v9 = vpop.f32.mrb[33].mxu0 }
0x1cba   :  { %v4434_v10 = vadd.f32 %v4419_v9, %v7691_v15 }
0x1cbb   :  { %v4457_v11 = vsel %vm789_vm9, %v4435_v8, -inf }
0x1cbc   :  { %4458 = vmax.xlane.f32.xlu1 %v4457_v11  ;;  %4449 = vmax.xlane.f32.xlu0 %v4448_v12  ;;  %v4454_v13 = vsel %vm789_vm9, %v4434_v10, -inf }
0x1cc0   :  { %4455 = vmax.xlane.f32.xlu0 %v4454_v13 }
0x1ccb   :  { %v4441_v16 = vpop.xlane.xlu1 %4440 }
0x1ccc   :  { %v4461_v17 = vsub.f32 %v4429_v54, %v4441_v16  ;;  %v4438_v18 = vpop.xlane.xlu0 %4437 }
0x1ccd   :  { %v4460_v19 = vsub.f32 %v4428_v57, %v4438_v18 }
0x1cce   :  { %v4470_v20 = vmul.f32 1.442695, %v4461_v17 }
0x1ccf   :  { %v4468_v23 = vmul.f32 1.442695, %v4460_v19 }
0x1cd0   :  { %6714 = vpow2.f32 %v4470_v20 }
0x1cd1   :  { %6716 = vpow2.f32 %v4468_v23 }
0x1cda   :  { %v8055_v14 = vpop.eup %6714 }
0x1cdb   :  { %v6717_v15 = vpop.eup %6716  ;;  %v4487_v24 = vsel %vm789_vm9, %v8055_v14, 0.0 }
0x1cdc   :  { %4488 = vadd.xlane.f32.xlu1 %v4487_v24  ;;  %v4484_v55 = vsel %vm789_vm9, %v6717_v15, 0.0 }
0x1cdd   :  { %4485 = vadd.xlane.f32.xlu0 %v4484_v55 }
0x1d41   :  { %v4447_v25 = vpop.xlane.xlu0 %4446 }
0x1d42   :  { %v4463_v27 = vsub.f32 %v4431_v40, %v4447_v25 }
0x1d44   :  { %v4474_v28 = vmul.f32 1.442695, %v4463_v27  ;;  %v4453_v31 = vpop.xlane.xlu1 %4452 }
0x1d45   :  { %v4465_v32 = vsub.f32 %v4433_v2, %v4453_v31  ;;  %v4444_v46 = vpop.xlane.xlu0 %4443 }
0x1d46   :  { %6718 = vpow2.f32 %v4474_v28  ;;  %v4462_v33 = vsub.f32 %v4430_v60, %v4444_v46 }
0x1d47   :  { %v4478_v22 = vmul.f32 1.442695, %v4465_v32 }
0x1d48   :  { %v4472_v34 = vmul.f32 1.442695, %v4462_v33 }
0x1d49   :  { %6720 = vpow2.f32 %v4478_v22  ;;  %v4459_v35 = vpop.xlane.xlu1 %4458  ;;  %v4450_v42 = vpop.xlane.xlu0 %4449 }
0x1d4a   :  { %6722 = vpow2.f32 %v4472_v34  ;;  %v4467_v36 = vsub.f32 %v4435_v8, %v4459_v35  ;;  %v4464_v52 = vsub.f32 %v4432_v5, %v4450_v42  ;;  %v5446_v34 = vld [vmem:[%s8202_s12 + $0x60] sm:$0xff]  ;;  %v5447_v35 = vld [vmem:[%s8202_s12 + $0x68] sm:$0xff] }
0x1d4b   :  { %v6365_v42 = vpack.c.bf16 %v5447_v35, %v5446_v34 }
0x1d4c   :  { %v4482_v37 = vmul.f32 1.442695, %v4467_v36  ;;  %v4476_v38 = vmul.f32 1.442695, %v4464_v52  ;;  %v5448_v36 = vld [vmem:[%s8202_s12 + $0x70] sm:$0xff]  ;;  %v5449_v52 = vld [vmem:[%s8202_s12 + $0x78] sm:$0xff] }
0x1d4d   :  { %v4456_v21 = vpop.xlane.xlu0 %4455 }
0x1d4e   :  { %6724 = vpow2.f32 %v4482_v37  ;;  %v4466_v41 = vsub.f32 %v4434_v10, %v4456_v21  ;;  %v6369_v37 = vpack.c.bf16 %v5449_v52, %v5448_v36 }
0x1d4f   :  { %6726 = vpow2.f32 %v4476_v38 }
0x1d50   :  { %v8060_v45 = vpop.eup %6718  ;;  %v4480_v51 = vmul.f32 1.442695, %v4466_v41 }
0x1d51   :  { %v4493_v47 = vsel %vm789_vm9, %v8060_v45, 0.0 }
0x1d52   :  { %6728 = vpow2.f32 %v4480_v51  ;;  %4494 = vadd.xlane.f32.xlu1 %v4493_v47 }
0x1d53   :  { %v6721_v48 = vpop.eup %6720 }
0x1d54   :  { %v8064_v49 = vpop.eup %6722  ;;  %v4499_v43 = vsel %vm789_vm9, %v6721_v48, 0.0 }
0x1d55   :  { %v4490_v50 = vsel %vm789_vm9, %v8064_v49, 0.0 }
0x1d56   :  { %4500 = vadd.xlane.f32.xlu1 %v4499_v43  ;;  %4491 = vadd.xlane.f32.xlu0 %v4490_v50 }
0x1d58   :  { %v8069_v44 = vpop.eup %6724 }
0x1d59   :  { %v6727_v1 = vpop.eup %6726  ;;  %v4505_v0 = vsel %vm789_vm9, %v8069_v44, 0.0 }
0x1d5a   :  { %4506 = vadd.xlane.f32.xlu1 %v4505_v0  ;;  %v4496_v53 = vsel %vm789_vm9, %v6727_v1, 0.0 }
0x1d5b   :  { %4497 = vadd.xlane.f32.xlu0 %v4496_v53 }
0x1d5c   :  { %v8074_v54 = vpop.eup %6728 }
0x1d5d   :  { %v4502_v56 = vsel %vm789_vm9, %v8074_v54, 0.0 }
0x1d5f   :  { %4503 = vadd.xlane.f32.xlu0 %v4502_v56 }
0x1d69   :  { %v4489_v39 = vpop.xlane.xlu1 %4488 }
0x1d6a   :  { %v4486_v57 = vpop.xlane.xlu0 %4485 }
0x1d6b   :  { %6730 = vrcp.f32 %v4486_v57  ;;  %6564 = vrot.lane.b32.xlu1 %v8001_v26, %s7128_s19 }
0x1d6f   :  { %6569 = vrot.lane.b32.xlu1 %v8001_v26, %s7130_s3 }
0x1d73   :  { %6574 = vrot.lane.b32.xlu1 %v8001_v26, %s7132_s13 }
0x1d75   :  { %v6731_v58 = vpop.eup %6730  ;;  %6559 = vrot.lane.b32.xlu0 %v8001_v26, %s7129_s7 }
0x1d76   :  { %v4509_v63 = vmul.f32 %v6731_v58, %v6717_v15 }
0x1d78   :  { %6044 = vmatprep.mubr.msk.f32.mxu1 %vm789_vm9, %v4509_v63 }
0x1ddf   :  { %v4495_v40 = vpop.xlane.xlu1 %4494 }
0x1de3   :  { %v4501_v59 = vpop.xlane.xlu1 %4500  ;;  %v4492_v60 = vpop.xlane.xlu0 %4491 }
0x1de4   :  { %6732 = vrcp.f32 %v4501_v59 }
0x1de7   :  { %v4507_v61 = vpop.xlane.xlu1 %4506 }
0x1de8   :  { %v4498_v62 = vpop.xlane.xlu0 %4497 }
0x1de9   :  { %6734 = vrcp.f32 %v4498_v62 }
0x1dea   :  { %6736 = vrcp.f32 %v4489_v39 }
0x1deb   :  { %6738 = vrcp.f32 %v4492_v60  ;;  %v6565_v2 = vpop.permute.xlu1 %6564 }
0x1dec   :  { %v4504_v3 = vpop.xlane.xlu0 %4503  ;;  %6740 = vrcp.f32 %v4495_v40  ;;  %v6567_v7 = vunpack.i.h.bf16 %v6565_v2  ;;  %v6566_v8 = vunpack.i.l.bf16 %v6565_v2  ;;  %v5474_v40 = vld [vmem:[#allocation19 + $0x3] ss:$0 sm:$0xff] }
0x1ded   :  { %6742 = vrcp.f32 %v4504_v3 }
0x1dee   :  { %v6733_v11 = vpop.eup %6732  ;;  %6744 = vrcp.f32 %v4507_v61  ;;  %v6353_v23 = vpack.c.bf16 %v6567_v7, %v6566_v8 }
0x1def   :  { %v6570_v4 = vpop.permute.xlu1 %6569  ;;  %v4519_v55 = vmul.f32 %v6733_v11, %v6721_v48 }
0x1df0   :  { %v6572_v5 = vunpack.i.h.bf16 %v6570_v4  ;;  %v6571_v26 = vunpack.i.l.bf16 %v6570_v4  ;;  %v6560_v6 = vpop.permute.xlu0 %6559 }
0x1df1   :  { %v6562_v9 = vunpack.i.h.bf16 %v6560_v6  ;;  %v6561_v10 = vunpack.i.l.bf16 %v6560_v6 }
0x1df2   :  { %v6357_v12 = vpack.c.bf16 %v6572_v5, %v6571_v26 }
0x1df3   :  { %v6735_v13 = vpop.eup %6734  ;;  %v6349_v16 = vpack.c.bf16 %v6562_v9, %v6561_v10  ;;  %v6575_v17 = vpop.permute.xlu1 %6574 }
0x1df4   :  { %v6737_v18 = vpop.eup %6736  ;;  %6358 = vmatprep.subr.bf16.mxu0 %v6357_v12  ;;  %v4517_v19 = vmul.f32 %v6735_v13, %v6727_v1  ;;  %v6577_v15 = vunpack.i.h.bf16 %v6575_v17  ;;  %v6576_v24 = vunpack.i.l.bf16 %v6575_v17  ;;  %v5044_v13 = vld [vmem:[#allocation20 + $0x20] sm:$0xff]  ;;  %v5046_v17 = vld [vmem:[#allocation20 + $0x30] sm:$0xff] }
0x1df5   :  { %v6739_v20 = vpop.eup %6738  ;;  %6350 = vmatprep.subr.bf16.mxu1 %v6349_v16  ;;  %6360 = vmatpush3.bf16.msra.mxu0 %v6357_v12  ;;  %v4511_v25 = vmul.f32 %v6737_v18, %v8055_v14 }
0x1df6   :  { %6352 = vmatpush3.bf16.msra.mxu1 %v6349_v16  ;;  %6058 = vmatprep.mubr.msk.f32.mxu0 %vm789_vm9, %v4517_v19  ;;  %v6741_v27 = vpop.eup %6740  ;;  %v4513_v28 = vmul.f32 %v6739_v20, %v8064_v49  ;;  %v6361_v32 = vpack.c.bf16 %v6577_v15, %v6576_v24  ;;  %v5045_v16 = vld [vmem:[#allocation20 + $0x28] sm:$0xff]  ;;  %v5047_v19 = vld [vmem:[#allocation20 + $0x38] sm:$0xff] }
0x1df7   :  { %6354 = vmatprep.subr.bf16.mxu1 %v6353_v23  ;;  %v6743_v31 = vpop.eup %6742  ;;  %v4515_v46 = vmul.f32 %v6741_v27, %v8060_v45  ;;  %6366 = vmatprep.subr.bf16.mxu0 %v6365_v42  ;;  %v6373_v18 = vpack.c.bf16 %v5045_v16, %v5044_v13  ;;  %v6377_v20 = vpack.c.bf16 %v5047_v19, %v5046_v17  ;;  %v5483_v15 = vld [vmem:[%s8206_s16 + $0x48] sm:$0xff]  ;;  %v5484_v24 = vld [vmem:[%s8206_s16 + $0x50] sm:$0xff] }
0x1df8   :  { %6059 = vmatmul.mubr.msk.f32.vlgmr.msra.gmra.mrb[34].mxu0 %vm789_vm9, %v4519_v55  ;;  %v6745_v33 = vpop.eup %6744  ;;  %v4521_v22 = vmul.f32 %v6743_v31, %v8074_v54  ;;  %v5487_v31 = vld [vmem:[%s8206_s16 + $0x68] sm:$0xff] }
0x1df9   :  { %6045 = vmatmul.mubr.msk.f32.vlgmr.msra.gmra.mrb[44].mxu1 %vm789_vm9, %v4511_v25  ;;  %v4523_v14 = vmul.f32 %v6745_v33, %v8069_v44  ;;  %6368 = vmatpush3.bf16.msra.mxu0 %v6365_v42  ;;  %v5485_v25 = vld [vmem:[%s8206_s16 + $0x58] sm:$0xff] }
0x1dfa   :  { %6356 = vmatpush3.bf16.msra.mxu1 %v6353_v23  ;;  %6051 = vmatprep.mubr.msk.f32.mxu1 %vm789_vm9, %v4513_v28  ;;  %v5482_v23 = vld [vmem:[%s8206_s16 + $0x40] sm:$0xff]  ;;  %v6385_v27 = vpack.c.bf16 %v5485_v25, %v5484_v24 }
0x1dfb   :  { %6362 = vmatprep.subr.bf16.mxu1 %v6361_v32  ;;  %6370 = vmatprep.subr.bf16.mxu0 %v6369_v37  ;;  %v6381_v55 = vpack.c.bf16 %v5483_v15, %v5482_v23  ;;  %v5486_v28 = vld [vmem:[%s8206_s16 + $0x60] sm:$0xff] }
0x1dfd   :  { %6052 = vmatmul.mubr.msk.f32.vlgmr.msra.gmra.mrb[46].mxu1 %vm789_vm9, %v4515_v46  ;;  %6372 = vmatpush3.bf16.msra.mxu0 %v6369_v37 }
0x1dfe   :  { %6364 = vmatpush3.bf16.msra.mxu1 %v6361_v32  ;;  %6065 = vmatprep.mubr.msk.f32.mxu1 %vm789_vm9, %v4521_v22  ;;  %v6389_v32 = vpack.c.bf16 %v5487_v31, %v5486_v28 }
0x1dff   :  { %6374 = vmatprep.subr.bf16.mxu1 %v6373_v18  ;;  %6382 = vmatprep.subr.bf16.mxu0 %v6381_v55 }
0x1e01   :  { %6066 = vmatmul.mubr.msk.f32.vlgmr.msra.gmra.mrb[48].mxu1 %vm789_vm9, %v4523_v14 }
0x1e02   :  { %6376 = vmatpush3.bf16.msra.mxu1 %v6373_v18 }
0x1e03   :  { %6378 = vmatprep.subr.bf16.mxu1 %v6377_v20 }
0x1e06   :  { %6380 = vmatpush3.bf16.msra.mxu1 %v6377_v20 }
0x1ecb   :  { %v6060_v38 = vpop.f32.mrb[34].mxu0 }
0x1ecc   :  { %v6046_v21 = vpop.f32.mrb[44].mxu1  ;;  %v4776_v41 = vpop.f32.mrb[35].mxu0 }
0x1ecd   :  { %v4602_v45 = vpop.f32.mrb[45].mxu1 }
0x1ed0   :  { %v6053_v51 = vpop.f32.mrb[46].mxu1 }
0x1ed1   :  { %4876 = vrot.lane.b32.xlu1 %v6053_v51, %s7115_s26  ;;  %v4689_v47 = vpop.f32.mrb[47].mxu1 }
0x1ed2   :  { %4874 = vrot.lane.b32.xlu0 %v4689_v47, %s7115_s26 }
0x1ed4   :  { %v6067_v48 = vpop.f32.mrb[48].mxu1 }
0x1ed5   :  { %4884 = vrot.lane.b32.xlu1 %v6060_v38, %s7140_s24  ;;  %v4863_v49 = vpop.f32.mrb[49].mxu1 }
0x1ed6   :  { %4882 = vrot.lane.b32.xlu0 %v4776_v41, %s7140_s24 }
0x1ed9   :  { %4892 = vrot.lane.b32.xlu1 %v6067_v48, %s7141_s0  ;;  %v5477_v48 = vld [vmem:[#allocation10 + $0x5] ss:$0 sm:$0xff] }
0x1eda   :  { %4890 = vrot.lane.b32.xlu0 %v4863_v49, %s7141_s0 }
0x1f43   :  { %v4877_v43 = vpop.permute.xlu1 %4876 }
0x1f44   :  { %v4875_v50 = vpop.permute.xlu0 %4874  ;;  %v4897_v54 = vsel %vm244_vm5, %v6046_v21, %v4877_v43 }
0x1f45   :  { %v4896_v0 = vsel %vm244_vm5, %v4602_v45, %v4875_v50  ;;  %v5478_v50 = vld [vmem:[#allocation11 + $0x5] ss:$0 sm:$0xff] }
0x1f47   :  { %v4885_v44 = vpop.permute.xlu1 %4884 }
0x1f48   :  { %v4883_v1 = vpop.permute.xlu0 %4882  ;;  %v4899_v58 = vsel %vm789_vm9, %v4897_v54, %v4885_v44 }
0x1f49   :  { %v4898_v56 = vsel %vm789_vm9, %v4896_v0, %v4883_v1 }
0x1f4b   :  { %v4893_v53 = vpop.permute.xlu1 %4892 }
0x1f4c   :  { %v4891_v57 = vpop.permute.xlu0 %4890  ;;  %v4901_v39 = vsel %vm1254_vm10, %v4899_v58, %v4893_v53  ;;  %v5489_v58 = vld [vmem:[%s8206_s16 + $0x78] sm:$0xff] }
0x1f4d   :  { %v4900_v63 = vsel %vm1254_vm10, %v4898_v56, %v4891_v57  ;;  %v5488_v57 = vld [vmem:[%s8206_s16 + $0x70] sm:$0xff]  ;;  %s7142_s16 = smov [#allocation25]  }
0x1f4e   :  { %6076 = vmatprep.mubr.msk.f32.mxu0 %vm265_vm0, %v4900_v63  ;;  %v6393_v63 = vpack.c.bf16 %v5489_v58, %v5488_v57  ;;  %s5296_s1 = sshll.u32 %s7142_s16, 4  ;;  %s5297_s1 = int_to_ptr.vmem [resolvable:$true] %s5296_s1 }
0x1f4f   :  { %6077 = vmatmul.mubr.msk.f32.vlgmr.msra.gmra.mrb[36].mxu0 %vm265_vm0, %v4901_v39  ;;  %v5479_v39 = vld [vmem:[#allocation22 + $0x1] ss:$0 sm:$0xff]  ;;  %s7072_s21 = scalar_lea.vmem %s5297_s1, 256  ;;  %p7077_p1 = scmp.lt.s32.totalorder %s5297_s1, %s5297_s1 }
0x1f50   :  { %6384 = vmatpush3.bf16.msra.mxu0 %v6381_v55  ;;  %p7073_p0 = scmp.ne.s32.totalorder %s5297_s1, %s7072_s21  ;;  %p7078_p2 = scmp.lt.s32.totalorder %s7072_s21, %s7072_s21 }
0x1f51   :  { %6386 = vmatprep.subr.bf16.mxu0 %v6385_v27 }
0x1f52   :  { %p7079_p3 = por %p7078_p2, %p7077_p1 }
0x1f54   :  { %6388 = vmatpush3.bf16.msra.mxu0 %v6385_v27  ;;  %p7080_p4 = pnand %p7079_p3, %p7073_p0 }
0x1f55   :  { %6390 = vmatprep.subr.bf16.mxu0 %v6389_v32 }
0x1f58   :  { %6392 = vmatpush3.bf16.msra.mxu0 %v6389_v32 }
0x1f59   :  { %6394 = vmatprep.subr.bf16.mxu0 %v6393_v63 }
0x1f5c   :  { %6396 = vmatpush3.bf16.msra.mxu0 %v6393_v63 }
0x2022   :  { %v6078_v59 = vpop.f32.mrb[36].mxu0 }
0x2023   :  { %v4984_v60 = vadd.f32 %v6078_v59, %v5474_v40  ;;  %v4978_v61 = vpop.f32.mrb[37].mxu0 }
0x2024   :  { %v4979_v62 = vadd.f32 %v5474_v40, %v4978_v61 }
0x2025   :  { %v8126_v2 = vadd.f32 %v4984_v60, %v7973_v29 }
0x2026   :  { %v8129_v3 = vadd.f32 %v4979_v62, %v7976_v30 }
0x2027   :  { %v4994_v4 = vsel %vm265_vm0, %v8126_v2, 0.0 }
0x2028   :  { %4995 = vadd.xlane.f32.xlu1 %v4994_v4  ;;  %v4991_v5 = vsel %vm265_vm0, %v8129_v3, 0.0 }
0x2029   :  { %4992 = vadd.xlane.f32.xlu0 %v4991_v5 }
0x20b5   :  { %v4996_v26 = vpop.xlane.xlu1 %4995 }
0x20b6   :  { %v4998_v6 = vmul.f32 0.03125, %v4996_v26  ;;  %v4993_v7 = vpop.xlane.xlu0 %4992  ;;  %v5492_v26 = vld [vmem:[#allocation23 + $0x1] ss:$0 sm:$0xff] }
0x20b7   :  { %v4997_v8 = vmul.f32 0.03125, %v4993_v7 }
0x20b8   :  { %v5000_v9 = vsub.f32 %v8126_v2, %v4998_v6 }
0x20b9   :  { %v4999_v29 = vsub.f32 %v8129_v3, %v4997_v8 }
0x20ba   :  { %v5002_v11 = vmul.f32 %v5000_v9, %v5000_v9  ;;  %v5016_v1 = vmul.f32 %v5477_v48, %v5000_v9 }
0x20bb   :  { %v5001_v10 = vmul.f32 %v4999_v29, %v4999_v29  ;;  %v5015_v49 = vmul.f32 %v5477_v48, %v4999_v29 }
0x20bc   :  { %v5006_v12 = vsel %vm265_vm0, %v5002_v11, 0.0 }
0x20bd   :  { %v5003_v30 = vsel %vm265_vm0, %v5001_v10, 0.0 }
0x20be   :  { %5004 = vadd.xlane.f32.xlu0 %v5003_v30 }
0x20c2   :  { %5007 = vadd.xlane.f32.xlu0 %v5006_v12 }
0x214b   :  { %v5005_v46 = vpop.xlane.xlu0 %5004 }
0x214c   :  { %v5009_v33 = vmul.f32 0.032258064, %v5005_v46 }
0x214e   :  { %6746 = vrsqrt.f32 %v5009_v33  ;;  %vm5019_vm5 = vcmp.eq.f32.partialorder %v5009_v33, inf  ;;  %v5022_v42 = vand.u32 2147483648, %v5009_v33  ;;  %vm5021_vm7 = vcmp.eq.f32.partialorder %v5009_v33, 0.0 }
0x214f   :  { %v5008_v22 = vpop.xlane.xlu0 %5007 }
0x2150   :  { %v5010_v14 = vmul.f32 0.032258064, %v5008_v22 }
0x2152   :  { %6748 = vrsqrt.f32 %v5010_v14  ;;  %vm5026_vm9 = vcmp.eq.f32.partialorder %v5010_v14, inf  ;;  %v5029_v41 = vand.u32 2147483648, %v5010_v14  ;;  %vm5028_vm10 = vcmp.eq.f32.partialorder %v5010_v14, 0.0 }
0x2158   :  { %v6747_v34 = vpop.eup %6746 }
0x2159   :  { %v5018_v35 = vmul.f32 %v6747_v34, %v5009_v33 }
0x215b   :  { %v5020_v36 = vsel %vm5019_vm5, %v5009_v33, %v5018_v35 }
0x215c   :  { %v6749_v52 = vpop.eup %6748  ;;  %v5023_v37 = vsel %vm5021_vm7, %v5022_v42, %v5020_v36  ;;  %v5493_v36 = vld [vmem:[#allocation10 + $0x6] ss:$0 sm:$0xff] }
0x215d   :  { %v5025_v38 = vmul.f32 %v6749_v52, %v5010_v14  ;;  %v5031_v21 = vadd.f32 1e-06, %v5023_v37 }
0x215f   :  { %v5027_v45 = vsel %vm5026_vm9, %v5010_v14, %v5025_v38  ;;  %6750 = vrcp.f32 %v5031_v21  ;;  %v5494_v21 = vld [vmem:[#allocation11 + $0x6] ss:$0 sm:$0xff] }
0x2160   :  { %v5030_v51 = vsel %vm5028_vm10, %v5029_v41, %v5027_v45 }
0x2161   :  { %v5032_v47 = vadd.f32 1e-06, %v5030_v51 }
0x2163   :  { %6752 = vrcp.f32 %v5032_v47 }
0x2169   :  { %v6751_v43 = vpop.eup %6750 }
0x216a   :  { %v5034_v44 = vmul.f32 %v6751_v43, %v5015_v49 }
0x216c   :  { %v5041_v0 = vadd.f32 %v5478_v50, %v5034_v44 }
0x216d   :  { %v6753_v53 = vpop.eup %6752 }
0x216e   :  { %v5036_v54 = vmul.f32 %v6753_v53, %v5016_v1  ;;  %6087 = vmatprep.mubr.msk.f32.mxu1 %vm265_vm0, %v5041_v0 }
0x2170   :  { %v5042_v56 = vadd.f32 %v5478_v50, %v5036_v54 }
0x2172   :  { %6088 = vmatmul.mubr.msk.f32.vlgmr.msra.gmra.mrb[50].mxu1 %vm265_vm0, %v5042_v56 }
0x2245   :  { %v6089_v40 = vpop.f32.mrb[50].mxu1 }
0x2246   :  { %v5131_v59 = vadd.f32 %v6089_v40, %v5479_v39  ;;  %v5125_v60 = vpop.f32.mrb[51].mxu1 }
0x2247   :  { %v5126_v61 = vadd.f32 %v5479_v39, %v5125_v60 }
0x2248   :  { %v5135_v4 = vmax.f32 %v5131_v59, 0.0 }
0x2249   :  { %v5134_v62 = vmax.f32 %v5126_v61, 0.0 }
0x224b   :  { %6106 = vmatprep.mubr.msk.f32.mxu0 %vm2661_vm8, %v5134_v62 }
0x224c   :  { %6107 = vmatmul.mubr.msk.f32.vlgmr.msra.gmra.mrb[38].mxu0 %vm2661_vm8, %v5135_v4 }
0x231f   :  { %v6108_v5 = vpop.f32.mrb[38].mxu0 }
0x2320   :  { %v5227_v6 = vadd.f32 %v6108_v5, %v8126_v2  ;;  %v5217_v7 = vpop.f32.mrb[39].mxu0 }
0x2321   :  { %v5226_v8 = vadd.f32 %v5217_v7, %v8129_v3 }
0x2322   :  { %v5234_v9 = vadd.f32 %v5492_v26, %v5227_v6 }
0x2323   :  { %v5233_v29 = vadd.f32 %v5492_v26, %v5226_v8 }
0x2324   :  { %v5240_v10 = vsel %vm265_vm0, %v5234_v9, 0.0 }
0x2325   :  { %5241 = vadd.xlane.f32.xlu1 %v5240_v10  ;;  %v5237_v30 = vsel %vm265_vm0, %v5233_v29, 0.0 }
0x2326   :  { %5238 = vadd.xlane.f32.xlu0 %v5237_v30 }
0x23b2   :  { %v5242_v11 = vpop.xlane.xlu1 %5241 }
0x23b3   :  { %v5244_v12 = vmul.f32 0.03125, %v5242_v11  ;;  %v5239_v13 = vpop.xlane.xlu0 %5238 }
0x23b4   :  { %v5243_v16 = vmul.f32 0.03125, %v5239_v13 }
0x23b5   :  { %v5246_v17 = vsub.f32 %v5234_v9, %v5244_v12 }
0x23b6   :  { %v5245_v18 = vsub.f32 %v5233_v29, %v5243_v16 }
0x23b7   :  { %v5248_v19 = vmul.f32 %v5246_v17, %v5246_v17  ;;  %v5262_v52 = vmul.f32 %v5493_v36, %v5246_v17 }
0x23b8   :  { %v5247_v20 = vmul.f32 %v5245_v18, %v5245_v18  ;;  %v5261_v38 = vmul.f32 %v5493_v36, %v5245_v18 }
0x23b9   :  { %v5252_v2 = vsel %vm265_vm0, %v5248_v19, 0.0 }
0x23ba   :  { %5253 = vadd.xlane.f32.xlu1 %v5252_v2  ;;  %v5249_v3 = vsel %vm265_vm0, %v5247_v20, 0.0 }
0x23bb   :  { %5250 = vadd.xlane.f32.xlu0 %v5249_v3 }
0x2447   :  { %v5254_v23 = vpop.xlane.xlu1 %5253 }
0x2448   :  { %v5256_v15 = vmul.f32 0.032258064, %v5254_v23  ;;  %v5251_v24 = vpop.xlane.xlu0 %5250 }
0x2449   :  { %v5255_v55 = vmul.f32 0.032258064, %v5251_v24 }
0x244a   :  { %6754 = vrsqrt.f32 %v5256_v15  ;;  %vm5272_vm4 = vcmp.eq.f32.partialorder %v5256_v15, inf  ;;  %v5275_v31 = vand.u32 2147483648, %v5256_v15  ;;  %vm5274_vm6 = vcmp.eq.f32.partialorder %v5256_v15, 0.0 }
0x244b   :  { %6756 = vrsqrt.f32 %v5255_v55  ;;  %vm5265_vm8 = vcmp.eq.f32.partialorder %v5255_v55, inf  ;;  %v5268_v33 = vand.u32 2147483648, %v5255_v55  ;;  %vm5267_vm11 = vcmp.eq.f32.partialorder %v5255_v55, 0.0 }
0x2454   :  { %v6755_v25 = vpop.eup %6754 }
0x2455   :  { %v6757_v27 = vpop.eup %6756  ;;  %v5271_v28 = vmul.f32 %v6755_v25, %v5256_v15 }
0x2456   :  { %v5264_v32 = vmul.f32 %v6757_v27, %v5255_v55 }
0x2457   :  { %v5273_v46 = vsel %vm5272_vm4, %v5256_v15, %v5271_v28 }
0x2458   :  { %v5276_v22 = vsel %vm5274_vm6, %v5275_v31, %v5273_v46  ;;  %v5266_v14 = vsel %vm5265_vm8, %v5255_v55, %v5264_v32 }
0x2459   :  { %v5278_v34 = vadd.f32 1e-06, %v5276_v22  ;;  %v5269_v35 = vsel %vm5267_vm11, %v5268_v33, %v5266_v14 }
0x245a   :  { %v5277_v42 = vadd.f32 1e-06, %v5269_v35 }
0x245b   :  { %6758 = vrcp.f32 %v5278_v34 }
0x245c   :  { %6760 = vrcp.f32 %v5277_v42 }
0x2465   :  { %v6759_v37 = vpop.eup %6758 }
0x2466   :  { %v6761_v41 = vpop.eup %6760  ;;  %v5282_v45 = vmul.f32 %v6759_v37, %v5262_v52 }
0x2467   :  { %v5280_v51 = vmul.f32 %v6761_v41, %v5261_v38 }
0x2468   :  { %v5288_v47 = vadd.f32 %v5494_v21, %v5282_v45 }
0x2469   :  { %v5287_v48 = vadd.f32 %v5494_v21, %v5280_v51 }
0x246a   :  { %5290 = vst.msk [vmem:[#allocation25 + $0x8] sm:$0xff] %vm265_vm0, %v5288_v47 }
0x246b   :  { %5289 = vst.msk [vmem:[#allocation25] sm:$0xff] %vm265_vm0, %v5287_v48 }
0x246c   :  { %7083 = shalt.err (!%p7080_p4)
}
0x246d   :  { %s8222_s8 = sld [smem:[#allocation38_spill]] }
0x2473   :  { %s7084_s19 = scalar_lea.hbm %s8222_s8, 256 }
0x2474   :  { %p7085_p5 = scmp.ne.s32.totalorder %s8222_s8, %s7084_s19  ;;  %p7088_p6 = scmp.lt.u32.totalorder %s7084_s19, %s8222_s8 }
0x2476   :  { %p7090_p7 = pnand %p7088_p6, %p7085_p5 }
0x2478   :  { %7093 = shalt.err (!%p7090_p7)
}
0x2479   :  { %5302 = dma.vmem_to_hbm [thread:$0]  %s5297_s1, 256, %s8222_s8, [#allocation4], %s7114_s25, %s7114_s25, %s7115_s26  }
0x247a   :  { %7110 = dma.done.wait [#allocation4], 256  }
0x247b   :  { %7111 = vsyncadd [#allocation4], 4294967040 }
0x247c   :  { %5306 = vsyncpa [#allocation3], 1 }
0x247d   :  { %5307 = vsyncpa [#allocation6], 1 }
0x247e   :  { %5308 = vsyncpa [#allocation9], 1 }
0x247f   :  { %5309 = vsyncpa [#allocation12], 1 }
0x2480   :  { %5310 = vsyncpa [#allocation15], 1 }
0x2481   :  { %5311 = vsyncpa [#allocation18], 1 }
0x2482   :  { %5312 = vsyncpa [#allocation21], 1 }
0x2483   :  { %5313 = vsyncpa [#allocation24], 1 }
0x2484   :  { %5314 = vsyncpa [#allocation4], 1 }

</bundles_post_ra>
